<compile_context>
chip_gen: v5e
topology: v5e:2x2
jax: 0.10.0
libtpu: 0.0.40
codegen_flags: <defaults>
</compile_context>

<pallas_src>
import jax
import jax.numpy as jnp
from jax.experimental import pallas as pl
from jax.experimental.pallas import tpu as pltpu

B = 8            # batch (also the "sequence" axis the cross-attention mixes over)
D_IMG = 640      # MambaVision pooled feature dim
D_TXT = 384      # MPNet pooled feature dim
D_UNI = 768      # unified dim
FUSE_DIM = 256
EMBD_DIM = 128
NCLASS = 16
NCLASS_PAD = 128  # lane-dense padded logits width


def _mvp_kernel(img_ref, txt_ref,
                w1_ref, b1_ref, w2_ref, b2_ref,
                wqkv_ref, bqkv_ref,
                alpha_ref,
                wm1_ref, bm1_ref, wm2_ref, bm2_ref,
                imgf_ref, txtf_ref, logits_ref):
    f32 = jnp.float32
    bf16 = jnp.bfloat16

    # ---- unifier linears (640->768, 384->768), bf16 weights, f32 accumulate ----
    img = jnp.dot(img_ref[...].astype(bf16), w1_ref[...],
                  preferred_element_type=f32) + b1_ref[...]
    txt = jnp.dot(txt_ref[...].astype(bf16), w2_ref[...],
                  preferred_element_type=f32) + b2_ref[...]

    # ---- L2 normalize along feature dim (x / ||x||  ==  x * rsqrt(sum x^2)) ----
    img = img * jax.lax.rsqrt(jnp.sum(img * img, axis=-1, keepdims=True))
    txt = txt * jax.lax.rsqrt(jnp.sum(txt * txt, axis=-1, keepdims=True))
    imgf_ref[...] = img
    txtf_ref[...] = txt

    # ---- fused Q/K/V projection: one [2B,768] @ [768, 3*FUSE] matmul ----
    x = jnp.concatenate([img, txt], axis=0).astype(bf16)              # [2B, 768]
    qkv = jnp.dot(x, wqkv_ref[...], preferred_element_type=f32) + bqkv_ref[...]

    q_i = qkv[:B, 0:FUSE_DIM]
    k_i = qkv[:B, FUSE_DIM:2 * FUSE_DIM]
    v_i = qkv[:B, 2 * FUSE_DIM:3 * FUSE_DIM]
    q_t = qkv[B:, 0:FUSE_DIM]
    k_t = qkv[B:, FUSE_DIM:2 * FUSE_DIM]
    v_t = qkv[B:, 2 * FUSE_DIM:3 * FUSE_DIM]

    scale = 1.0 / jnp.sqrt(f32(FUSE_DIM))

    def attend(q, k, v):
        s = jnp.dot(q, k.T, preferred_element_type=f32) * scale       # [B, B]
        s = s - jnp.max(s, axis=-1, keepdims=True)
        p = jnp.exp(s)
        p = p * pl.reciprocal(jnp.sum(p, axis=-1, keepdims=True), approx=True)
        return jnp.dot(p, v, preferred_element_type=f32)               # [B, FUSE_DIM]

    attn_a = attend(q_i, k_t, v_t)   # fuser(image, text)
    attn_b = attend(q_t, k_i, v_i)   # fuser(text, image)

    # ---- learned alpha blend (scalar from SMEM) ----
    alpha = alpha_ref[0, 0]
    fused = alpha * attn_a + (1.0 - alpha) * attn_b

    # ---- classification MLP: Linear -> ReLU -> Linear (lane-padded output) ----
    h = jnp.dot(fused.astype(bf16), wm1_ref[...],
                preferred_element_type=f32) + bm1_ref[...]
    h = jnp.maximum(h, 0.0)
    logits_ref[...] = jnp.dot(h.astype(bf16), wm2_ref[...],
                              preferred_element_type=f32) + bm2_ref[...]


def _prepare_params(p):
    """Cast weights to bf16, fuse QKV, lane-pad the final linear."""
    bf16 = jnp.bfloat16
    wqkv = jnp.concatenate([p["wq"], p["wk"], p["wv"]], axis=1).astype(bf16)
    bqkv = jnp.concatenate([p["bq"], p["bk"], p["bv"]], axis=1)
    wm2p = jnp.zeros((EMBD_DIM, NCLASS_PAD), jnp.float32).at[:, :NCLASS].set(p["wm2"])
    bm2p = jnp.zeros((1, NCLASS_PAD), jnp.float32).at[:, :NCLASS].set(p["bm2"])
    return dict(
        w1=p["w1"].astype(bf16), b1=p["b1"],
        w2=p["w2"].astype(bf16), b2=p["b2"],
        wqkv=wqkv, bqkv=bqkv,
        alpha=p["alpha"],
        wm1=p["wm1"].astype(bf16), bm1=p["bm1"],
        wm2=wm2p.astype(bf16), bm2=bm2p,
    )


def mvp_forward(image_features, text_features, kp):
    """Run the fused MVP head. All operands are small -> whole arrays in VMEM, grid of 1."""
    vmem = pl.BlockSpec(memory_space=pltpu.MemorySpace.VMEM)
    smem = pl.BlockSpec(memory_space=pltpu.MemorySpace.SMEM)

    args = (image_features, text_features,
            kp["w1"], kp["b1"], kp["w2"], kp["b2"],
            kp["wqkv"], kp["bqkv"],
            kp["alpha"],
            kp["wm1"], kp["bm1"], kp["wm2"], kp["bm2"])
    in_specs = [vmem, vmem,
                vmem, vmem, vmem, vmem,
                vmem, vmem,
                smem,
                vmem, vmem, vmem, vmem]

    out_shape = (
        jax.ShapeDtypeStruct((B, D_UNI), jnp.float32),       # normalized image features
        jax.ShapeDtypeStruct((B, D_UNI), jnp.float32),       # normalized text features
        jax.ShapeDtypeStruct((B, NCLASS_PAD), jnp.float32),  # lane-padded logits
    )

    # Advisory cost estimate (weight-DMA dominated kernel).
    flops = 2 * (B * D_IMG * D_UNI + B * D_TXT * D_UNI
                 + 2 * B * D_UNI * 3 * FUSE_DIM
                 + 2 * (2 * B * B * FUSE_DIM)
                 + B * FUSE_DIM * EMBD_DIM + B * EMBD_DIM * NCLASS_PAD)
    weight_bytes = 2 * (D_IMG * D_UNI + D_TXT * D_UNI + D_UNI * 3 * FUSE_DIM
                        + FUSE_DIM * EMBD_DIM + EMBD_DIM * NCLASS_PAD)
    bias_bytes = 4 * (2 * D_UNI + 3 * FUSE_DIM + EMBD_DIM + NCLASS_PAD + 1)
    act_bytes = 4 * (B * D_IMG + B * D_TXT + 2 * B * D_UNI + B * NCLASS_PAD)
    cost = pl.CostEstimate(flops=flops,
                           transcendentals=2 * B * B + 4 * B,
                           bytes_accessed=weight_bytes + bias_bytes + act_bytes)

    img_n, txt_n, logits_pad = pl.pallas_call(
        _mvp_kernel,
        out_shape=out_shape,
        in_specs=in_specs,
        out_specs=(vmem, vmem, vmem),
        cost_estimate=cost,
    )(*args)
    return img_n, txt_n, logits_pad[:, :NCLASS]


def _reference(image_features, text_features, p):
    """Pure-JAX reference mirroring the kernel's bf16-weight / f32-accumulate math."""
    bf16 = jnp.bfloat16
    f32 = jnp.float32

    def mm(x, w):
        return jnp.dot(x.astype(bf16), w.astype(bf16), preferred_element_type=f32)

    img = mm(image_features, p["w1"]) + p["b1"]
    txt = mm(text_features, p["w2"]) + p["b2"]
    img = img * jax.lax.rsqrt(jnp.sum(img * img, axis=-1, keepdims=True))
    txt = txt * jax.lax.rsqrt(jnp.sum(txt * txt, axis=-1, keepdims=True))

    def ca(a, b):
        q = mm(a, p["wq"]) + p["bq"]
        k = mm(b, p["wk"]) + p["bk"]
        v = mm(b, p["wv"]) + p["bv"]
        s = jnp.dot(q, k.T, preferred_element_type=f32) / jnp.sqrt(f32(FUSE_DIM))
        return jnp.dot(jax.nn.softmax(s, axis=-1), v, preferred_element_type=f32)

    alpha = p["alpha"][0, 0]
    fused = alpha * ca(img, txt) + (1.0 - alpha) * ca(txt, img)
    h = jnp.maximum(mm(fused, p["wm1"]) + p["bm1"], 0.0)
    logits = mm(h, p["wm2"]) + p["bm2"]
    return img, txt, logits


def _init_params(key):
    ks = jax.random.split(key, 8)

    def lin(kw, fan_in, fan_out):
        s = 1.0 / jnp.sqrt(jnp.float32(fan_in))
        w = jax.random.uniform(kw, (fan_in, fan_out), jnp.float32, -s, s)
        b = jnp.zeros((1, fan_out), jnp.float32)
        return w, b

    w1, b1 = lin(ks[0], D_IMG, D_UNI)
    w2, b2 = lin(ks[1], D_TXT, D_UNI)
    wq, bq = lin(ks[2], D_UNI, FUSE_DIM)
    wk, bk = lin(ks[3], D_UNI, FUSE_DIM)
    wv, bv = lin(ks[4], D_UNI, FUSE_DIM)
    wm1, bm1 = lin(ks[5], FUSE_DIM, EMBD_DIM)
    wm2, bm2 = lin(ks[6], EMBD_DIM, NCLASS)
    alpha = jax.random.normal(ks[7], (1, 1), jnp.float32)
    return dict(w1=w1, b1=b1, w2=w2, b2=b2,
                wq=wq, bq=bq, wk=wk, bk=bk, wv=wv, bv=bv,
                alpha=alpha, wm1=wm1, bm1=bm1, wm2=wm2, bm2=bm2)


if __name__ == "__main__":
    key = jax.random.PRNGKey(0)
    k_img, k_txt, k_par = jax.random.split(key, 3)

    image_features = jax.random.normal(k_img, (B, D_IMG), jnp.float32)
    text_features = jax.random.normal(k_txt, (B, D_TXT), jnp.float32)
    params = _init_params(k_par)
    kernel_params = _prepare_params(params)

    img_n, txt_n, logits = jax.block_until_ready(
        mvp_forward(image_features, text_features, kernel_params))

    ref_img, ref_txt, ref_logits = _reference(image_features, text_features, params)
    assert jnp.allclose(img_n, ref_img, atol=1e-2, rtol=1e-2)
    assert jnp.allclose(txt_n, ref_txt, atol=1e-2, rtol=1e-2)
    assert jnp.allclose(logits, ref_logits, atol=1e-2, rtol=1e-2)

    print("KERNEL_OK")
</pallas_src>

<mosaic_0001>
module attributes {stable_mosaic.version = 11 : i64} {
  func.func @_mvp_kernel(%arg0: memref<8x640xf32, #tpu.memory_space<vmem>>, %arg1: memref<8x384xf32, #tpu.memory_space<vmem>>, %arg2: memref<640x768xbf16, #tpu.memory_space<vmem>>, %arg3: memref<1x768xf32, #tpu.memory_space<vmem>>, %arg4: memref<384x768xbf16, #tpu.memory_space<vmem>>, %arg5: memref<1x768xf32, #tpu.memory_space<vmem>>, %arg6: memref<768x768xbf16, #tpu.memory_space<vmem>>, %arg7: memref<1x768xf32, #tpu.memory_space<vmem>>, %arg8: memref<1x1xf32, #tpu.memory_space<smem>>, %arg9: memref<256x128xbf16, #tpu.memory_space<vmem>>, %arg10: memref<1x128xf32, #tpu.memory_space<vmem>>, %arg11: memref<128x128xbf16, #tpu.memory_space<vmem>>, %arg12: memref<1x128xf32, #tpu.memory_space<vmem>>, %arg13: memref<8x768xf32, #tpu.memory_space<vmem>>, %arg14: memref<8x768xf32, #tpu.memory_space<vmem>>, %arg15: memref<8x128xf32, #tpu.memory_space<vmem>>) attributes {dimension_semantics = [], scalar_prefetch = 0 : i64, scratch_operands = 0 : i64, tpu.core_type = #tpu.core_type<tc>} {
    %c0 = arith.constant 0 : index
    %c0_0 = arith.constant 0 : index
    %0 = vector.load %arg0[%c0, %c0_0] : memref<8x640xf32, #tpu.memory_space<vmem>>, vector<8x640xf32>
    %1 = arith.truncf %0 : vector<8x640xf32> to vector<8x640xbf16>
    %c0_1 = arith.constant 0 : index
    %c0_2 = arith.constant 0 : index
    %2 = vector.load %arg2[%c0_1, %c0_2] : memref<640x768xbf16, #tpu.memory_space<vmem>>, vector<640x768xbf16>
    %cst = arith.constant dense<0.000000e+00> : vector<8x768xf32>
    %3 = tpu.matmul %1, %2, %cst {dimension_numbers = #tpu.dot_dimension_numbers<[1], [0], [0], [1], [0, 0, 1, 1], [], []>} : vector<8x640xbf16>, vector<640x768xbf16>, vector<8x768xf32> -> vector<8x768xf32>
    %c0_3 = arith.constant 0 : index
    %c0_4 = arith.constant 0 : index
    %4 = vector.load %arg3[%c0_3, %c0_4] : memref<1x768xf32, #tpu.memory_space<vmem>>, vector<1x768xf32>
    %5 = vector.broadcast %4 : vector<1x768xf32> to vector<8x768xf32>
    %6 = arith.addf %3, %5 : vector<8x768xf32>
    %c0_5 = arith.constant 0 : index
    %c0_6 = arith.constant 0 : index
    %7 = vector.load %arg1[%c0_5, %c0_6] : memref<8x384xf32, #tpu.memory_space<vmem>>, vector<8x384xf32>
    %8 = arith.truncf %7 : vector<8x384xf32> to vector<8x384xbf16>
    %c0_7 = arith.constant 0 : index
    %c0_8 = arith.constant 0 : index
    %9 = vector.load %arg4[%c0_7, %c0_8] : memref<384x768xbf16, #tpu.memory_space<vmem>>, vector<384x768xbf16>
    %cst_9 = arith.constant dense<0.000000e+00> : vector<8x768xf32>
    %10 = tpu.matmul %8, %9, %cst_9 {dimension_numbers = #tpu.dot_dimension_numbers<[1], [0], [0], [1], [0, 0, 1, 1], [], []>} : vector<8x384xbf16>, vector<384x768xbf16>, vector<8x768xf32> -> vector<8x768xf32>
    %c0_10 = arith.constant 0 : index
    %c0_11 = arith.constant 0 : index
    %11 = vector.load %arg5[%c0_10, %c0_11] : memref<1x768xf32, #tpu.memory_space<vmem>>, vector<1x768xf32>
    %12 = vector.broadcast %11 : vector<1x768xf32> to vector<8x768xf32>
    %13 = arith.addf %10, %12 : vector<8x768xf32>
    %14 = arith.mulf %6, %6 : vector<8x768xf32>
    %cst_12 = arith.constant dense<0.000000e+00> : vector<8xf32>
    %15 = vector.multi_reduction <add>, %14, %cst_12 [1] : vector<8x768xf32> to vector<8xf32>
    %16 = vector.shape_cast %15 : vector<8xf32> to vector<8x1xf32>
    %17 = math.rsqrt %16 : vector<8x1xf32>
    %18 = vector.broadcast %17 : vector<8x1xf32> to vector<8x768xf32>
    %19 = arith.mulf %6, %18 : vector<8x768xf32>
    %20 = arith.mulf %13, %13 : vector<8x768xf32>
    %cst_13 = arith.constant dense<0.000000e+00> : vector<8xf32>
    %21 = vector.multi_reduction <add>, %20, %cst_13 [1] : vector<8x768xf32> to vector<8xf32>
    %22 = vector.shape_cast %21 : vector<8xf32> to vector<8x1xf32>
    %23 = math.rsqrt %22 : vector<8x1xf32>
    %24 = vector.broadcast %23 : vector<8x1xf32> to vector<8x768xf32>
    %25 = arith.mulf %13, %24 : vector<8x768xf32>
    %c0_14 = arith.constant 0 : index
    %c0_15 = arith.constant 0 : index
    %26 = vector.load %arg13[%c0_14, %c0_15] : memref<8x768xf32, #tpu.memory_space<vmem>>, vector<8x768xf32>
    tpu.vector_store %arg13[%c0_14, %c0_15], %19 {strides = array<i32>} : memref<8x768xf32, #tpu.memory_space<vmem>>, vector<8x768xf32>,
    %c0_16 = arith.constant 0 : index
    %c0_17 = arith.constant 0 : index
    %27 = vector.load %arg14[%c0_16, %c0_17] : memref<8x768xf32, #tpu.memory_space<vmem>>, vector<8x768xf32>
    tpu.vector_store %arg14[%c0_16, %c0_17], %25 {strides = array<i32>} : memref<8x768xf32, #tpu.memory_space<vmem>>, vector<8x768xf32>,
    %28 = tpu.concatenate %19, %25 in 0 : vector<8x768xf32>, vector<8x768xf32> -> vector<16x768xf32>
    %29 = arith.truncf %28 : vector<16x768xf32> to vector<16x768xbf16>
    %c0_18 = arith.constant 0 : index
    %c0_19 = arith.constant 0 : index
    %30 = vector.load %arg6[%c0_18, %c0_19] : memref<768x768xbf16, #tpu.memory_space<vmem>>, vector<768x768xbf16>
    %cst_20 = arith.constant dense<0.000000e+00> : vector<16x768xf32>
    %31 = tpu.matmul %29, %30, %cst_20 {dimension_numbers = #tpu.dot_dimension_numbers<[1], [0], [0], [1], [0, 0, 1, 1], [], []>} : vector<16x768xbf16>, vector<768x768xbf16>, vector<16x768xf32> -> vector<16x768xf32>
    %c0_21 = arith.constant 0 : index
    %c0_22 = arith.constant 0 : index
    %32 = vector.load %arg7[%c0_21, %c0_22] : memref<1x768xf32, #tpu.memory_space<vmem>>, vector<1x768xf32>
    %33 = vector.broadcast %32 : vector<1x768xf32> to vector<16x768xf32>
    %34 = arith.addf %31, %33 : vector<16x768xf32>
    %35 = vector.extract_strided_slice %34 {offsets = [0, 0], sizes = [8, 256], strides = [1, 1]} : vector<16x768xf32> to vector<8x256xf32>
    %36 = vector.extract_strided_slice %34 {offsets = [0, 256], sizes = [8, 256], strides = [1, 1]} : vector<16x768xf32> to vector<8x256xf32>
    %37 = vector.extract_strided_slice %34 {offsets = [0, 512], sizes = [8, 256], strides = [1, 1]} : vector<16x768xf32> to vector<8x256xf32>
    %38 = vector.extract_strided_slice %34 {offsets = [8, 0], sizes = [8, 256], strides = [1, 1]} : vector<16x768xf32> to vector<8x256xf32>
    %39 = vector.extract_strided_slice %34 {offsets = [8, 256], sizes = [8, 256], strides = [1, 1]} : vector<16x768xf32> to vector<8x256xf32>
    %40 = vector.extract_strided_slice %34 {offsets = [8, 512], sizes = [8, 256], strides = [1, 1]} : vector<16x768xf32> to vector<8x256xf32>
    %cst_23 = arith.constant 2.560000e+02 : f32
    %41 = math.sqrt %cst_23 : f32
    %cst_24 = arith.constant 1.000000e+00 : f32
    %42 = arith.divf %cst_24, %41 : f32
    %43 = tpu.transpose %39, [1, 0] : vector<8x256xf32> -> vector<256x8xf32>
    %cst_25 = arith.constant dense<0.000000e+00> : vector<8x8xf32>
    %44 = tpu.matmul %35, %43, %cst_25 {dimension_numbers = #tpu.dot_dimension_numbers<[1], [0], [0], [1], [0, 0, 1, 1], [], []>} : vector<8x256xf32>, vector<256x8xf32>, vector<8x8xf32> -> vector<8x8xf32>
    %45 = vector.broadcast %42 : f32 to vector<8x8xf32>
    %46 = arith.mulf %44, %45 : vector<8x8xf32>
    %cst_26 = arith.constant dense<0xFF800000> : vector<8xf32>
    %47 = vector.multi_reduction <maximumf>, %46, %cst_26 [1] : vector<8x8xf32> to vector<8xf32>
    %48 = vector.shape_cast %47 : vector<8xf32> to vector<8x1xf32>
    %49 = vector.broadcast %48 : vector<8x1xf32> to vector<8x8xf32>
    %50 = arith.subf %46, %49 : vector<8x8xf32>
    %51 = math.exp %50 : vector<8x8xf32>
    %cst_27 = arith.constant dense<0.000000e+00> : vector<8xf32>
    %52 = vector.multi_reduction <add>, %51, %cst_27 [1] : vector<8x8xf32> to vector<8xf32>
    %53 = vector.shape_cast %52 : vector<8xf32> to vector<8x1xf32>
    %54 = tpu.reciprocal %53 {approx = true} : vector<8x1xf32> -> vector<8x1xf32>
    %55 = vector.broadcast %54 : vector<8x1xf32> to vector<8x8xf32>
    %56 = arith.mulf %51, %55 : vector<8x8xf32>
    %cst_28 = arith.constant dense<0.000000e+00> : vector<8x256xf32>
    %57 = tpu.matmul %56, %40, %cst_28 {dimension_numbers = #tpu.dot_dimension_numbers<[1], [0], [0], [1], [0, 0, 1, 1], [], []>} : vector<8x8xf32>, vector<8x256xf32>, vector<8x256xf32> -> vector<8x256xf32>
    %58 = tpu.transpose %36, [1, 0] : vector<8x256xf32> -> vector<256x8xf32>
    %cst_29 = arith.constant dense<0.000000e+00> : vector<8x8xf32>
    %59 = tpu.matmul %38, %58, %cst_29 {dimension_numbers = #tpu.dot_dimension_numbers<[1], [0], [0], [1], [0, 0, 1, 1], [], []>} : vector<8x256xf32>, vector<256x8xf32>, vector<8x8xf32> -> vector<8x8xf32>
    %60 = vector.broadcast %42 : f32 to vector<8x8xf32>
    %61 = arith.mulf %59, %60 : vector<8x8xf32>
    %cst_30 = arith.constant dense<0xFF800000> : vector<8xf32>
    %62 = vector.multi_reduction <maximumf>, %61, %cst_30 [1] : vector<8x8xf32> to vector<8xf32>
    %63 = vector.shape_cast %62 : vector<8xf32> to vector<8x1xf32>
    %64 = vector.broadcast %63 : vector<8x1xf32> to vector<8x8xf32>
    %65 = arith.subf %61, %64 : vector<8x8xf32>
    %66 = math.exp %65 : vector<8x8xf32>
    %cst_31 = arith.constant dense<0.000000e+00> : vector<8xf32>
    %67 = vector.multi_reduction <add>, %66, %cst_31 [1] : vector<8x8xf32> to vector<8xf32>
    %68 = vector.shape_cast %67 : vector<8xf32> to vector<8x1xf32>
    %69 = tpu.reciprocal %68 {approx = true} : vector<8x1xf32> -> vector<8x1xf32>
    %70 = vector.broadcast %69 : vector<8x1xf32> to vector<8x8xf32>
    %71 = arith.mulf %66, %70 : vector<8x8xf32>
    %cst_32 = arith.constant dense<0.000000e+00> : vector<8x256xf32>
    %72 = tpu.matmul %71, %37, %cst_32 {dimension_numbers = #tpu.dot_dimension_numbers<[1], [0], [0], [1], [0, 0, 1, 1], [], []>} : vector<8x8xf32>, vector<8x256xf32>, vector<8x256xf32> -> vector<8x256xf32>
    %c0_33 = arith.constant 0 : index
    %c0_34 = arith.constant 0 : index
    %73 = memref.load %arg8[%c0_33, %c0_34] : memref<1x1xf32, #tpu.memory_space<smem>>
    %74 = vector.broadcast %73 : f32 to vector<8x256xf32>
    %75 = arith.mulf %74, %57 : vector<8x256xf32>
    %cst_35 = arith.constant 1.000000e+00 : f32
    %76 = arith.subf %cst_35, %73 : f32
    %77 = vector.broadcast %76 : f32 to vector<8x256xf32>
    %78 = arith.mulf %77, %72 : vector<8x256xf32>
    %79 = arith.addf %75, %78 : vector<8x256xf32>
    %80 = arith.truncf %79 : vector<8x256xf32> to vector<8x256xbf16>
    %c0_36 = arith.constant 0 : index
    %c0_37 = arith.constant 0 : index
    %81 = vector.load %arg9[%c0_36, %c0_37] : memref<256x128xbf16, #tpu.memory_space<vmem>>, vector<256x128xbf16>
    %cst_38 = arith.constant dense<0.000000e+00> : vector<8x128xf32>
    %82 = tpu.matmul %80, %81, %cst_38 {dimension_numbers = #tpu.dot_dimension_numbers<[1], [0], [0], [1], [0, 0, 1, 1], [], []>} : vector<8x256xbf16>, vector<256x128xbf16>, vector<8x128xf32> -> vector<8x128xf32>
    %c0_39 = arith.constant 0 : index
    %c0_40 = arith.constant 0 : index
    %83 = vector.load %arg10[%c0_39, %c0_40] : memref<1x128xf32, #tpu.memory_space<vmem>>, vector<1x128xf32>
    %84 = vector.broadcast %83 : vector<1x128xf32> to vector<8x128xf32>
    %85 = arith.addf %82, %84 : vector<8x128xf32>
    %cst_41 = arith.constant 0.000000e+00 : f32
    %86 = vector.broadcast %cst_41 : f32 to vector<8x128xf32>
    %87 = arith.maximumf %85, %86 : vector<8x128xf32>
    %88 = arith.truncf %87 : vector<8x128xf32> to vector<8x128xbf16>
    %c0_42 = arith.constant 0 : index
    %c0_43 = arith.constant 0 : index
    %89 = vector.load %arg11[%c0_42, %c0_43] : memref<128x128xbf16, #tpu.memory_space<vmem>>, vector<128x128xbf16>
    %cst_44 = arith.constant dense<0.000000e+00> : vector<8x128xf32>
    %90 = tpu.matmul %88, %89, %cst_44 {dimension_numbers = #tpu.dot_dimension_numbers<[1], [0], [0], [1], [0, 0, 1, 1], [], []>} : vector<8x128xbf16>, vector<128x128xbf16>, vector<8x128xf32> -> vector<8x128xf32>
    %c0_45 = arith.constant 0 : index
    %c0_46 = arith.constant 0 : index
    %91 = vector.load %arg12[%c0_45, %c0_46] : memref<1x128xf32, #tpu.memory_space<vmem>>, vector<1x128xf32>
    %92 = vector.broadcast %91 : vector<1x128xf32> to vector<8x128xf32>
    %93 = arith.addf %90, %92 : vector<8x128xf32>
    %c0_47 = arith.constant 0 : index
    %c0_48 = arith.constant 0 : index
    %94 = vector.load %arg15[%c0_47, %c0_48] : memref<8x128xf32, #tpu.memory_space<vmem>>, vector<8x128xf32>
    tpu.vector_store %arg15[%c0_47, %c0_48], %93 {strides = array<i32>} : memref<8x128xf32, #tpu.memory_space<vmem>>, vector<8x128xf32>,
    return
  }
}

</mosaic_0001>

<bundles_post_ra>
// kernel: tpu_custom_call.1
= control target key start
LH: loop header
LB: loop body
LE: loop exit
PB: predicated region body
PF: predicated region fallthrough
CT: control target
= control target key end

     0   :  { %22 = vsyncpa [#allocation4], 0  ;;  %s10439_s0 = inlined_call_operand.hbm [shape: f32[8,640], index: 0, kind: input, shape index: {}]   ;;  %s10440_s1 = inlined_call_operand.hbm [shape: f32[8,384], index: 1, kind: input, shape index: {}]   ;;  %s10441_s2 = inlined_call_operand.hbm [shape: bf16[640,768], index: 2, kind: input, shape index: {}]   ;;  %s10442_s3 = inlined_call_operand.hbm [shape: f32[1,768], index: 3, kind: input, shape index: {}]   ;;  %s10443_s4 = inlined_call_operand.hbm [shape: bf16[384,768], index: 4, kind: input, shape index: {}]   ;;  %s10444_s5 = inlined_call_operand.hbm [shape: f32[1,768], index: 5, kind: input, shape index: {}]   ;;  %s10445_s6 = inlined_call_operand.hbm [shape: bf16[768,768], index: 6, kind: input, shape index: {}]   ;;  %s10446_s7 = inlined_call_operand.hbm [shape: f32[1,768], index: 7, kind: input, shape index: {}]   ;;  %s10447_s8 = inlined_call_operand.<no memory space> [shape: f32[1,1], index: 8, kind: input, shape index: {}]   ;;  %s10448_s9 = inlined_call_operand.hbm [shape: bf16[256,128], index: 9, kind: input, shape index: {}]   ;;  %s10449_s10 = inlined_call_operand.hbm [shape: f32[1,128], index: 10, kind: input, shape index: {}]   ;;  %s10450_s11 = inlined_call_operand.hbm [shape: bf16[128,128], index: 11, kind: input, shape index: {}]   ;;  %s10451_s12 = inlined_call_operand.hbm [shape: f32[1,128], index: 12, kind: input, shape index: {}]   ;;  %s10452_s13 = inlined_call_operand.hbm [shape: f32[8,768], index: 13, kind: output, shape index: {0}]   ;;  %s10453_s14 = inlined_call_operand.hbm [shape: f32[8,768], index: 14, kind: output, shape index: {1}]   ;;  %s10454_s15 = inlined_call_operand.hbm [shape: f32[8,128], index: 15, kind: output, shape index: {2}]  }
   0x1   :  { %23 = vsyncpa [#allocation7], 0 }
   0x2   :  { %24 = vsyncpa [#allocation10], 0 }
   0x3   :  { %25 = vsyncpa [#allocation13], 0 }
   0x4   :  { %26 = vsyncpa [#allocation16], 0 }
   0x5   :  { %27 = vsyncpa [#allocation19], 0 }
   0x6   :  { %28 = vsyncpa [#allocation22], 0 }
   0x7   :  { %29 = vsyncpa [#allocation5], 0  ;;  %s47_s20 = sshll.u32 %s10440_s1, 4  ;;  %s48_s20 = int_to_ptr.hbm [resolvable:$true] %s47_s20 }
   0x8   :  { %30 = vsyncpa [#allocation25], 0  ;;  %s9913_s21 = smov [#allocation6]   ;;  %s71_s25 = sshll.u32 %s10442_s3, 4  ;;  %s72_s25 = int_to_ptr.hbm [resolvable:$true] %s71_s25 }
   0x9   :  { %s49_s22 = sshll.u32 %s9913_s21, 4  ;;  %s9914_s26 = smov [#allocation9]   ;;  %s50_s22 = int_to_ptr.vmem [resolvable:$true] %s49_s22 }
   0xa   :  { %52 = dma.hbm_to_vmem [thread:$0]  %s48_s20, 384, %s50_s22, [#allocation7]  }
   0xb   :  { %s73_s27 = sshll.u32 %s9914_s26, 4  ;;  %s95_s30 = sshll.u32 %s10444_s5, 4  ;;  %s74_s27 = int_to_ptr.vmem [resolvable:$true] %s73_s27  ;;  %s96_s30 = int_to_ptr.hbm [resolvable:$true] %s95_s30 }
   0xc   :  { %76 = dma.hbm_to_vmem [thread:$0]  %s72_s25, 96, %s74_s27, [#allocation10]  }
   0xd   :  { %s119_s17 = sshll.u32 %s10446_s7, 4  ;;  %s9915_s18 = smov [#allocation12]   ;;  %s120_s17 = int_to_ptr.hbm [resolvable:$true] %s119_s17 }
   0xe   :  { %s97_s19 = sshll.u32 %s9915_s18, 4  ;;  %s9916_s3 = smov [#allocation15]   ;;  %s98_s19 = int_to_ptr.vmem [resolvable:$true] %s97_s19 }
   0xf   :  { %100 = dma.hbm_to_vmem [thread:$0]  %s96_s30, 96, %s98_s19, [#allocation13]  }
  0x10   :  { %s121_s20 = sshll.u32 %s9916_s3, 4  ;;  %s145_s23 = sshll.u32 %s10449_s10, 4  ;;  %s122_s20 = int_to_ptr.vmem [resolvable:$true] %s121_s20  ;;  %s146_s23 = int_to_ptr.hbm [resolvable:$true] %s145_s23 }
  0x11   :  { %124 = dma.hbm_to_vmem [thread:$0]  %s120_s17, 96, %s122_s20, [#allocation16]  }
  0x12   :  { %s36_s25 = sshll.u32 %s10439_s0, 4  ;;  %s9917_s26 = smov [#allocation18]   ;;  %s37_s25 = int_to_ptr.hbm [resolvable:$true] %s36_s25 }
  0x13   :  { %s147_s7 = sshll.u32 %s9917_s26, 4  ;;  %s9918_s27 = smov [#allocation3]   ;;  %s148_s7 = int_to_ptr.vmem [resolvable:$true] %s147_s7 }
  0x14   :  { %150 = dma.hbm_to_vmem [thread:$0]  %s146_s23, 16, %s148_s7, [#allocation19]  }
  0x15   :  { %s38_s28 = sshll.u32 %s9918_s27, 4  ;;  %s57_s1 = sshll.u32 %s10441_s2, 4  ;;  %s39_s28 = int_to_ptr.vmem [resolvable:$true] %s38_s28  ;;  %s58_s1 = int_to_ptr.hbm [resolvable:$true] %s57_s1 }
  0x16   :  { %41 = dma.hbm_to_vmem [thread:$0]  %s37_s25, 640, %s39_s28, [#allocation4]  }
  0x17   :  { %s9919_s10 = smov [#allocation8]   ;;  %s81_s0 = sshll.u32 %s10443_s4, 4  ;;  %s82_s0 = int_to_ptr.hbm [resolvable:$true] %s81_s0 }
  0x18   :  { %s59_s16 = sshll.u32 %s9919_s10, 4  ;;  %s9920_s19 = smov 384   ;;  %s60_s16 = int_to_ptr.vmem [resolvable:$true] %s59_s16 }
  0x19   :  { %s9921_s3 = smov 24   ;;  %s9922_s20 = smov [#allocation11]  }
  0x1a   :  { %65 = dma.hbm_to_vmem [thread:$0]  %s58_s1, 30720, %s60_s16, [#allocation7], %s9920_s19, %s9920_s19, %s9921_s3  }
  0x1b   :  { %s83_s21 = sshll.u32 %s9922_s20, 4  ;;  %s105_s2 = sshll.u32 %s10445_s6, 4  ;;  %s84_s21 = int_to_ptr.vmem [resolvable:$true] %s83_s21  ;;  %s106_s2 = int_to_ptr.hbm [resolvable:$true] %s105_s2 }
  0x1c   :  { %89 = dma.hbm_to_vmem [thread:$0]  %s82_s0, 18432, %s84_s21, [#allocation10], %s9920_s19, %s9920_s19, %s9921_s3  }
  0x1d   :  { %s131_s25 = sshll.u32 %s10448_s9, 4  ;;  %s9923_s26 = smov [#allocation14]   ;;  %s132_s25 = int_to_ptr.hbm [resolvable:$true] %s131_s25 }
  0x1e   :  { %s107_s7 = sshll.u32 %s9923_s26, 4  ;;  %s9924_s4 = smov [#allocation17]   ;;  %s108_s7 = int_to_ptr.vmem [resolvable:$true] %s107_s7 }
  0x1f   :  { %113 = dma.hbm_to_vmem [thread:$0]  %s106_s2, 36864, %s108_s7, [#allocation13], %s9920_s19, %s9920_s19, %s9921_s3  }
  0x20   :  { %s133_s27 = sshll.u32 %s9924_s4, 4  ;;  %s9925_s28 = smov 64   ;;  %s134_s27 = int_to_ptr.vmem [resolvable:$true] %s133_s27 }
  0x21   :  { %s9926_s29 = smov 4   ;;  %s155_s1 = sshll.u32 %s10450_s11, 4  ;;  %s156_s1 = int_to_ptr.hbm [resolvable:$true] %s155_s1 }
  0x22   :  { %139 = dma.hbm_to_vmem [thread:$0]  %s132_s25, 2048, %s134_s27, [#allocation16], %s9925_s28, %s9925_s28, %s9926_s29  }
  0x23   :  { %s9927_s10 = smov [#allocation20]   ;;  %s169_s18 = sshll.u32 %s10451_s12, 4  ;;  %s170_s18 = int_to_ptr.hbm [resolvable:$true] %s169_s18 }
  0x24   :  { %s157_s16 = sshll.u32 %s9927_s10, 4  ;;  %s9928_s0 = smov [#allocation21]   ;;  %s158_s16 = int_to_ptr.vmem [resolvable:$true] %s157_s16 }
  0x25   :  { %163 = dma.hbm_to_vmem [thread:$0]  %s156_s1, 1024, %s158_s16, [#allocation19], %s9925_s28, %s9925_s28, %s9926_s29  }
  0x26   :  { %s171_s19 = sshll.u32 %s9928_s0, 4  ;;  %s172_s19 = int_to_ptr.vmem [resolvable:$true] %s171_s19 }
  0x27   :  { %174 = dma.hbm_to_vmem [thread:$0]  %s170_s18, 16, %s172_s19, [#allocation22]  }
  0x28   :  { %9895 = dma.done.wait [#allocation4], 640  }
  0x29   :  { %9896 = vsyncadd [#allocation4], 4294966656 }
  0x2a   :  { %9897 = dma.done.wait [#allocation7], 31104  }
  0x2b   :  { %9898 = vsyncadd [#allocation7], 4294936192 }
  0x2c   :  { %9899 = dma.done.wait [#allocation10], 18528  }
  0x2d   :  { %9900 = vsyncadd [#allocation10], 4294948768 }
  0x2e   :  { %9901 = dma.done.wait [#allocation13], 36960  }
  0x2f   :  { %9902 = vsyncadd [#allocation13], 4294930336 }
  0x30   :  { %9903 = dma.done.wait [#allocation16], 2144  }
  0x31   :  { %9904 = vsyncadd [#allocation16], 4294965152 }
  0x32   :  { %9905 = dma.done.wait [#allocation19], 1040  }
  0x33   :  { %9906 = vsyncadd [#allocation19], 4294966256 }
  0x34   :  { %9907 = dma.done.wait [#allocation22], 16  }
  0x35   :  { %9908 = vsyncadd [#allocation22], 4294967280  ;;  %v6186_v0 = vld [vmem:[#allocation8 + $0x150] sm:$0xf]  ;;  %v8849_v1 = vld [vmem:[#allocation8 + $0x164] sm:$0xf0] }
  0x36   :  { %v6570_v2 = vld [vmem:[#allocation8 + $0x450] sm:$0xf]  ;;  %v6187_v3 = vor.u32 %v8849_v1, %v6186_v0  ;;  %v8945_v4 = vld [vmem:[#allocation8 + $0x464] sm:$0xf0]  ;;  %v6162_v5 = vld [vmem:[#allocation8 + $0x120] sm:$0xf] }
  0x37   :  { %v8843_v6 = vld [vmem:[#allocation8 + $0x134] sm:$0xf0]  ;;  %v6571_v7 = vor.u32 %v8945_v4, %v6570_v2  ;;  %v6378_v8 = vld [vmem:[#allocation8 + $0x2d0] sm:$0xf]  ;;  %v8897_v9 = vld [vmem:[#allocation8 + $0x2e4] sm:$0xf0] }
  0x38   :  { %v6546_v10 = vld [vmem:[#allocation8 + $0x420] sm:$0xf]  ;;  %1687 = vmatpush.bf16.msra.mxu3 %v6187_v3  ;;  %v6163_v11 = vor.u32 %v8843_v6, %v6162_v5  ;;  %v6379_v12 = vor.u32 %v8897_v9, %v6378_v8  ;;  %v8939_v13 = vld [vmem:[#allocation8 + $0x434] sm:$0xf0]  ;;  %v6138_v14 = vld [vmem:[#allocation8 + $0xf0] sm:$0xf] }
  0x39   :  { %1713 = vmatpush.bf16.msra.mxu2 %v6571_v7  ;;  %v6547_v15 = vor.u32 %v8939_v13, %v6546_v10  ;;  %v8837_v16 = vld [vmem:[#allocation8 + $0x104] sm:$0xf0]  ;;  %v6354_v17 = vld [vmem:[#allocation8 + $0x2a0] sm:$0xf]  ;;  %v8891_v18 = vld [vmem:[#allocation8 + $0x2b4] sm:$0xf0] }
  0x3a   :  { %1700 = vmatpush.bf16.msra.mxu1 %v6379_v12  ;;  %v6355_v19 = vor.u32 %v8891_v18, %v6354_v17  ;;  %v6522_v20 = vld [vmem:[#allocation8 + $0x3f0] sm:$0xf]  ;;  %v8933_v21 = vld [vmem:[#allocation8 + $0x404] sm:$0xf0]  ;;  %v6139_v24 = vor.u32 %v8837_v16, %v6138_v14  ;;  %v6114_v26 = vld [vmem:[#allocation8 + $0xc0] sm:$0xf] }
  0x3b   :  { %v6330_v22 = vld [vmem:[#allocation8 + $0x270] sm:$0xf]  ;;  %v8885_v23 = vld [vmem:[#allocation8 + $0x284] sm:$0xf0]  ;;  %v6523_v25 = vor.u32 %v8933_v21, %v6522_v20  ;;  %v8831_v27 = vld [vmem:[#allocation8 + $0xd4] sm:$0xf0] }
  0x3c   :  { %1688 = vmatpush.bf16.msra.mxu3 %v6163_v11  ;;  %v6331_v28 = vor.u32 %v8885_v23, %v6330_v22  ;;  %v6498_v29 = vld [vmem:[#allocation8 + $0x3c0] sm:$0xf]  ;;  %v8927_v30 = vld [vmem:[#allocation8 + $0x3d4] sm:$0xf0]  ;;  %v6115_v33 = vor.u32 %v8831_v27, %v6114_v26  ;;  %v6090_v35 = vld [vmem:[#allocation8 + $0x90] sm:$0xf] }
  0x3d   :  { %1714 = vmatpush.bf16.msra.mxu2 %v6547_v15  ;;  %v6306_v31 = vld [vmem:[#allocation8 + $0x240] sm:$0xf]  ;;  %v8879_v32 = vld [vmem:[#allocation8 + $0x254] sm:$0xf0]  ;;  %v6499_v34 = vor.u32 %v8927_v30, %v6498_v29  ;;  %v8825_v36 = vld [vmem:[#allocation8 + $0xa4] sm:$0xf0] }
  0x3e   :  { %1701 = vmatpush.bf16.msra.mxu1 %v6355_v19  ;;  %v6307_v37 = vor.u32 %v8879_v32, %v6306_v31  ;;  %v6474_v38 = vld [vmem:[#allocation8 + $0x390] sm:$0xf]  ;;  %v8921_v39 = vld [vmem:[#allocation8 + $0x3a4] sm:$0xf0]  ;;  %v6091_v42 = vor.u32 %v8825_v36, %v6090_v35  ;;  %v6066_v44 = vld [vmem:[#allocation8 + $0x60] sm:$0xf] }
  0x3f   :  { %v6282_v40 = vld [vmem:[#allocation8 + $0x210] sm:$0xf]  ;;  %v8873_v41 = vld [vmem:[#allocation8 + $0x224] sm:$0xf0]  ;;  %v6475_v43 = vor.u32 %v8921_v39, %v6474_v38  ;;  %v8819_v45 = vld [vmem:[#allocation8 + $0x74] sm:$0xf0] }
  0x40   :  { %1689 = vmatpush.bf16.msra.mxu3 %v6139_v24  ;;  %v6450_v46 = vld [vmem:[#allocation8 + $0x360] sm:$0xf]  ;;  %v6283_v47 = vor.u32 %v8873_v41, %v6282_v40  ;;  %v8915_v48 = vld [vmem:[#allocation8 + $0x374] sm:$0xf0]  ;;  %v6954_v49 = vld [vmem:[#allocation8 + $0x750] sm:$0xf]  ;;  %v6067_v54 = vor.u32 %v8819_v45, %v6066_v44 }
  0x41   :  { %1715 = vmatpush.bf16.msra.mxu2 %v6523_v25  ;;  %v9041_v50 = vld [vmem:[#allocation8 + $0x764] sm:$0xf0]  ;;  %v6258_v51 = vld [vmem:[#allocation8 + $0x1e0] sm:$0xf]  ;;  %v8867_v52 = vld [vmem:[#allocation8 + $0x1f4] sm:$0xf0]  ;;  %v6451_v55 = vor.u32 %v8915_v48, %v6450_v46 }
  0x42   :  { %1702 = vmatpush.bf16.msra.mxu1 %v6331_v28  ;;  %v6955_v53 = vor.u32 %v9041_v50, %v6954_v49  ;;  %v6042_v56 = vld [vmem:[#allocation8 + $0x30] sm:$0xf]  ;;  %v8813_v57 = vld [vmem:[#allocation8 + $0x44] sm:$0xf0]  ;;  %v6930_v58 = vld [vmem:[#allocation8 + $0x720] sm:$0xf]  ;;  %v6259_v59 = vor.u32 %v8867_v52, %v6258_v51 }
  0x43   :  { %v6426_v60 = vld [vmem:[#allocation8 + $0x330] sm:$0xf]  ;;  %v8909_v61 = vld [vmem:[#allocation8 + $0x344] sm:$0xf0]  ;;  %v9035_v62 = vld [vmem:[#allocation8 + $0x734] sm:$0xf0]  ;;  %v6043_v3 = vor.u32 %v8813_v57, %v6042_v56 }
  0x44   :  { %1690 = vmatpush.bf16.msra.mxu3 %v6115_v33  ;;  %1739 = vmatpush.bf16.msra.mxu0 %v6955_v53  ;;  %v6018_v63 = vld [vmem:[#allocation8] sm:$0xf]  ;;  %v6234_v0 = vld [vmem:[#allocation8 + $0x1b0] sm:$0xf]  ;;  %v8861_v1 = vld [vmem:[#allocation8 + $0x1c4] sm:$0xf0]  ;;  %v6931_v2 = vor.u32 %v9035_v62, %v6930_v58  ;;  %v6427_v7 = vor.u32 %v8909_v61, %v6426_v60 }
  0x45   :  { %1716 = vmatpush.bf16.msra.mxu2 %v6499_v34  ;;  %v8807_v4 = vld [vmem:[#allocation8 + $0x14] sm:$0xf0]  ;;  %v6906_v5 = vld [vmem:[#allocation8 + $0x6f0] sm:$0xf]  ;;  %v9029_v6 = vld [vmem:[#allocation8 + $0x704] sm:$0xf0]  ;;  %v6235_v12 = vor.u32 %v8861_v1, %v6234_v0 }
  0x46   :  { %1703 = vmatpush.bf16.msra.mxu1 %v6307_v37  ;;  %v6762_v8 = vld [vmem:[#allocation8 + $0x5d0] sm:$0xf]  ;;  %v8993_v9 = vld [vmem:[#allocation8 + $0x5e4] sm:$0xf0]  ;;  %v6402_v10 = vld [vmem:[#allocation8 + $0x300] sm:$0xf]  ;;  %v6907_v11 = vor.u32 %v9029_v6, %v6906_v5  ;;  %v6019_v19 = vor.u32 %v8807_v4, %v6018_v63 }
  0x47   :  { %v8903_v13 = vld [vmem:[#allocation8 + $0x314] sm:$0xf0]  ;;  %v8894_v14 = vld [vmem:[#allocation8 + $0x2d4] sm:$0xf]  ;;  %v6380_v15 = vld [vmem:[#allocation8 + $0x2e8] sm:$0xf0]  ;;  %v6763_v23 = vor.u32 %v8993_v9, %v6762_v8 }
  0x48   :  { %1691 = vmatpush.bf16.msra.mxu3 %v6091_v42  ;;  %1740 = vmatpush.bf16.msra.mxu0 %v6931_v2  ;;  %v6210_v16 = vld [vmem:[#allocation8 + $0x180] sm:$0xf]  ;;  %v8855_v17 = vld [vmem:[#allocation8 + $0x194] sm:$0xf0]  ;;  %v8846_v18 = vld [vmem:[#allocation8 + $0x154] sm:$0xf]  ;;  %v6403_v24 = vor.u32 %v8903_v13, %v6402_v10  ;;  %v6383_v26 = vor.u32 %v8894_v14, %v6380_v15 }
  0x49   :  { %1717 = vmatpush.bf16.msra.mxu2 %v6475_v43  ;;  %v6188_v20 = vld [vmem:[#allocation8 + $0x168] sm:$0xf0]  ;;  %v6882_v21 = vld [vmem:[#allocation8 + $0x6c0] sm:$0xf]  ;;  %v9023_v22 = vld [vmem:[#allocation8 + $0x6d4] sm:$0xf0]  ;;  %v6211_v29 = vor.u32 %v8855_v17, %v6210_v16 }
  0x4a   :  { %1704 = vmatpush.bf16.msra.mxu1 %v6283_v47  ;;  %v223_v25 = vld [vmem:[#allocation3] sm:$0xff]  ;;  %v8987_v28 = vld [vmem:[#allocation8 + $0x5b4] sm:$0xf0]  ;;  %v6191_v30 = vor.u32 %v8846_v18, %v6188_v20  ;;  %v6356_v32 = vld [vmem:[#allocation8 + $0x2b8] sm:$0xf0]  ;;  %v6883_v34 = vor.u32 %v9023_v22, %v6882_v21  ;;  %vm5558_vm6 = vcmask 64512  }
  0x4b   :  { %v6738_v27 = vld [vmem:[#allocation8 + $0x5a0] sm:$0xf]  ;;  %v8888_v31 = vld [vmem:[#allocation8 + $0x2a4] sm:$0xf]  ;;  %v6164_v35 = vld [vmem:[#allocation8 + $0x138] sm:$0xf0]  ;;  %v10048_v36 = vpack.c.bf16 %v223_v25, %v223_v25 }
  0x4c   :  { %1692 = vmatpush.bf16.msra.mxu3 %v6067_v54  ;;  %1741 = vmatpush.bf16.msra.mxu0 %v6907_v11  ;;  %v8840_v33 = vld [vmem:[#allocation8 + $0x124] sm:$0xf]  ;;  %v6858_v37 = vld [vmem:[#allocation8 + $0x690] sm:$0xf]  ;;  %v9017_v38 = vld [vmem:[#allocation8 + $0x6a4] sm:$0xf0]  ;;  %v6739_v39 = vor.u32 %v8987_v28, %v6738_v27  ;;  %v6359_v40 = vor.u32 %v8888_v31, %v6356_v32 }
  0x4d   :  { %1718 = vmatpush.bf16.msra.mxu2 %v6451_v55  ;;  %v6714_v41 = vld [vmem:[#allocation8 + $0x570] sm:$0xf]  ;;  %v8981_v42 = vld [vmem:[#allocation8 + $0x584] sm:$0xf0]  ;;  %v6167_v43 = vor.u32 %v8840_v33, %v6164_v35  ;;  %v8882_v44 = vld [vmem:[#allocation8 + $0x274] sm:$0xf]  ;;  %v6859_v47 = vor.u32 %v9017_v38, %v6858_v37 }
  0x4e   :  { %1705 = vmatpush.bf16.msra.mxu1 %v6259_v59  ;;  %v6332_v45 = vld [vmem:[#allocation8 + $0x288] sm:$0xf0]  ;;  %v8834_v46 = vld [vmem:[#allocation8 + $0xf4] sm:$0xf]  ;;  %v6834_v49 = vld [vmem:[#allocation8 + $0x660] sm:$0xf]  ;;  %v6715_v51 = vor.u32 %v8981_v42, %v6714_v41 }
  0x4f   :  { %v6140_v48 = vld [vmem:[#allocation8 + $0x108] sm:$0xf0]  ;;  %v9011_v50 = vld [vmem:[#allocation8 + $0x674] sm:$0xf0]  ;;  %v6335_v52 = vor.u32 %v8882_v44, %v6332_v45  ;;  %v6690_v53 = vld [vmem:[#allocation8 + $0x540] sm:$0xf] }
  0x50   :  { %1693 = vmatpush.bf16.msra.mxu3 %v6043_v3  ;;  %1742 = vmatpush.bf16.msra.mxu0 %v6883_v34  ;;  %v8975_v54 = vld [vmem:[#allocation8 + $0x554] sm:$0xf0]  ;;  %v225_v55 = vld [vmem:[#allocation3 + $0x10] sm:$0xff]  ;;  %v6143_v56 = vor.u32 %v8834_v46, %v6140_v48  ;;  %v8876_v57 = vld [vmem:[#allocation8 + $0x244] sm:$0xf]  ;;  %v6835_v60 = vor.u32 %v9011_v50, %v6834_v49  ;;  %s5712_s3 = ssub.f32 1.0, %s10447_s8 }
  0x51   :  { %1719 = vmatpush.bf16.msra.mxu2 %v6427_v7  ;;  %v6308_v58 = vld [vmem:[#allocation8 + $0x258] sm:$0xf0]  ;;  %v8828_v59 = vld [vmem:[#allocation8 + $0xc4] sm:$0xf]  ;;  %v10051_v61 = vpack.c.bf16 %v225_v55, %v225_v55  ;;  %v6810_v63 = vld [vmem:[#allocation8 + $0x630] sm:$0xf]  ;;  %v6691_v1 = vor.u32 %v8975_v54, %v6690_v53 }
  0x52   :  { %1706 = vmatpush.bf16.msra.mxu1 %v6235_v12  ;;  %v6116_v62 = vld [vmem:[#allocation8 + $0xd8] sm:$0xf0]  ;;  %v9005_v0 = vld [vmem:[#allocation8 + $0x644] sm:$0xf0]  ;;  %v6311_v3 = vor.u32 %v8876_v57, %v6308_v58  ;;  %v6666_v4 = vld [vmem:[#allocation8 + $0x510] sm:$0xf] }
  0x53   :  { %v224_v2 = vld [vmem:[#allocation3 + $0x8] sm:$0xff]  ;;  %v6119_v7 = vor.u32 %v8828_v59, %v6116_v62  ;;  %v8870_v8 = vld [vmem:[#allocation8 + $0x214] sm:$0xf]  ;;  %v6811_v11 = vor.u32 %v9005_v0, %v6810_v63  ;;  %v6786_v13 = vld [vmem:[#allocation8 + $0x600] sm:$0xf]  ;;  %s5980_s5 = sshll.u32 %s10453_s14, 4  ;;  %s5981_s5 = int_to_ptr.hbm [resolvable:$true] %s5980_s5 }
  0x54   :  { %1694 = vmatpush.bf16.msra.mxu3 %v6019_v19  ;;  %1743 = vmatpush.bf16.msra.mxu0 %v6859_v47  ;;  %v8969_v5 = vld [vmem:[#allocation8 + $0x524] sm:$0xf0]  ;;  %v10054_v6 = vpack.c.bf16 %v224_v2, %v224_v2  ;;  %v6284_v9 = vld [vmem:[#allocation8 + $0x228] sm:$0xf0]  ;;  %v8822_v10 = vld [vmem:[#allocation8 + $0x94] sm:$0xf] }
  0x55   :  { %1720 = vmatpush.bf16.msra.mxu2 %v6403_v24  ;;  %v6092_v12 = vld [vmem:[#allocation8 + $0xa8] sm:$0xf0]  ;;  %v8999_v14 = vld [vmem:[#allocation8 + $0x614] sm:$0xf0]  ;;  %v6667_v15 = vor.u32 %v8969_v5, %v6666_v4  ;;  %v8990_v16 = vld [vmem:[#allocation8 + $0x5d4] sm:$0xf]  ;;  %v6287_v18 = vor.u32 %v8870_v8, %v6284_v9 }
  0x56   :  { %1707 = vmatpush.bf16.msra.mxu1 %v6211_v29  ;;  %v6764_v17 = vld [vmem:[#allocation8 + $0x5e8] sm:$0xf0]  ;;  %v6642_v19 = vld [vmem:[#allocation8 + $0x4e0] sm:$0xf]  ;;  %v8963_v20 = vld [vmem:[#allocation8 + $0x4f4] sm:$0xf0]  ;;  %v6095_v21 = vor.u32 %v8822_v10, %v6092_v12  ;;  %v6787_v24 = vor.u32 %v8999_v14, %v6786_v13 }
  0x57   :  { %1695 = vmatmul.bf16.vlgmr.msra.gmra.mxu3 %v10048_v36  ;;  %v8864_v22 = vld [vmem:[#allocation8 + $0x1e4] sm:$0xf]  ;;  %v6068_v27 = vld [vmem:[#allocation8 + $0x78] sm:$0xf0]  ;;  %v6767_v28 = vor.u32 %v8990_v16, %v6764_v17  ;;  %v6643_v29 = vor.u32 %v8963_v20, %v6642_v19  ;;  %v6618_v33 = vld [vmem:[#allocation8 + $0x4b0] sm:$0xf] }
  0x58   :  { %1726 = vmatpush.bf16.msrb.mxu3 %v6763_v23  ;;  %1721 = vmatmul.bf16.vlgmr.msra.gmra.mxu2 %v10051_v61  ;;  %v6260_v23 = vld [vmem:[#allocation8 + $0x1f8] sm:$0xf0]  ;;  %v227_v25 = vld [vmem:[#allocation3 + $0x20] sm:$0xff]  ;;  %v8957_v34 = vld [vmem:[#allocation8 + $0x4c4] sm:$0xf0]  ;;  %s5969_s26 = sshll.u32 %s10452_s13, 4  ;;  %s5970_s26 = int_to_ptr.hbm [resolvable:$true] %s5969_s26 }
  0x59   :  { %1765 = vmatpush.bf16.msrb.mxu2 %v6383_v26  ;;  %1744 = vmatpush.bf16.msra.mxu0 %v6835_v60  ;;  %v8816_v26 = vld [vmem:[#allocation8 + $0x64] sm:$0xf]  ;;  %v6740_v31 = vld [vmem:[#allocation8 + $0x5b8] sm:$0xf0]  ;;  %v6263_v32 = vor.u32 %v8864_v22, %v6260_v23  ;;  %v10057_v35 = vpack.c.bf16 %v227_v25, %v227_v25  ;;  %v8858_v38 = vld [vmem:[#allocation8 + $0x1b4] sm:$0xf] }
  0x5a   :  { %1752 = vmatpush.bf16.msrb.mxu1 %v6191_v30  ;;  %v8984_v30 = vld [vmem:[#allocation8 + $0x5a4] sm:$0xf]  ;;  %v6071_v37 = vor.u32 %v8816_v26, %v6068_v27  ;;  %v6044_v41 = vld [vmem:[#allocation8 + $0x48] sm:$0xf0]  ;;  %v6594_v44 = vld [vmem:[#allocation8 + $0x480] sm:$0xf] }
  0x5b   :  { %1708 = vmatmul.bf16.vlgmr.msra.gmra.mxu1 %v10054_v6  ;;  %v6743_v42 = vor.u32 %v8984_v30, %v6740_v31  ;;  %v8978_v45 = vld [vmem:[#allocation8 + $0x574] sm:$0xf]  ;;  %v6716_v46 = vld [vmem:[#allocation8 + $0x588] sm:$0xf0]  ;;  %v8951_v48 = vld [vmem:[#allocation8 + $0x494] sm:$0xf0] }
  0x5c   :  { %1727 = vmatpush.bf16.msrb.mxu3 %v6739_v39  ;;  %v6236_v39 = vld [vmem:[#allocation8 + $0x1c8] sm:$0xf0]  ;;  %v8942_v49 = vld [vmem:[#allocation8 + $0x454] sm:$0xf]  ;;  %v6212_v53 = vld [vmem:[#allocation8 + $0x198] sm:$0xf0]  ;;  %v6719_v58 = vor.u32 %v8978_v45, %v6716_v46  ;;  %v6595_v59 = vor.u32 %v8951_v48, %v6594_v44 }
  0x5d   :  { %1766 = vmatpush.bf16.msrb.mxu2 %v6359_v40  ;;  %1745 = vmatpush.bf16.msra.mxu0 %v6811_v11  ;;  %v8810_v40 = vld [vmem:[#allocation8 + $0x34] sm:$0xf]  ;;  %v6239_v47 = vor.u32 %v8858_v38, %v6236_v39  ;;  %v6572_v50 = vld [vmem:[#allocation8 + $0x468] sm:$0xf0]  ;;  %v6194_v54 = vld [vmem:[#allocation8 + $0x158] sm:$0xf] }
  0x5e   :  { %1753 = vmatpush.bf16.msrb.mxu1 %v6167_v43  ;;  %v6619_v43 = vor.u32 %v8957_v34, %v6618_v33  ;;  %v8850_v55 = vld [vmem:[#allocation8 + $0x16c] sm:$0xf0]  ;;  %v6020_v57 = vld [vmem:[#allocation8 + $0x18] sm:$0xf0]  ;;  %v9038_v62 = vld [vmem:[#allocation8 + $0x754] sm:$0xf]  ;;  %v6575_v0 = vor.u32 %v8942_v49, %v6572_v50 }
  0x5f   :  { %v226_v60 = vld [vmem:[#allocation3 + $0x18] sm:$0xff]  ;;  %v6956_v63 = vld [vmem:[#allocation8 + $0x768] sm:$0xf0]  ;;  %v8972_v2 = vld [vmem:[#allocation8 + $0x544] sm:$0xf]  ;;  %v6195_v4 = vor.u32 %v8850_v55, %v6194_v54  ;;  %s9930_s7 = smov [#allocation23]  }
  0x60   :  { %1728 = vmatpush.bf16.msrb.mxu3 %v6715_v51  ;;  %v6047_v51 = vor.u32 %v8810_v40, %v6044_v41  ;;  %v8936_v5 = vld [vmem:[#allocation8 + $0x424] sm:$0xf]  ;;  %v10060_v9 = vpack.c.bf16 %v226_v60, %v226_v60  ;;  %v6959_v10 = vor.u32 %v9038_v62, %v6956_v63  ;;  %v6170_v11 = vld [vmem:[#allocation8 + $0x128] sm:$0xf]  ;;  %v8844_v12 = vld [vmem:[#allocation8 + $0x13c] sm:$0xf0] }
  0x61   :  { %1767 = vmatpush.bf16.msrb.mxu2 %v6335_v52  ;;  %1746 = vmatpush.bf16.msra.mxu0 %v6787_v24  ;;  %v8852_v52 = vld [vmem:[#allocation8 + $0x184] sm:$0xf]  ;;  %v6932_v14 = vld [vmem:[#allocation8 + $0x738] sm:$0xf0]  ;;  %v8966_v17 = vld [vmem:[#allocation8 + $0x514] sm:$0xf]  ;;  %v6171_v19 = vor.u32 %v8844_v12, %v6170_v11 }
  0x62   :  { %1754 = vmatpush.bf16.msrb.mxu1 %v6143_v56  ;;  %v8804_v56 = vld [vmem:[#allocation8 + $0x4] sm:$0xf]  ;;  %v8930_v20 = vld [vmem:[#allocation8 + $0x3f4] sm:$0xf]  ;;  %v6146_v23 = vld [vmem:[#allocation8 + $0xf8] sm:$0xf] }
  0x63   :  { %v6023_v8 = vor.u32 %v8804_v56, %v6020_v57  ;;  %v9032_v13 = vld [vmem:[#allocation8 + $0x724] sm:$0xf]  ;;  %v8838_v24 = vld [vmem:[#allocation8 + $0x10c] sm:$0xf0]  ;;  %v9026_v25 = vld [vmem:[#allocation8 + $0x6f4] sm:$0xf] }
  0x64   :  { %1729 = vmatpush.bf16.msrb.mxu3 %v6691_v1  ;;  %1747 = vmatmul.bf16.vlgmr.msra.gmra.mxu0 %v10057_v35  ;;  %v6215_v1 = vor.u32 %v8852_v52, %v6212_v53  ;;  %v6935_v22 = vor.u32 %v9032_v13, %v6932_v14  ;;  %v6908_v26 = vld [vmem:[#allocation8 + $0x708] sm:$0xf0]  ;;  %v6644_v30 = vld [vmem:[#allocation8 + $0x4f8] sm:$0xf0]  ;;  %v6147_v31 = vor.u32 %v8838_v24, %v6146_v23  ;;  %v8832_v38 = vld [vmem:[#allocation8 + $0xdc] sm:$0xf0] }
  0x65   :  { %1768 = vmatpush.bf16.msrb.mxu2 %v6311_v3  ;;  %1791 = vmatpush.bf16.msrb.mxu0 %v6767_v28  ;;  %v6692_v3 = vld [vmem:[#allocation8 + $0x558] sm:$0xf0]  ;;  %v6911_v34 = vor.u32 %v9026_v25, %v6908_v26  ;;  %v9020_v39 = vld [vmem:[#allocation8 + $0x6c4] sm:$0xf]  ;;  %v6620_v44 = vld [vmem:[#allocation8 + $0x4c8] sm:$0xf0] }
  0x66   :  { %1755 = vmatpush.bf16.msrb.mxu1 %v6119_v7  ;;  %v6548_v7 = vld [vmem:[#allocation8 + $0x438] sm:$0xf0]  ;;  %v8918_v46 = vld [vmem:[#allocation8 + $0x394] sm:$0xf]  ;;  %v6098_v49 = vld [vmem:[#allocation8 + $0x98] sm:$0xf] }
  0x67   :  { %v6551_v16 = vor.u32 %v8936_v5, %v6548_v7  ;;  %v6500_v33 = vld [vmem:[#allocation8 + $0x3d8] sm:$0xf0]  ;;  %v8826_v50 = vld [vmem:[#allocation8 + $0xac] sm:$0xf0]  ;;  %v6860_v52 = vld [vmem:[#allocation8 + $0x6a8] sm:$0xf0] }
  0x68   :  { %1730 = vmatpush.bf16.msrb.mxu3 %v6667_v15  ;;  %v6695_v15 = vor.u32 %v8972_v2, %v6692_v3  ;;  %v6884_v40 = vld [vmem:[#allocation8 + $0x6d8] sm:$0xf0]  ;;  %v8912_v55 = vld [vmem:[#allocation8 + $0x364] sm:$0xf]  ;;  %v6578_v60 = vld [vmem:[#allocation8 + $0x458] sm:$0xf] }
  0x69   :  { %1769 = vmatpush.bf16.msrb.mxu2 %v6287_v18  ;;  %1792 = vmatpush.bf16.msrb.mxu0 %v6743_v42  ;;  %v6668_v18 = vld [vmem:[#allocation8 + $0x528] sm:$0xf0]  ;;  %v6887_v48 = vor.u32 %v9020_v39, %v6884_v40  ;;  %v8948_v56 = vld [vmem:[#allocation8 + $0x484] sm:$0xf]  ;;  %v6596_v57 = vld [vmem:[#allocation8 + $0x498] sm:$0xf0] }
  0x6a   :  { %1756 = vmatpush.bf16.msrb.mxu1 %v6095_v21  ;;  %v6524_v21 = vld [vmem:[#allocation8 + $0x408] sm:$0xf0]  ;;  %v6671_v27 = vor.u32 %v8966_v17, %v6668_v18  ;;  %v8946_v62 = vld [vmem:[#allocation8 + $0x46c] sm:$0xf0]  ;;  %v9008_v2 = vld [vmem:[#allocation8 + $0x664] sm:$0xf] }
  0x6b   :  { %v6527_v28 = vor.u32 %v8930_v20, %v6524_v21  ;;  %v6836_v3 = vld [vmem:[#allocation8 + $0x678] sm:$0xf0]  ;;  %v8906_v7 = vld [vmem:[#allocation8 + $0x334] sm:$0xf]  ;;  %v6428_v11 = vld [vmem:[#allocation8 + $0x348] sm:$0xf0] }
  0x6c   :  { %1731 = vmatpush.bf16.msrb.mxu3 %v6643_v29  ;;  %v8960_v29 = vld [vmem:[#allocation8 + $0x4e4] sm:$0xf]  ;;  %v6554_v12 = vld [vmem:[#allocation8 + $0x428] sm:$0xf]  ;;  %v8940_v13 = vld [vmem:[#allocation8 + $0x43c] sm:$0xf0]  ;;  %v6839_v14 = vor.u32 %v9008_v2, %v6836_v3 }
  0x6d   :  { %1770 = vmatpush.bf16.msrb.mxu2 %v6263_v32  ;;  %1793 = vmatpush.bf16.msrb.mxu0 %v6719_v58  ;;  %v8924_v32 = vld [vmem:[#allocation8 + $0x3c4] sm:$0xf]  ;;  %v6647_v41 = vor.u32 %v8960_v29, %v6644_v30  ;;  %v6099_v58 = vor.u32 %v8826_v50, %v6098_v49  ;;  %v9002_v17 = vld [vmem:[#allocation8 + $0x634] sm:$0xf]  ;;  %v6812_v18 = vld [vmem:[#allocation8 + $0x648] sm:$0xf0]  ;;  %v6555_v23 = vor.u32 %v8940_v13, %v6554_v12 }
  0x6e   :  { %1757 = vmatpush.bf16.msrb.mxu1 %v6071_v37  ;;  %v6122_v37 = vld [vmem:[#allocation8 + $0xc8] sm:$0xf]  ;;  %v6503_v42 = vor.u32 %v8924_v32, %v6500_v33  ;;  %v8900_v20 = vld [vmem:[#allocation8 + $0x304] sm:$0xf]  ;;  %v6404_v21 = vld [vmem:[#allocation8 + $0x318] sm:$0xf0] }
  0x6f   :  { %v6123_v45 = vor.u32 %v8832_v38, %v6122_v37  ;;  %v8898_v25 = vld [vmem:[#allocation8 + $0x2ec] sm:$0xf0]  ;;  %v6530_v26 = vld [vmem:[#allocation8 + $0x3f8] sm:$0xf]  ;;  %v6026_v29 = vld [vmem:[#allocation8 + $0x8] sm:$0xf]  ;;  %v6407_v37 = vor.u32 %v8900_v20, %v6404_v21 }
  0x70   :  { %1732 = vmatpush.bf16.msrb.mxu3 %v6619_v43  ;;  %v8954_v43 = vld [vmem:[#allocation8 + $0x4b4] sm:$0xf]  ;;  %v8808_v30 = vld [vmem:[#allocation8 + $0x1c] sm:$0xf0]  ;;  %v9042_v32 = vld [vmem:[#allocation8 + $0x76c] sm:$0xf0] }
  0x71   :  { %1771 = vmatpush.bf16.msrb.mxu2 %v6239_v47  ;;  %1794 = vmatpush.bf16.msrb.mxu0 %v6695_v15  ;;  %v6476_v47 = vld [vmem:[#allocation8 + $0x3a8] sm:$0xf0]  ;;  %v6623_v53 = vor.u32 %v8954_v43, %v6620_v44  ;;  %v6050_v15 = vld [vmem:[#allocation8 + $0x38] sm:$0xf]  ;;  %v8996_v33 = vld [vmem:[#allocation8 + $0x604] sm:$0xf] }
  0x72   :  { %1758 = vmatpush.bf16.msrb.mxu1 %v6047_v51  ;;  %v9014_v51 = vld [vmem:[#allocation8 + $0x694] sm:$0xf]  ;;  %v6479_v54 = vor.u32 %v8918_v46, %v6476_v47  ;;  %v6770_v38 = vld [vmem:[#allocation8 + $0x5d8] sm:$0xf]  ;;  %v8994_v39 = vld [vmem:[#allocation8 + $0x5ec] sm:$0xf0] }
  0x73   :  { %v6863_v63 = vor.u32 %v9014_v51, %v6860_v52  ;;  %v6506_v43 = vld [vmem:[#allocation8 + $0x3c8] sm:$0xf]  ;;  %v8928_v44 = vld [vmem:[#allocation8 + $0x3dc] sm:$0xf0]  ;;  %v6771_v49 = vor.u32 %v8994_v39, %v6770_v38  ;;  %v8982_v2 = vld [vmem:[#allocation8 + $0x58c] sm:$0xf0] }
  0x74   :  { %1733 = vmatpush.bf16.msrb.mxu3 %v6595_v59  ;;  %v6452_v59 = vld [vmem:[#allocation8 + $0x378] sm:$0xf0]  ;;  %v6362_v46 = vld [vmem:[#allocation8 + $0x2a8] sm:$0xf]  ;;  %v8892_v47 = vld [vmem:[#allocation8 + $0x2bc] sm:$0xf0] }
  0x75   :  { %1772 = vmatpush.bf16.msrb.mxu2 %v6215_v1  ;;  %1795 = vmatpush.bf16.msrb.mxu0 %v6671_v27  ;;  %v8820_v1 = vld [vmem:[#allocation8 + $0x7c] sm:$0xf0]  ;;  %v6455_v5 = vor.u32 %v8912_v55, %v6452_v59  ;;  %v8934_v27 = vld [vmem:[#allocation8 + $0x40c] sm:$0xf0]  ;;  %v6938_v50 = vld [vmem:[#allocation8 + $0x728] sm:$0xf]  ;;  %v6363_v55 = vor.u32 %v8892_v47, %v6362_v46 }
  0x76   :  { %1759 = vmatpush.bf16.msrb.mxu1 %v6023_v8  ;;  %v6579_v8 = vor.u32 %v8946_v62, %v6578_v60  ;;  %v6531_v40 = vor.u32 %v8934_v27, %v6530_v26  ;;  %v9036_v51 = vld [vmem:[#allocation8 + $0x73c] sm:$0xf0]  ;;  %v6746_v52 = vld [vmem:[#allocation8 + $0x5a8] sm:$0xf]  ;;  %v6338_v59 = vld [vmem:[#allocation8 + $0x278] sm:$0xf] }
  0x77   :  { %1734 = vmatmul.bf16.vlgmr.msrb.gmra.mxu3 %v10060_v9  ;;  %v8886_v60 = vld [vmem:[#allocation8 + $0x28c] sm:$0xf0]  ;;  %v6890_v13 = vld [vmem:[#allocation8 + $0x6c8] sm:$0xf]  ;;  %v6674_v27 = vld [vmem:[#allocation8 + $0x518] sm:$0xf] }
  0x78   :  { %1778 = vmatpush.bf16.msra.mxu3 %v6575_v0  ;;  %1773 = vmatmul.bf16.vlgmr.msrb.gmra.mxu2 %v10054_v6  ;;  %v6074_v0 = vld [vmem:[#allocation8 + $0x68] sm:$0xf]  ;;  %v8910_v20 = vld [vmem:[#allocation8 + $0x34c] sm:$0xf0]  ;;  %v8895_v38 = vld [vmem:[#allocation8 + $0x2dc] sm:$0xf] }
  0x79   :  { %1817 = vmatpush.bf16.msra.mxu2 %v6195_v4  ;;  %1760 = vmatmul.bf16.vlgmr.msrb.gmra.mxu1 %v10048_v36  ;;  %v6599_v4 = vor.u32 %v8948_v56, %v6596_v57  ;;  %v6482_v56 = vld [vmem:[#allocation8 + $0x398] sm:$0xf]  ;;  %v8922_v57 = vld [vmem:[#allocation8 + $0x3ac] sm:$0xf0]  ;;  %v6388_v39 = vld [vmem:[#allocation8 + $0x2f0] sm:$0xf0] }
  0x7a   :  { %1804 = vmatpush.bf16.msra.mxu1 %v6959_v10  ;;  %1796 = vmatpush.bf16.msrb.mxu0 %v6647_v41  ;;  %v6075_v10 = vor.u32 %v8820_v1, %v6074_v0  ;;  %v9030_v0 = vld [vmem:[#allocation8 + $0x70c] sm:$0xf0]  ;;  %v6722_v1 = vld [vmem:[#allocation8 + $0x578] sm:$0xf]  ;;  %v6483_v3 = vor.u32 %v8922_v57, %v6482_v56  ;;  %s5967_s4 = sshll.u32 %s9930_s7, 4  ;;  %s9931_s27 = smov [#allocation26]   ;;  %s5968_s4 = int_to_ptr.vmem [resolvable:$true] %s5967_s4 }
  0x7b   :  { %v6723_v12 = vor.u32 %v8982_v2, %v6722_v1  ;;  %v9018_v26 = vld [vmem:[#allocation8 + $0x6ac] sm:$0xf0]  ;;  %v6242_v47 = vld [vmem:[#allocation8 + $0x1b8] sm:$0xf]  ;;  %v6196_v1 = vld [vmem:[#allocation8 + $0x170] sm:$0xf0] }
  0x7c   :  { %1779 = vmatpush.bf16.msra.mxu3 %v6551_v16  ;;  %v8814_v16 = vld [vmem:[#allocation8 + $0x4c] sm:$0xf0]  ;;  %v6626_v56 = vld [vmem:[#allocation8 + $0x4b8] sm:$0xf]  ;;  %v8883_v2 = vld [vmem:[#allocation8 + $0x27c] sm:$0xf] }
  0x7d   :  { %1818 = vmatpush.bf16.msra.mxu2 %v6171_v19  ;;  %v6431_v19 = vor.u32 %v8906_v7, %v6428_v11  ;;  %v6051_v24 = vor.u32 %v8814_v16, %v6050_v15  ;;  %v8916_v7 = vld [vmem:[#allocation8 + $0x37c] sm:$0xf0]  ;;  %v6698_v15 = vld [vmem:[#allocation8 + $0x548] sm:$0xf]  ;;  %v8958_v57 = vld [vmem:[#allocation8 + $0x4cc] sm:$0xf0] }
  0x7e   :  { %1805 = vmatpush.bf16.msra.mxu1 %v6935_v22  ;;  %1797 = vmatpush.bf16.msrb.mxu0 %v6623_v53  ;;  %v6386_v22 = vld [vmem:[#allocation8 + $0x2d8] sm:$0xf]  ;;  %v8988_v53 = vld [vmem:[#allocation8 + $0x5bc] sm:$0xf0]  ;;  %s5989_s28 = sshll.u32 %s9931_s27, 4  ;;  %s5991_s6 = sshll.u32 %s10454_s15, 4  ;;  %s5990_s28 = int_to_ptr.vmem [resolvable:$true] %s5989_s28  ;;  %s5992_s6 = int_to_ptr.hbm [resolvable:$true] %s5991_s6 }
  0x7f   :  { %v6387_v41 = vor.u32 %v8898_v25, %v6386_v22  ;;  %v6747_v62 = vor.u32 %v8988_v53, %v6746_v52  ;;  %v8880_v11 = vld [vmem:[#allocation8 + $0x25c] sm:$0xf0]  ;;  %v6290_v22 = vld [vmem:[#allocation8 + $0x218] sm:$0xf]  ;;  %v6364_v52 = vld [vmem:[#allocation8 + $0x2c0] sm:$0xf0] }
  0x80   :  { %1780 = vmatpush.bf16.msra.mxu3 %v6527_v28  ;;  %v6815_v28 = vor.u32 %v9002_v17, %v6812_v18  ;;  %v8976_v16 = vld [vmem:[#allocation8 + $0x55c] sm:$0xf0]  ;;  %v6866_v25 = vld [vmem:[#allocation8 + $0x698] sm:$0xf] }
  0x81   :  { %1819 = vmatpush.bf16.msra.mxu2 %v6147_v31  ;;  %v6962_v31 = vld [vmem:[#allocation8 + $0x758] sm:$0xf] }
  0x82   :  { %1806 = vmatpush.bf16.msra.mxu1 %v6911_v34  ;;  %1798 = vmatpush.bf16.msrb.mxu0 %v6599_v4  ;;  %v6788_v34 = vld [vmem:[#allocation8 + $0x618] sm:$0xf0]  ;;  %v6339_v4 = vor.u32 %v8886_v60, %v6338_v59  ;;  %v6218_v59 = vld [vmem:[#allocation8 + $0x188] sm:$0xf]  ;;  %v8856_v60 = vld [vmem:[#allocation8 + $0x19c] sm:$0xf0] }
  0x84   :  { %1781 = vmatpush.bf16.msra.mxu3 %v6503_v42  ;;  %v6027_v42 = vor.u32 %v8808_v30, %v6026_v29 }
  0x85   :  { %1820 = vmatpush.bf16.msra.mxu2 %v6123_v45  ;;  %1799 = vmatmul.bf16.vlgmr.msrb.gmra.mxu0 %v10060_v9  ;;  %v6963_v45 = vor.u32 %v9042_v32, %v6962_v31  ;;  %v6266_v31 = vld [vmem:[#allocation8 + $0x1e8] sm:$0xf] }
  0x86   :  { %1807 = vmatpush.bf16.msra.mxu1 %v6887_v48  ;;  %1843 = vmatpush.bf16.msra.mxu0 %v6579_v8  ;;  %v6791_v48 = vor.u32 %v8996_v33, %v6788_v34  ;;  %v6410_v32 = vld [vmem:[#allocation8 + $0x308] sm:$0xf]  ;;  %v8904_v33 = vld [vmem:[#allocation8 + $0x31c] sm:$0xf0]  ;;  %v6867_v34 = vor.u32 %v9018_v26, %v6866_v25  ;;  %v8985_v26 = vld [vmem:[#allocation8 + $0x5ac] sm:$0xf] }
  0x88   :  { %1782 = vmatpush.bf16.msra.mxu3 %v6479_v54  ;;  %v6507_v54 = vor.u32 %v8928_v44, %v6506_v43  ;;  %v6650_v43 = vld [vmem:[#allocation8 + $0x4e8] sm:$0xf]  ;;  %v8964_v44 = vld [vmem:[#allocation8 + $0x4fc] sm:$0xf0] }
  0x89   :  { %1821 = vmatpush.bf16.msra.mxu2 %v6099_v58  ;;  %v6939_v58 = vor.u32 %v9036_v51, %v6938_v50  ;;  %v8862_v50 = vld [vmem:[#allocation8 + $0x1cc] sm:$0xf0]  ;;  %v8889_v51 = vld [vmem:[#allocation8 + $0x2ac] sm:$0xf]  ;;  %v6651_v53 = vor.u32 %v8964_v44, %v6650_v43  ;;  %v6532_v43 = vld [vmem:[#allocation8 + $0x410] sm:$0xf0] }
  0x8a   :  { %1808 = vmatpush.bf16.msra.mxu1 %v6863_v63  ;;  %1844 = vmatpush.bf16.msra.mxu0 %v6555_v23  ;;  %v6914_v63 = vld [vmem:[#allocation8 + $0x6f8] sm:$0xf]  ;;  %v8874_v23 = vld [vmem:[#allocation8 + $0x22c] sm:$0xf0] }
  0x8b   :  { %v6915_v8 = vor.u32 %v9030_v0, %v6914_v63  ;;  %v6291_v30 = vor.u32 %v8874_v23, %v6290_v22  ;;  %v6367_v63 = vor.u32 %v8889_v51, %v6364_v52  ;;  %v8841_v22 = vld [vmem:[#allocation8 + $0x12c] sm:$0xf]  ;;  %v6172_v23 = vld [vmem:[#allocation8 + $0x140] sm:$0xf0] }
  0x8c   :  { %1783 = vmatpush.bf16.msra.mxu3 %v6455_v5  ;;  %v6458_v5 = vld [vmem:[#allocation8 + $0x368] sm:$0xf]  ;;  %v8973_v52 = vld [vmem:[#allocation8 + $0x54c] sm:$0xf] }
  0x8d   :  { %1822 = vmatpush.bf16.msra.mxu2 %v6075_v10  ;;  %v6314_v10 = vld [vmem:[#allocation8 + $0x248] sm:$0xf]  ;;  %v6459_v17 = vor.u32 %v8916_v7, %v6458_v5  ;;  %v9000_v7 = vld [vmem:[#allocation8 + $0x61c] sm:$0xf0] }
  0x8e   :  { %1809 = vmatpush.bf16.msra.mxu1 %v6839_v14  ;;  %1845 = vmatpush.bf16.msra.mxu0 %v6531_v40  ;;  %v9024_v14 = vld [vmem:[#allocation8 + $0x6dc] sm:$0xf0]  ;;  %v6315_v18 = vor.u32 %v8880_v11, %v6314_v10  ;;  %v6794_v5 = vld [vmem:[#allocation8 + $0x608] sm:$0xf]  ;;  %v6772_v10 = vld [vmem:[#allocation8 + $0x5f0] sm:$0xf0] }
  0x8f   :  { %v6891_v21 = vor.u32 %v9024_v14, %v6890_v13  ;;  %v6602_v11 = vld [vmem:[#allocation8 + $0x488] sm:$0xf]  ;;  %v6219_v13 = vor.u32 %v8856_v60, %v6218_v59  ;;  %v8943_v14 = vld [vmem:[#allocation8 + $0x45c] sm:$0xf]  ;;  %v6244_v59 = vld [vmem:[#allocation8 + $0x1d0] sm:$0xf0] }
  0x90   :  { %1784 = vmatpush.bf16.msra.mxu3 %v6431_v19  ;;  %v6434_v19 = vld [vmem:[#allocation8 + $0x338] sm:$0xf] }
  0x91   :  { %1823 = vmatpush.bf16.msra.mxu2 %v6051_v24  ;;  %v6699_v24 = vor.u32 %v8976_v16, %v6698_v15  ;;  %v6435_v29 = vor.u32 %v8910_v20, %v6434_v19  ;;  %v6580_v15 = vld [vmem:[#allocation8 + $0x470] sm:$0xf0]  ;;  %v8877_v19 = vld [vmem:[#allocation8 + $0x24c] sm:$0xf]  ;;  %v6316_v20 = vld [vmem:[#allocation8 + $0x260] sm:$0xf0] }
  0x92   :  { %1810 = vmatpush.bf16.msra.mxu1 %v6815_v28  ;;  %1846 = vmatpush.bf16.msra.mxu0 %v6507_v54  ;;  %v8970_v28 = vld [vmem:[#allocation8 + $0x52c] sm:$0xf0]  ;;  %v6818_v54 = vld [vmem:[#allocation8 + $0x638] sm:$0xf]  ;;  %v6583_v25 = vor.u32 %v8943_v14, %v6580_v15  ;;  %v6202_v14 = vld [vmem:[#allocation8 + $0x160] sm:$0xf] }
  0x93   :  { %v6675_v40 = vor.u32 %v8970_v28, %v6674_v27  ;;  %v6748_v27 = vld [vmem:[#allocation8 + $0x5c0] sm:$0xf0]  ;;  %v8937_v28 = vld [vmem:[#allocation8 + $0x42c] sm:$0xf]  ;;  %v8851_v15 = vld [vmem:[#allocation8 + $0x174] sm:$0xf0] }
  0x94   :  { %1785 = vmatpush.bf16.msra.mxu3 %v6407_v37  ;;  %v8868_v37 = vld [vmem:[#allocation8 + $0x1fc] sm:$0xf0] }
  0x95   :  { %1824 = vmatpush.bf16.msra.mxu2 %v6027_v42  ;;  %v9012_v42 = vld [vmem:[#allocation8 + $0x67c] sm:$0xf0]  ;;  %v6267_v46 = vor.u32 %v8868_v37, %v6266_v31  ;;  %v6175_v31 = vor.u32 %v8841_v22, %v6172_v23  ;;  %v8835_v37 = vld [vmem:[#allocation8 + $0xfc] sm:$0xf] }
  0x96   :  { %1811 = vmatpush.bf16.msra.mxu1 %v6791_v48  ;;  %1847 = vmatpush.bf16.msra.mxu0 %v6483_v3  ;;  %v6391_v48 = vor.u32 %v8895_v38, %v6388_v39  ;;  %v6340_v3 = vld [vmem:[#allocation8 + $0x290] sm:$0xf0]  ;;  %v8811_v23 = vld [vmem:[#allocation8 + $0x3c] sm:$0xf] }
  0x97   :  { %1786 = vmatmul.bf16.vlgmr.msra.gmra.mxu3 %v10051_v61  ;;  %v6343_v16 = vor.u32 %v8883_v2, %v6340_v3  ;;  %v6148_v38 = vld [vmem:[#allocation8 + $0x110] sm:$0xf0]  ;;  %v8919_v3 = vld [vmem:[#allocation8 + $0x39c] sm:$0xf] }
  0x98   :  { %1830 = vmatpush.bf16.msrb.mxu3 %v6387_v41  ;;  %1825 = vmatmul.bf16.vlgmr.msra.gmra.mxu2 %v10048_v36  ;;  %v6842_v41 = vld [vmem:[#allocation8 + $0x668] sm:$0xf]  ;;  %v6676_v2 = vld [vmem:[#allocation8 + $0x530] sm:$0xf0] }
  0x99   :  { %1869 = vmatpush.bf16.msrb.mxu2 %v6963_v45  ;;  %1812 = vmatmul.bf16.vlgmr.msra.gmra.mxu1 %v10057_v35  ;;  %v6411_v45 = vor.u32 %v8904_v33, %v6410_v32  ;;  %v8871_v32 = vld [vmem:[#allocation8 + $0x21c] sm:$0xf]  ;;  %v6292_v33 = vld [vmem:[#allocation8 + $0x230] sm:$0xf0] }
  0x9a   :  { %1856 = vmatpush.bf16.msrb.mxu1 %v6771_v49  ;;  %1848 = vmatpush.bf16.msra.mxu0 %v6459_v17  ;;  %v6843_v49 = vor.u32 %v9012_v42, %v6842_v41  ;;  %v6724_v41 = vld [vmem:[#allocation8 + $0x590] sm:$0xf0]  ;;  %v8931_v42 = vld [vmem:[#allocation8 + $0x3fc] sm:$0xf]  ;;  %v6295_v44 = vor.u32 %v8871_v32, %v6292_v33 }
  0x9b   :  { %v6535_v51 = vor.u32 %v8931_v42, %v6532_v43  ;;  %v8907_v32 = vld [vmem:[#allocation8 + $0x33c] sm:$0xf]  ;;  %v6436_v33 = vld [vmem:[#allocation8 + $0x350] sm:$0xf0]  ;;  %v6154_v43 = vld [vmem:[#allocation8 + $0x100] sm:$0xf] }
  0x9c   :  { %1831 = vmatpush.bf16.msrb.mxu3 %v6363_v55  ;;  %v9006_v55 = vld [vmem:[#allocation8 + $0x64c] sm:$0xf0]  ;;  %v6964_v42 = vld [vmem:[#allocation8 + $0x770] sm:$0xf0] }
  0x9d   :  { %1870 = vmatpush.bf16.msrb.mxu2 %v6939_v58  ;;  %v6243_v58 = vor.u32 %v8862_v50, %v6242_v47  ;;  %v6819_v0 = vor.u32 %v9006_v55, %v6818_v54  ;;  %v6268_v47 = vld [vmem:[#allocation8 + $0x200] sm:$0xf0]  ;;  %v8925_v54 = vld [vmem:[#allocation8 + $0x3cc] sm:$0xf] }
  0x9e   :  { %1857 = vmatpush.bf16.msrb.mxu1 %v6747_v62  ;;  %1849 = vmatpush.bf16.msra.mxu0 %v6435_v29  ;;  %v8847_v62 = vld [vmem:[#allocation8 + $0x15c] sm:$0xf]  ;;  %v6556_v29 = vld [vmem:[#allocation8 + $0x440] sm:$0xf0] }
  0x9f   :  { %v6199_v17 = vor.u32 %v8847_v62, %v6196_v1  ;;  %v6559_v39 = vor.u32 %v8937_v28, %v6556_v29  ;;  %v6124_v50 = vld [vmem:[#allocation8 + $0xe0] sm:$0xf0]  ;;  %v8823_v62 = vld [vmem:[#allocation8 + $0x9c] sm:$0xf]  ;;  %v8845_v28 = vld [vmem:[#allocation8 + $0x144] sm:$0xf0] }
  0xa0   :  { %1832 = vmatpush.bf16.msrb.mxu3 %v6339_v4  ;;  %v6627_v4 = vor.u32 %v8958_v57, %v6626_v56  ;;  %v6508_v55 = vld [vmem:[#allocation8 + $0x3e0] sm:$0xf0]  ;;  %v8967_v1 = vld [vmem:[#allocation8 + $0x51c] sm:$0xf] }
  0xa1   :  { %1871 = vmatpush.bf16.msrb.mxu2 %v6915_v8  ;;  %v8991_v8 = vld [vmem:[#allocation8 + $0x5dc] sm:$0xf] }
  0xa2   :  { %1858 = vmatpush.bf16.msrb.mxu1 %v6723_v12  ;;  %1850 = vmatpush.bf16.msra.mxu0 %v6411_v45  ;;  %v8952_v12 = vld [vmem:[#allocation8 + $0x49c] sm:$0xf0]  ;;  %v6151_v45 = vor.u32 %v8835_v37, %v6148_v38  ;;  %v8805_v37 = vld [vmem:[#allocation8 + $0xc] sm:$0xf]  ;;  %v6028_v38 = vld [vmem:[#allocation8 + $0x20] sm:$0xf0] }
  0xa4   :  { %1833 = vmatpush.bf16.msrb.mxu3 %v6315_v18  ;;  %v6795_v18 = vor.u32 %v9000_v7, %v6794_v5 }
  0xa5   :  { %1872 = vmatpush.bf16.msrb.mxu2 %v6891_v21  ;;  %1851 = vmatmul.bf16.vlgmr.msra.gmra.mxu0 %v10051_v61  ;;  %v6775_v21 = vor.u32 %v8991_v8, %v6772_v10  ;;  %v8817_v8 = vld [vmem:[#allocation8 + $0x6c] sm:$0xf] }
  0xa6   :  { %1859 = vmatpush.bf16.msrb.mxu1 %v6699_v24  ;;  %1895 = vmatpush.bf16.msrb.mxu0 %v6391_v48  ;;  %v6603_v24 = vor.u32 %v8952_v12, %v6602_v11  ;;  %v8853_v10 = vld [vmem:[#allocation8 + $0x18c] sm:$0xf]  ;;  %v6220_v11 = vld [vmem:[#allocation8 + $0x1a0] sm:$0xf0]  ;;  %v6679_v12 = vor.u32 %v8967_v1, %v6676_v2  ;;  %v6562_v2 = vld [vmem:[#allocation8 + $0x430] sm:$0xf] }
  0xa8   :  { %1834 = vmatpush.bf16.msrb.mxu3 %v6291_v30  ;;  %v6319_v30 = vor.u32 %v8877_v19, %v6316_v20  ;;  %v8913_v19 = vld [vmem:[#allocation8 + $0x36c] sm:$0xf]  ;;  %v6460_v20 = vld [vmem:[#allocation8 + $0x380] sm:$0xf0] }
  0xa9   :  { %1873 = vmatpush.bf16.msrb.mxu2 %v6867_v34  ;;  %v6751_v34 = vor.u32 %v8985_v26, %v6748_v27  ;;  %v6052_v26 = vld [vmem:[#allocation8 + $0x50] sm:$0xf0]  ;;  %v6178_v27 = vld [vmem:[#allocation8 + $0x130] sm:$0xf]  ;;  %v6463_v29 = vor.u32 %v8913_v19, %v6460_v20  ;;  %v8887_v19 = vld [vmem:[#allocation8 + $0x294] sm:$0xf0] }
  0xaa   :  { %1860 = vmatpush.bf16.msrb.mxu1 %v6675_v40  ;;  %1896 = vmatpush.bf16.msrb.mxu0 %v6367_v63  ;;  %v8979_v40 = vld [vmem:[#allocation8 + $0x57c] sm:$0xf]  ;;  %v6100_v63 = vld [vmem:[#allocation8 + $0xb0] sm:$0xf0] }
  0xab   :  { %v6727_v48 = vor.u32 %v8979_v40, %v6724_v41  ;;  %v6103_v7 = vor.u32 %v8823_v62, %v6100_v63  ;;  %v6179_v40 = vor.u32 %v8845_v28, %v6178_v27  ;;  %v9033_v62 = vld [vmem:[#allocation8 + $0x72c] sm:$0xf]  ;;  %v6940_v63 = vld [vmem:[#allocation8 + $0x740] sm:$0xf0]  ;;  %v6514_v28 = vld [vmem:[#allocation8 + $0x3d0] sm:$0xf] }
  0xac   :  { %1835 = vmatpush.bf16.msrb.mxu3 %v6267_v46  ;;  %v8865_v46 = vld [vmem:[#allocation8 + $0x1ec] sm:$0xf] }
  0xad   :  { %1874 = vmatpush.bf16.msrb.mxu2 %v6843_v49  ;;  %v8829_v49 = vld [vmem:[#allocation8 + $0xcc] sm:$0xf]  ;;  %v6271_v56 = vor.u32 %v8865_v46, %v6268_v47  ;;  %v6604_v47 = vld [vmem:[#allocation8 + $0x4a0] sm:$0xf0] }
  0xae   :  { %1861 = vmatpush.bf16.msrb.mxu1 %v6651_v53  ;;  %1897 = vmatpush.bf16.msrb.mxu0 %v6343_v16  ;;  %v6700_v53 = vld [vmem:[#allocation8 + $0x560] sm:$0xf0]  ;;  %v6127_v57 = vor.u32 %v8829_v49, %v6124_v50  ;;  %v8949_v46 = vld [vmem:[#allocation8 + $0x48c] sm:$0xf]  ;;  %v8947_v49 = vld [vmem:[#allocation8 + $0x474] sm:$0xf0] }
  0xaf   :  { %v6703_v60 = vor.u32 %v8973_v52, %v6700_v53  ;;  %v8901_v50 = vld [vmem:[#allocation8 + $0x30c] sm:$0xf]  ;;  %v6031_v52 = vor.u32 %v8805_v37, %v6028_v38  ;;  %v6394_v53 = vld [vmem:[#allocation8 + $0x2e0] sm:$0xf]  ;;  %v8815_v37 = vld [vmem:[#allocation8 + $0x54] sm:$0xf0] }
  0xb0   :  { %1836 = vmatpush.bf16.msrb.mxu3 %v6243_v58  ;;  %v8859_v58 = vld [vmem:[#allocation8 + $0x1bc] sm:$0xf] }
  0xb1   :  { %1875 = vmatpush.bf16.msrb.mxu2 %v6819_v0  ;;  %v6511_v0 = vor.u32 %v8925_v54, %v6508_v55  ;;  %v6247_v5 = vor.u32 %v8859_v58, %v6244_v59  ;;  %v8899_v54 = vld [vmem:[#allocation8 + $0x2f4] sm:$0xf0]  ;;  %v6130_v58 = vld [vmem:[#allocation8 + $0xd0] sm:$0xf]  ;;  %v8833_v59 = vld [vmem:[#allocation8 + $0xe4] sm:$0xf0] }
  0xb2   :  { %1862 = vmatpush.bf16.msrb.mxu1 %v6627_v4  ;;  %1898 = vmatpush.bf16.msrb.mxu0 %v6319_v30  ;;  %v6484_v4 = vld [vmem:[#allocation8 + $0x3b0] sm:$0xf0]  ;;  %v8955_v30 = vld [vmem:[#allocation8 + $0x4bc] sm:$0xf]  ;;  %v6395_v1 = vor.u32 %v8899_v54, %v6394_v53  ;;  %v6844_v53 = vld [vmem:[#allocation8 + $0x680] sm:$0xf0] }
  0xb3   :  { %v6487_v16 = vor.u32 %v8919_v3, %v6484_v4  ;;  %v8941_v3 = vld [vmem:[#allocation8 + $0x444] sm:$0xf0]  ;;  %v6370_v4 = vld [vmem:[#allocation8 + $0x2b0] sm:$0xf]  ;;  %v6970_v54 = vld [vmem:[#allocation8 + $0x760] sm:$0xf] }
  0xb4   :  { %1837 = vmatpush.bf16.msrb.mxu3 %v6219_v13  ;;  %v6076_v13 = vld [vmem:[#allocation8 + $0x80] sm:$0xf0] }
  0xb5   :  { %1876 = vmatpush.bf16.msrb.mxu2 %v6795_v18  ;;  %v6652_v18 = vld [vmem:[#allocation8 + $0x500] sm:$0xf0]  ;;  %v6079_v22 = vor.u32 %v8817_v8, %v6076_v13  ;;  %v6943_v8 = vor.u32 %v9033_v62, %v6940_v63  ;;  %v9027_v13 = vld [vmem:[#allocation8 + $0x6fc] sm:$0xf] }
  0xb6   :  { %1863 = vmatpush.bf16.msrb.mxu1 %v6603_v24  ;;  %1899 = vmatpush.bf16.msrb.mxu0 %v6295_v44  ;;  %v6203_v24 = vor.u32 %v8851_v15, %v6202_v14  ;;  %v8839_v44 = vld [vmem:[#allocation8 + $0x114] sm:$0xf0]  ;;  %v6916_v14 = vld [vmem:[#allocation8 + $0x710] sm:$0xf0] }
  0xb7   :  { %1838 = vmatmul.bf16.vlgmr.msrb.gmra.mxu3 %v10054_v6  ;;  %v6155_v55 = vor.u32 %v8839_v44, %v6154_v43  ;;  %v8923_v43 = vld [vmem:[#allocation8 + $0x3b4] sm:$0xf0]  ;;  %v9009_v44 = vld [vmem:[#allocation8 + $0x66c] sm:$0xf] }
  0xb8   :  { %1882 = vmatpush.bf16.msra.mxu3 %v6199_v17  ;;  %1877 = vmatmul.bf16.vlgmr.msrb.gmra.mxu2 %v10057_v35  ;;  %v8961_v17 = vld [vmem:[#allocation8 + $0x4ec] sm:$0xf] }
  0xb9   :  { %1921 = vmatpush.bf16.msra.mxu2 %v6775_v21  ;;  %1864 = vmatmul.bf16.vlgmr.msrb.gmra.mxu1 %v10060_v9  ;;  %v6223_v21 = vor.u32 %v8853_v10, %v6220_v11  ;;  %v6106_v10 = vld [vmem:[#allocation8 + $0xa0] sm:$0xf]  ;;  %v8827_v11 = vld [vmem:[#allocation8 + $0xb4] sm:$0xf0] }
  0xba   :  { %1908 = vmatpush.bf16.msra.mxu1 %v6583_v25  ;;  %1900 = vmatpush.bf16.msrb.mxu0 %v6271_v56  ;;  %v6655_v25 = vor.u32 %v8961_v17, %v6652_v18  ;;  %v8935_v17 = vld [vmem:[#allocation8 + $0x414] sm:$0xf0]  ;;  %v6346_v18 = vld [vmem:[#allocation8 + $0x280] sm:$0xf]  ;;  %v6107_v20 = vor.u32 %v8827_v11, %v6106_v10 }
  0xbb   :  { %v6347_v27 = vor.u32 %v8887_v19, %v6346_v18  ;;  %v6442_v10 = vld [vmem:[#allocation8 + $0x340] sm:$0xf]  ;;  %v8911_v11 = vld [vmem:[#allocation8 + $0x354] sm:$0xf0]  ;;  %v6796_v18 = vld [vmem:[#allocation8 + $0x620] sm:$0xf0] }
  0xbc   :  { %1883 = vmatpush.bf16.msra.mxu3 %v6175_v31  ;;  %v6628_v31 = vld [vmem:[#allocation8 + $0x4d0] sm:$0xf0]  ;;  %v6778_v19 = vld [vmem:[#allocation8 + $0x5e0] sm:$0xf] }
  0xbd   :  { %1922 = vmatpush.bf16.msra.mxu2 %v6751_v34  ;;  %v6055_v34 = vor.u32 %v8811_v23, %v6052_v26  ;;  %v6631_v41 = vor.u32 %v8955_v30, %v6628_v31  ;;  %v8821_v23 = vld [vmem:[#allocation8 + $0x84] sm:$0xf0]  ;;  %v6892_v26 = vld [vmem:[#allocation8 + $0x6e0] sm:$0xf0]  ;;  %v6322_v30 = vld [vmem:[#allocation8 + $0x250] sm:$0xf] }
  0xbe   :  { %1909 = vmatpush.bf16.msra.mxu1 %v6559_v39  ;;  %1901 = vmatpush.bf16.msrb.mxu0 %v6247_v5  ;;  %v9039_v39 = vld [vmem:[#allocation8 + $0x75c] sm:$0xf]  ;;  %v8893_v5 = vld [vmem:[#allocation8 + $0x2c4] sm:$0xf0] }
  0xbf   :  { %v6967_v56 = vor.u32 %v9039_v39, %v6964_v42  ;;  %v6371_v15 = vor.u32 %v8893_v5, %v6370_v4  ;;  %v8881_v31 = vld [vmem:[#allocation8 + $0x264] sm:$0xf0]  ;;  %v9015_v39 = vld [vmem:[#allocation8 + $0x69c] sm:$0xf]  ;;  %v6490_v42 = vld [vmem:[#allocation8 + $0x3a0] sm:$0xf] }
  0xc0   :  { %1884 = vmatpush.bf16.msra.mxu3 %v6151_v45  ;;  %v6439_v45 = vor.u32 %v8907_v32, %v6436_v33  ;;  %v6820_v4 = vld [vmem:[#allocation8 + $0x650] sm:$0xf0]  ;;  %v6946_v5 = vld [vmem:[#allocation8 + $0x730] sm:$0xf] }
  0xc1   :  { %1923 = vmatpush.bf16.msra.mxu2 %v6727_v48  ;;  %v6586_v48 = vld [vmem:[#allocation8 + $0x460] sm:$0xf] }
  0xc2   :  { %1910 = vmatpush.bf16.msra.mxu1 %v6535_v51  ;;  %1902 = vmatpush.bf16.msrb.mxu0 %v6223_v21  ;;  %v6412_v51 = vld [vmem:[#allocation8 + $0x320] sm:$0xf0]  ;;  %v6919_v21 = vor.u32 %v9027_v13, %v6916_v14  ;;  %v6250_v13 = vld [vmem:[#allocation8 + $0x1c0] sm:$0xf]  ;;  %v8863_v14 = vld [vmem:[#allocation8 + $0x1d4] sm:$0xf0] }
  0xc4   :  { %1885 = vmatpush.bf16.msra.mxu3 %v6127_v57  ;;  %v6607_v57 = vor.u32 %v8949_v46, %v6604_v47  ;;  %v8875_v46 = vld [vmem:[#allocation8 + $0x234] sm:$0xf0] }
  0xc5   :  { %1924 = vmatpush.bf16.msra.mxu2 %v6703_v60  ;;  %1903 = vmatmul.bf16.vlgmr.msrb.gmra.mxu0 %v10054_v6  ;;  %v6587_v60 = vor.u32 %v8947_v49, %v6586_v48  ;;  %v6034_v49 = vld [vmem:[#allocation8 + $0x10] sm:$0xf] }
  0xc6   :  { %1911 = vmatpush.bf16.msra.mxu1 %v6511_v0  ;;  %1947 = vmatpush.bf16.msra.mxu0 %v6203_v24  ;;  %v6415_v0 = vor.u32 %v8901_v50, %v6412_v51  ;;  %v8809_v50 = vld [vmem:[#allocation8 + $0x24] sm:$0xf0]  ;;  %v10077_v51 = vld [vmem:[#allocation9] sm:$0x3f] }
  0xc7   :  { %v6035_v62 = vor.u32 %v8809_v50, %v6034_v49  ;;  %v475_v63 = vperm.slane %v10077_v51, 0 }
  0xc8   :  { %1886 = vmatpush.bf16.msra.mxu3 %v6103_v7  ;;  %v6131_v7 = vor.u32 %v8833_v59, %v6130_v58  ;;  %v8917_v58 = vld [vmem:[#allocation8 + $0x384] sm:$0xf0]  ;;  %v6274_v59 = vld [vmem:[#allocation8 + $0x1f0] sm:$0xf] }
  0xc9   :  { %1925 = vmatpush.bf16.msra.mxu2 %v6679_v12  ;;  %v6563_v12 = vor.u32 %v8941_v3, %v6562_v2 }
  0xca   :  { %1912 = vmatpush.bf16.msra.mxu1 %v6487_v16  ;;  %1948 = vmatpush.bf16.msra.mxu0 %v6179_v40  ;;  %v6538_v16 = vld [vmem:[#allocation8 + $0x400] sm:$0xf]  ;;  %v6868_v40 = vld [vmem:[#allocation8 + $0x6b0] sm:$0xf0] }
  0xcb   :  { %v6539_v24 = vor.u32 %v8935_v17, %v6538_v16  ;;  %v6871_v48 = vor.u32 %v9015_v39, %v6868_v40  ;;  %v8997_v17 = vld [vmem:[#allocation8 + $0x60c] sm:$0xf]  ;;  %v6204_v39 = vld [vmem:[#allocation8 + $0x178] sm:$0xf0] }
  0xcc   :  { %1887 = vmatpush.bf16.msra.mxu3 %v6079_v22  ;;  %v6082_v22 = vld [vmem:[#allocation8 + $0x70] sm:$0xf] }
  0xcd   :  { %1926 = vmatpush.bf16.msra.mxu2 %v6655_v25  ;;  %v9021_v25 = vld [vmem:[#allocation8 + $0x6cc] sm:$0xf]  ;;  %v6083_v32 = vor.u32 %v8821_v23, %v6082_v22  ;;  %v6443_v22 = vor.u32 %v8911_v11, %v6442_v10  ;;  %v8995_v23 = vld [vmem:[#allocation8 + $0x5f4] sm:$0xf0]  ;;  %v6156_v10 = vld [vmem:[#allocation8 + $0x118] sm:$0xf0] }
  0xce   :  { %1913 = vmatpush.bf16.msra.mxu1 %v6463_v29  ;;  %1949 = vmatpush.bf16.msra.mxu0 %v6155_v55  ;;  %v8929_v29 = vld [vmem:[#allocation8 + $0x3e4] sm:$0xf0]  ;;  %v6895_v33 = vor.u32 %v9021_v25, %v6892_v26  ;;  %v9043_v55 = vld [vmem:[#allocation8 + $0x774] sm:$0xf0] }
  0xcf   :  { %v6515_v38 = vor.u32 %v8929_v29, %v6514_v28  ;;  %v6971_v2 = vor.u32 %v9043_v55, %v6970_v54  ;;  %v9031_v25 = vld [vmem:[#allocation8 + $0x714] sm:$0xf0]  ;;  %v6418_v28 = vld [vmem:[#allocation8 + $0x310] sm:$0xf]  ;;  %v8905_v29 = vld [vmem:[#allocation8 + $0x324] sm:$0xf0] }
  0xd0   :  { %1888 = vmatpush.bf16.msra.mxu3 %v6055_v34  ;;  %v6058_v34 = vld [vmem:[#allocation8 + $0x40] sm:$0xf]  ;;  %v6372_v54 = vld [vmem:[#allocation8 + $0x2c8] sm:$0xf0]  ;;  %v8842_v55 = vld [vmem:[#allocation8 + $0x134] sm:$0xf] }
  0xd1   :  { %1927 = vmatpush.bf16.msra.mxu2 %v6631_v41  ;;  %v6323_v41 = vor.u32 %v8881_v31, %v6322_v30  ;;  %v6059_v47 = vor.u32 %v8815_v37, %v6058_v34  ;;  %v8896_v30 = vld [vmem:[#allocation8 + $0x2e4] sm:$0xf]  ;;  %v6396_v31 = vld [vmem:[#allocation8 + $0x2f8] sm:$0xf0]  ;;  %v6799_v37 = vor.u32 %v8997_v17, %v6796_v18  ;;  %v8977_v17 = vld [vmem:[#allocation8 + $0x564] sm:$0xf0] }
  0xd2   :  { %1914 = vmatpush.bf16.msra.mxu1 %v6439_v45  ;;  %1950 = vmatpush.bf16.msra.mxu0 %v6131_v7  ;;  %v6298_v45 = vld [vmem:[#allocation8 + $0x220] sm:$0xf]  ;;  %v9037_v7 = vld [vmem:[#allocation8 + $0x744] sm:$0xf0] }
  0xd4   :  { %1889 = vmatpush.bf16.msra.mxu3 %v6031_v52  ;;  %v6491_v52 = vor.u32 %v8923_v43, %v6490_v42  ;;  %v6779_v42 = vor.u32 %v8995_v23, %v6778_v19  ;;  %v6419_v43 = vor.u32 %v8905_v29, %v6418_v28  ;;  %v8878_v19 = vld [vmem:[#allocation8 + $0x254] sm:$0xf]  ;;  %v6682_v28 = vld [vmem:[#allocation8 + $0x520] sm:$0xf]  ;;  %v8971_v29 = vld [vmem:[#allocation8 + $0x534] sm:$0xf0] }
  0xd5   :  { %1928 = vmatpush.bf16.msra.mxu2 %v6607_v57  ;;  %v6466_v57 = vld [vmem:[#allocation8 + $0x370] sm:$0xf] }
  0xd6   :  { %1915 = vmatpush.bf16.msra.mxu1 %v6415_v0  ;;  %1951 = vmatpush.bf16.msra.mxu0 %v6107_v20  ;;  %v6847_v0 = vor.u32 %v9009_v44, %v6844_v53  ;;  %v6467_v3 = vor.u32 %v8917_v58, %v6466_v57  ;;  %v6947_v20 = vor.u32 %v9037_v7, %v6946_v5  ;;  %v6898_v44 = vld [vmem:[#allocation8 + $0x6d0] sm:$0xf]  ;;  %v8890_v53 = vld [vmem:[#allocation8 + $0x2b4] sm:$0xf]  ;;  %v6348_v5 = vld [vmem:[#allocation8 + $0x298] sm:$0xf0] }
  0xd7   :  { %1890 = vmatmul.bf16.vlgmr.msra.gmra.mxu3 %v10048_v36 }
  0xd8   :  { %1934 = vmatpush.bf16.msrb.mxu3 %v6967_v56  ;;  %1929 = vmatmul.bf16.vlgmr.msra.gmra.mxu2 %v10060_v9  ;;  %v6299_v56 = vor.u32 %v8875_v46, %v6298_v45  ;;  %v9025_v45 = vld [vmem:[#allocation8 + $0x6e4] sm:$0xf0]  ;;  %v6399_v46 = vor.u32 %v8896_v30, %v6396_v31 }
  0xd9   :  { %1973 = vmatpush.bf16.msrb.mxu2 %v6587_v60  ;;  %1916 = vmatmul.bf16.vlgmr.msra.gmra.mxu1 %v10051_v61  ;;  %v8869_v60 = vld [vmem:[#allocation8 + $0x204] sm:$0xf0]  ;;  %v6899_v57 = vor.u32 %v9025_v45, %v6898_v44 }
  0xda   :  { %1960 = vmatpush.bf16.msrb.mxu1 %v6395_v1  ;;  %1952 = vmatpush.bf16.msra.mxu0 %v6083_v32  ;;  %v9003_v1 = vld [vmem:[#allocation8 + $0x63c] sm:$0xf]  ;;  %v6226_v32 = vld [vmem:[#allocation8 + $0x190] sm:$0xf]  ;;  %v9001_v44 = vld [vmem:[#allocation8 + $0x624] sm:$0xf0] }
  0xdb   :  { %v6823_v16 = vor.u32 %v9003_v1, %v6820_v4  ;;  %v1722_v34 = vpop.f32.mrf.mxu2  ;;  %v8983_v1 = vld [vmem:[#allocation8 + $0x594] sm:$0xf0]  ;;  %v8884_v4 = vld [vmem:[#allocation8 + $0x284] sm:$0xf] }
  0xdc   :  { %1935 = vmatpush.bf16.msrb.mxu3 %v6943_v8  ;;  %v6275_v8 = vor.u32 %v8869_v60, %v6274_v59  ;;  %v6874_v60 = vld [vmem:[#allocation8 + $0x6a0] sm:$0xf] }
  0xdd   :  { %1974 = vmatpush.bf16.msrb.mxu2 %v6563_v12  ;;  %v1696_v12 = vpop.f32.mrf.mxu3 }
  0xde   :  { %1961 = vmatpush.bf16.msrb.mxu1 %v6371_v15  ;;  %1953 = vmatpush.bf16.msra.mxu0 %v6059_v47  ;;  %v1697_v15 = vadd.f32 %v1696_v12, %v475_v63  ;;  %v6754_v47 = vld [vmem:[#allocation8 + $0x5b0] sm:$0xf]  ;;  %v6375_v63 = vor.u32 %v8890_v53, %v6372_v54  ;;  %v6276_v53 = vld [vmem:[#allocation8 + $0x208] sm:$0xf0]  ;;  %v8818_v54 = vld [vmem:[#allocation8 + $0x74] sm:$0xf] }
  0xe0   :  { %1936 = vmatpush.bf16.msrb.mxu3 %v6919_v21  ;;  %v1709_v21 = vpop.f32.mrf.mxu1 }
  0xe1   :  { %1975 = vmatpush.bf16.msrb.mxu2 %v6539_v24  ;;  %v6922_v24 = vld [vmem:[#allocation8 + $0x700] sm:$0xf]  ;;  %v1710_v26 = vadd.f32 %v1709_v21, %v1697_v15  ;;  %v6351_v15 = vor.u32 %v8884_v4, %v6348_v5  ;;  %v8830_v21 = vld [vmem:[#allocation8 + $0xd4] sm:$0xf] }
  0xe2   :  { %1962 = vmatpush.bf16.msrb.mxu1 %v6347_v27  ;;  %1954 = vmatpush.bf16.msra.mxu0 %v6035_v62  ;;  %v6251_v27 = vor.u32 %v8863_v14, %v6250_v13  ;;  %v6923_v40 = vor.u32 %v9031_v25, %v6922_v24  ;;  %v9019_v62 = vld [vmem:[#allocation8 + $0x6b4] sm:$0xf0]  ;;  %v6850_v13 = vld [vmem:[#allocation8 + $0x670] sm:$0xf]  ;;  %v9013_v14 = vld [vmem:[#allocation8 + $0x684] sm:$0xf0] }
  0xe3   :  { %v1724_v7 = vpop.f32.mrf.mxu2  ;;  %v6875_v11 = vor.u32 %v9019_v62, %v6874_v60  ;;  %v6851_v23 = vor.u32 %v9013_v14, %v6850_v13  ;;  %v6826_v25 = vld [vmem:[#allocation8 + $0x640] sm:$0xf] }
  0xe4   :  { %1937 = vmatpush.bf16.msrb.mxu3 %v6895_v33  ;;  %v8857_v33 = vld [vmem:[#allocation8 + $0x1a4] sm:$0xf0]  ;;  %v8860_v7 = vld [vmem:[#allocation8 + $0x1c4] sm:$0xf] }
  0xe5   :  { %1976 = vmatpush.bf16.msrb.mxu2 %v6515_v38  ;;  %1955 = vmatmul.bf16.vlgmr.msra.gmra.mxu0 %v10048_v36  ;;  %v8848_v38 = vld [vmem:[#allocation8 + $0x164] sm:$0xf]  ;;  %v6227_v49 = vor.u32 %v8857_v33, %v6226_v32  ;;  %v1698_v50 = vpop.f32.mrf.mxu3  ;;  %v6300_v33 = vld [vmem:[#allocation8 + $0x238] sm:$0xf0] }
  0xe6   :  { %1963 = vmatpush.bf16.msrb.mxu1 %v6323_v41  ;;  %1999 = vmatpush.bf16.msrb.mxu0 %v6971_v2  ;;  %v10081_v41 = vadd.f32 %v1722_v34, %v1710_v26  ;;  %v10083_v2 = vpop.f32.mrf.mxu0  ;;  %v9007_v26 = vld [vmem:[#allocation8 + $0x654] sm:$0xf0]  ;;  %v8872_v32 = vld [vmem:[#allocation8 + $0x224] sm:$0xf] }
  0xe7   :  { %v8824_v34 = vld [vmem:[#allocation8 + $0xa4] sm:$0xf]  ;;  %v6303_v45 = vor.u32 %v8872_v32, %v6300_v33  ;;  %v6972_v32 = vld [vmem:[#allocation8 + $0x778] sm:$0xf0] }
  0xe8   :  { %1938 = vmatpush.bf16.msrb.mxu3 %v6871_v48  ;;  %v8989_v48 = vld [vmem:[#allocation8 + $0x5c4] sm:$0xf0]  ;;  %v1711_v58 = vpop.f32.mrf.mxu1 }
  0xe9   :  { %1977 = vmatpush.bf16.msrb.mxu2 %v6491_v52  ;;  %v6207_v52 = vor.u32 %v8848_v38, %v6204_v39  ;;  %v6755_v59 = vor.u32 %v8989_v48, %v6754_v47  ;;  %v6827_v38 = vor.u32 %v9007_v26, %v6826_v25  ;;  %v476_v39 = vperm.slane %v10077_v51, 1  ;;  %v8992_v47 = vld [vmem:[#allocation8 + $0x5e4] sm:$0xf]  ;;  %v6780_v48 = vld [vmem:[#allocation8 + $0x5f8] sm:$0xf0] }
  0xea   :  { %1964 = vmatpush.bf16.msrb.mxu1 %v6299_v56  ;;  %2000 = vmatpush.bf16.msrb.mxu0 %v6947_v20  ;;  %v6180_v56 = vld [vmem:[#allocation8 + $0x148] sm:$0xf0]  ;;  %v6783_v60 = vor.u32 %v8992_v47, %v6780_v48  ;;  %v8854_v25 = vld [vmem:[#allocation8 + $0x194] sm:$0xf]  ;;  %v7122_v48 = vld [vmem:[#allocation11 + $0x120] sm:$0xf] }
  0xeb   :  { %v6324_v20 = vld [vmem:[#allocation8 + $0x268] sm:$0xf0] }
  0xec   :  { %1939 = vmatpush.bf16.msrb.mxu3 %v6847_v0  ;;  %v6730_v0 = vld [vmem:[#allocation8 + $0x580] sm:$0xf]  ;;  %v6228_v26 = vld [vmem:[#allocation8 + $0x1a8] sm:$0xf0] }
  0xed   :  { %1978 = vmatpush.bf16.msrb.mxu2 %v6467_v3  ;;  %v6183_v3 = vor.u32 %v8842_v55, %v6180_v56  ;;  %v6731_v12 = vor.u32 %v8983_v1, %v6730_v0  ;;  %v6084_v55 = vld [vmem:[#allocation8 + $0x88] sm:$0xf0]  ;;  %v8959_v0 = vld [vmem:[#allocation8 + $0x4d4] sm:$0xf0]  ;;  %v8986_v1 = vld [vmem:[#allocation8 + $0x5b4] sm:$0xf] }
  0xee   :  { %1965 = vmatpush.bf16.msrb.mxu1 %v6275_v8  ;;  %2001 = vmatpush.bf16.msrb.mxu0 %v6923_v40  ;;  %v8836_v8 = vld [vmem:[#allocation8 + $0x104] sm:$0xf]  ;;  %v1750_v30 = vpop.f32.mrf.mxu0  ;;  %v6683_v40 = vor.u32 %v8971_v29, %v6682_v28  ;;  %v6087_v5 = vor.u32 %v8818_v54, %v6084_v55  ;;  %v8806_v28 = vld [vmem:[#allocation8 + $0x14] sm:$0xf]  ;;  %v6036_v29 = vld [vmem:[#allocation8 + $0x28] sm:$0xf0] }
  0xef   :  { %v6159_v18 = vor.u32 %v8836_v8, %v6156_v10  ;;  %v6252_v8 = vld [vmem:[#allocation8 + $0x1d8] sm:$0xf0]  ;;  %v8968_v55 = vld [vmem:[#allocation8 + $0x524] sm:$0xf] }
  0xf0   :  { %1940 = vmatpush.bf16.msrb.mxu3 %v6823_v16  ;;  %v6706_v16 = vld [vmem:[#allocation8 + $0x550] sm:$0xf] }
  0xf1   :  { %1979 = vmatpush.bf16.msrb.mxu2 %v6443_v22  ;;  %v6132_v22 = vld [vmem:[#allocation8 + $0xe8] sm:$0xf0]  ;;  %v6707_v24 = vor.u32 %v8977_v17, %v6706_v16  ;;  %v6610_v16 = vld [vmem:[#allocation8 + $0x490] sm:$0xf]  ;;  %v8953_v17 = vld [vmem:[#allocation8 + $0x4a4] sm:$0xf0] }
  0xf2   :  { %1966 = vmatpush.bf16.msrb.mxu1 %v6251_v27  ;;  %2002 = vmatpush.bf16.msrb.mxu0 %v6899_v57  ;;  %v6327_v27 = vor.u32 %v8878_v19, %v6324_v20  ;;  %v6135_v31 = vor.u32 %v8830_v21, %v6132_v22  ;;  %v6255_v19 = vor.u32 %v8860_v7, %v6252_v8  ;;  %v6588_v20 = vld [vmem:[#allocation8 + $0x478] sm:$0xf0]  ;;  %v8980_v21 = vld [vmem:[#allocation8 + $0x584] sm:$0xf]  ;;  %v8962_v7 = vld [vmem:[#allocation8 + $0x4f4] sm:$0xf] }
  0xf3   :  { %v6732_v22 = vld [vmem:[#allocation8 + $0x598] sm:$0xf0]  ;;  %v6611_v30 = vor.u32 %v8953_v17, %v6610_v16  ;;  %v6660_v8 = vld [vmem:[#allocation8 + $0x508] sm:$0xf0]  ;;  %v7074_v16 = vld [vmem:[#allocation11 + $0xc0] sm:$0xf] }
  0xf4   :  { %1941 = vmatpush.bf16.msrb.mxu3 %v6799_v37  ;;  %v6108_v37 = vld [vmem:[#allocation8 + $0xb8] sm:$0xf0]  ;;  %v6735_v33 = vor.u32 %v8980_v21, %v6732_v22 }
  0xf5   :  { %1980 = vmatpush.bf16.msrb.mxu2 %v6419_v43  ;;  %v6802_v43 = vld [vmem:[#allocation8 + $0x610] sm:$0xf]  ;;  %v6111_v50 = vor.u32 %v8824_v34, %v6108_v37  ;;  %v6231_v37 = vor.u32 %v8854_v25, %v6228_v26  ;;  %v9071_v17 = vld [vmem:[#allocation11 + $0xd4] sm:$0xf0]  ;;  %v7050_v25 = vld [vmem:[#allocation11 + $0x90] sm:$0xf] }
  0xf6   :  { %1967 = vmatpush.bf16.msrb.mxu1 %v6227_v49  ;;  %2003 = vmatpush.bf16.msrb.mxu0 %v6875_v11  ;;  %v1761_v49 = vpop.f32.mrf.mxu1  ;;  %v6803_v56 = vor.u32 %v9001_v44, %v6802_v43  ;;  %v8812_v11 = vld [vmem:[#allocation8 + $0x44] sm:$0xf]  ;;  %v8938_v43 = vld [vmem:[#allocation8 + $0x434] sm:$0xf]  ;;  %v6564_v44 = vld [vmem:[#allocation8 + $0x448] sm:$0xf0]  ;;  %v7075_v22 = vor.u32 %v9071_v17, %v7074_v16 }
  0xf7   :  { %1942 = vmatmul.bf16.vlgmr.msrb.gmra.mxu3 %v10057_v35  ;;  %v1762_v57 = vadd.f32 %v1761_v49, %v476_v39  ;;  %v8974_v39 = vld [vmem:[#allocation8 + $0x554] sm:$0xf]  ;;  %v9083_v49 = vld [vmem:[#allocation11 + $0x134] sm:$0xf0]  ;;  %v6567_v54 = vor.u32 %v8938_v43, %v6564_v44  ;;  %v9065_v26 = vld [vmem:[#allocation11 + $0xa4] sm:$0xf0] }
  0xf8   :  { %1986 = vmatpush.bf16.msra.mxu3 %v6779_v42  ;;  %1981 = vmatmul.bf16.vlgmr.msrb.gmra.mxu2 %v10051_v61  ;;  %v6658_v42 = vld [vmem:[#allocation8 + $0x4f0] sm:$0xf]  ;;  %v6636_v21 = vld [vmem:[#allocation8 + $0x4d8] sm:$0xf0]  ;;  %v7026_v43 = vld [vmem:[#allocation11 + $0x60] sm:$0xf] }
  0xf9   :  { %2025 = vmatpush.bf16.msra.mxu2 %v6399_v46  ;;  %1968 = vmatmul.bf16.vlgmr.msrb.gmra.mxu1 %v10054_v6  ;;  %v8965_v46 = vld [vmem:[#allocation8 + $0x504] sm:$0xf0]  ;;  %v9059_v44 = vld [vmem:[#allocation11 + $0x74] sm:$0xf0] }
  0xfa   :  { %2012 = vmatpush.bf16.msra.mxu1 %v6207_v52  ;;  %2004 = vmatpush.bf16.msrb.mxu0 %v6851_v23  ;;  %v8866_v52 = vld [vmem:[#allocation8 + $0x1f4] sm:$0xf]  ;;  %v6659_v58 = vor.u32 %v8965_v46, %v6658_v42  ;;  %v1735_v62 = vpop.f32.mrf.mxu3 }
  0xfb   :  { %v1736_v4 = vadd.f32 %v1735_v62, %v10081_v41  ;;  %v1774_v10 = vpop.f32.mrf.mxu2  ;;  %v7098_v62 = vld [vmem:[#allocation11 + $0xf0] sm:$0xf] }
  0xfc   :  { %1987 = vmatpush.bf16.msra.mxu3 %v6755_v59  ;;  %v6634_v59 = vld [vmem:[#allocation8 + $0x4c0] sm:$0xf]  ;;  %v10090_v13 = vadd.f32 %v1774_v10, %v1762_v57  ;;  %v7123_v57 = vor.u32 %v9083_v49, %v7122_v48  ;;  %v8908_v49 = vld [vmem:[#allocation8 + $0x344] sm:$0xf] }
  0xfd   :  { %2026 = vmatpush.bf16.msra.mxu2 %v6375_v63  ;;  %v6279_v63 = vor.u32 %v8866_v52, %v6276_v53  ;;  %v10093_v14 = vadd.f32 %v10083_v2, %v1736_v4  ;;  %v9089_v2 = vld [vmem:[#allocation11 + $0x164] sm:$0xf0] }
  0xfe   :  { %2013 = vmatpush.bf16.msra.mxu1 %v6183_v3  ;;  %2005 = vmatpush.bf16.msrb.mxu0 %v6827_v38  ;;  %v6756_v3 = vld [vmem:[#allocation8 + $0x5c8] sm:$0xf0]  ;;  %v1763_v23 = vpop.f32.mrf.mxu1 }
  0xff   :  { %v6759_v41 = vor.u32 %v8986_v1, %v6756_v3  ;;  %v6948_v52 = vld [vmem:[#allocation8 + $0x748] sm:$0xf0]  ;;  %v9028_v1 = vld [vmem:[#allocation8 + $0x704] sm:$0xf]  ;;  %v6924_v3 = vld [vmem:[#allocation8 + $0x718] sm:$0xf0] }
 0x100   :  { %1988 = vmatpush.bf16.msra.mxu3 %v6731_v12  ;;  %v6060_v12 = vld [vmem:[#allocation8 + $0x58] sm:$0xf0]  ;;  %v8920_v23 = vld [vmem:[#allocation8 + $0x3a4] sm:$0xf] }
 0x101   :  { %2027 = vmatpush.bf16.msra.mxu2 %v6351_v15  ;;  %v6635_v15 = vor.u32 %v8959_v0, %v6634_v59  ;;  %v6540_v59 = vld [vmem:[#allocation8 + $0x418] sm:$0xf0] }
 0x102   :  { %2014 = vmatpush.bf16.msra.mxu1 %v6159_v18  ;;  %2006 = vmatpush.bf16.msrb.mxu0 %v6803_v56  ;;  %v8944_v18 = vld [vmem:[#allocation8 + $0x464] sm:$0xf]  ;;  %v1737_v38 = vpop.f32.mrf.mxu3  ;;  %v6684_v56 = vld [vmem:[#allocation8 + $0x538] sm:$0xf0]  ;;  %v10097_v0 = vpop.f32.mrf.mxu0 }
 0x103   :  { %v6591_v34 = vor.u32 %v8944_v18, %v6588_v20  ;;  %v1776_v46 = vpop.f32.mrf.mxu2  ;;  %v6687_v4 = vor.u32 %v8968_v55, %v6684_v56  ;;  %v9022_v18 = vld [vmem:[#allocation8 + $0x6d4] sm:$0xf]  ;;  %v8956_v20 = vld [vmem:[#allocation8 + $0x4c4] sm:$0xf]  ;;  %v9179_v56 = vld [vmem:[#allocation11 + $0x434] sm:$0xf0] }
 0x104   :  { %1989 = vmatpush.bf16.msra.mxu3 %v6707_v24  ;;  %v6063_v24 = vor.u32 %v8812_v11, %v6060_v12  ;;  %v8926_v11 = vld [vmem:[#allocation8 + $0x3d4] sm:$0xf]  ;;  %v6516_v12 = vld [vmem:[#allocation8 + $0x3e8] sm:$0xf0]  ;;  %v7506_v55 = vld [vmem:[#allocation11 + $0x420] sm:$0xf] }
 0x105   :  { %2028 = vmatpush.bf16.msra.mxu2 %v6327_v27  ;;  %v7146_v27 = vld [vmem:[#allocation11 + $0x150] sm:$0xf]  ;;  %2007 = vmatmul.bf16.vlgmr.msrb.gmra.mxu0 %v10057_v35  ;;  %v6852_v46 = vld [vmem:[#allocation8 + $0x688] sm:$0xf0] }
 0x106   :  { %2015 = vmatpush.bf16.msra.mxu1 %v6135_v31  ;;  %2051 = vmatpush.bf16.msra.mxu0 %v6783_v60  ;;  %v9040_v31 = vld [vmem:[#allocation8 + $0x764] sm:$0xf]  ;;  %v7147_v42 = vor.u32 %v9089_v2, %v7146_v27 }
 0x107   :  { %v6975_v47 = vor.u32 %v9040_v31, %v6972_v32  ;;  %v9016_v2 = vld [vmem:[#allocation8 + $0x6a4] sm:$0xf]  ;;  %v8914_v31 = vld [vmem:[#allocation8 + $0x374] sm:$0xf] }
 0x108   :  { %1990 = vmatpush.bf16.msra.mxu3 %v6683_v40  ;;  %v6708_v40 = vld [vmem:[#allocation8 + $0x568] sm:$0xf0]  ;;  %v8950_v32 = vld [vmem:[#allocation8 + $0x494] sm:$0xf] }
 0x109   :  { %2029 = vmatpush.bf16.msra.mxu2 %v6303_v45  ;;  %v6039_v45 = vor.u32 %v8806_v28, %v6036_v29  ;;  %v6711_v53 = vor.u32 %v8974_v39, %v6708_v40  ;;  %v6876_v28 = vld [vmem:[#allocation8 + $0x6b8] sm:$0xf0]  ;;  %v6639_v29 = vor.u32 %v8956_v20, %v6636_v21  ;;  %v7530_v39 = vld [vmem:[#allocation11 + $0x450] sm:$0xf]  ;;  %v9185_v40 = vld [vmem:[#allocation11 + $0x464] sm:$0xf0] }
 0x10a   :  { %2016 = vmatpush.bf16.msra.mxu1 %v6111_v50  ;;  %2052 = vmatpush.bf16.msra.mxu0 %v6759_v41  ;;  %v9034_v50 = vld [vmem:[#allocation8 + $0x734] sm:$0xf]  ;;  %v6900_v41 = vld [vmem:[#allocation8 + $0x6e8] sm:$0xf0]  ;;  %v1802_v27 = vpop.f32.mrf.mxu0 }
 0x10b   :  { %v6951_v60 = vor.u32 %v9034_v50, %v6948_v52  ;;  %v7531_v50 = vor.u32 %v9185_v40, %v7530_v39  ;;  %v8998_v20 = vld [vmem:[#allocation8 + $0x614] sm:$0xf]  ;;  %v6804_v21 = vld [vmem:[#allocation8 + $0x628] sm:$0xf0]  ;;  %v7124_v40 = vld [vmem:[#allocation11 + $0x138] sm:$0xf0] }
 0x10c   :  { %1991 = vmatpush.bf16.msra.mxu3 %v6659_v58  ;;  %v8932_v58 = vld [vmem:[#allocation8 + $0x404] sm:$0xf]  ;;  %v9080_v39 = vld [vmem:[#allocation11 + $0x124] sm:$0xf] }
 0x10d   :  { %2030 = vmatpush.bf16.msra.mxu2 %v6279_v63  ;;  %v9077_v63 = vld [vmem:[#allocation11 + $0x104] sm:$0xf0] }
 0x10e   :  { %2017 = vmatpush.bf16.msra.mxu1 %v6087_v5  ;;  %2053 = vmatpush.bf16.msra.mxu0 %v6735_v33  ;;  %v6543_v5 = vor.u32 %v8932_v58, %v6540_v59  ;;  %v7099_v10 = vor.u32 %v9077_v63, %v7098_v62  ;;  %v6612_v33 = vld [vmem:[#allocation8 + $0x4a8] sm:$0xf0]  ;;  %v7002_v59 = vld [vmem:[#allocation11 + $0x30] sm:$0xf]  ;;  %v9004_v63 = vld [vmem:[#allocation8 + $0x644] sm:$0xf] }
 0x110   :  { %1992 = vmatpush.bf16.msra.mxu3 %v6635_v15  ;;  %v6927_v15 = vor.u32 %v9028_v1, %v6924_v3  ;;  %v6828_v1 = vld [vmem:[#allocation8 + $0x658] sm:$0xf0] }
 0x111   :  { %2031 = vmatpush.bf16.msra.mxu2 %v6255_v19  ;;  %v6663_v19 = vor.u32 %v8962_v7, %v6660_v8  ;;  %v6420_v7 = vld [vmem:[#allocation8 + $0x328] sm:$0xf0]  ;;  %v7338_v8 = vld [vmem:[#allocation11 + $0x2d0] sm:$0xf] }
 0x112   :  { %2018 = vmatpush.bf16.msra.mxu1 %v6063_v24  ;;  %2054 = vmatpush.bf16.msra.mxu0 %v6711_v53  ;;  %v6903_v24 = vor.u32 %v9022_v18, %v6900_v41  ;;  %v7027_v53 = vor.u32 %v9059_v44, %v7026_v43  ;;  %v6831_v18 = vor.u32 %v9004_v63, %v6828_v1  ;;  %v6978_v41 = vld [vmem:[#allocation11] sm:$0xf]  ;;  %v9119_v1 = vld [vmem:[#allocation11 + $0x254] sm:$0xf0] }
 0x113   :  { %v7266_v63 = vld [vmem:[#allocation11 + $0x240] sm:$0xf] }
 0x114   :  { %1993 = vmatpush.bf16.msra.mxu3 %v6611_v30 }
 0x115   :  { %2032 = vmatpush.bf16.msra.mxu2 %v6231_v37  ;;  %v6468_v37 = vld [vmem:[#allocation8 + $0x388] sm:$0xf0] }
 0x116   :  { %2019 = vmatpush.bf16.msra.mxu1 %v6039_v45  ;;  %2055 = vmatpush.bf16.msra.mxu0 %v6687_v4  ;;  %v1813_v38 = vpop.f32.mrf.mxu1  ;;  %v9010_v45 = vld [vmem:[#allocation8 + $0x674] sm:$0xf]  ;;  %v6471_v48 = vor.u32 %v8914_v31, %v6468_v37  ;;  %v7314_v31 = vld [vmem:[#allocation11 + $0x2a0] sm:$0xf]  ;;  %v9128_v37 = vld [vmem:[#allocation11 + $0x2a4] sm:$0xf] }
 0x117   :  { %1994 = vmatmul.bf16.vlgmr.msra.gmra.mxu3 %v10060_v9  ;;  %v6855_v58 = vor.u32 %v9010_v45, %v6852_v46  ;;  %v7434_v45 = vld [vmem:[#allocation11 + $0x390] sm:$0xf]  ;;  %v9161_v46 = vld [vmem:[#allocation11 + $0x3a4] sm:$0xf0] }
 0x118   :  { %2038 = vmatpush.bf16.msrb.mxu3 %v6591_v34  ;;  %2033 = vmatmul.bf16.vlgmr.msra.gmra.mxu2 %v10054_v6  ;;  %v6519_v6 = vor.u32 %v8926_v11, %v6516_v12  ;;  %v7051_v34 = vor.u32 %v9065_v26, %v7050_v25  ;;  %v9137_v11 = vld [vmem:[#allocation11 + $0x2e4] sm:$0xf0]  ;;  %v7482_v12 = vld [vmem:[#allocation11 + $0x3f0] sm:$0xf] }
 0x119   :  { %2961 = vmatpush.bf16.msrb.mxu2 %v7147_v42  ;;  %2020 = vmatmul.bf16.vlgmr.msra.gmra.mxu1 %v10048_v36  ;;  %v6492_v36 = vld [vmem:[#allocation8 + $0x3b8] sm:$0xf0]  ;;  %v6879_v42 = vor.u32 %v9016_v2, %v6876_v28  ;;  %v7339_v25 = vor.u32 %v9137_v11, %v7338_v8  ;;  %v7458_v2 = vld [vmem:[#allocation11 + $0x3c0] sm:$0xf]  ;;  %v7076_v8 = vld [vmem:[#allocation11 + $0xd8] sm:$0xf0] }
 0x11a   :  { %2064 = vmatpush.bf16.msrb.mxu1 %v6975_v47  ;;  %2056 = vmatpush.bf16.msra.mxu0 %v6663_v19  ;;  %v6495_v30 = vor.u32 %v8920_v23, %v6492_v36  ;;  %v6615_v47 = vor.u32 %v8950_v32, %v6612_v33  ;;  %v1787_v52 = vpop.f32.mrf.mxu3  ;;  %v9047_v19 = vld [vmem:[#allocation11 + $0x14] sm:$0xf0]  ;;  %v9086_v23 = vld [vmem:[#allocation11 + $0x154] sm:$0xf]  ;;  %v7148_v36 = vld [vmem:[#allocation11 + $0x168] sm:$0xf0]  ;;  %v6807_v32 = vor.u32 %v8998_v20, %v6804_v21 }
 0x11b   :  { %v10102_v62 = vpop.f32.mrf.mxu2  ;;  %v6979_v26 = vor.u32 %v9047_v19, %v6978_v41  ;;  %v9167_v28 = vld [vmem:[#allocation11 + $0x3d4] sm:$0xf0]  ;;  %v7386_v11 = vld [vmem:[#allocation11 + $0x330] sm:$0xf]  ;;  %v9110_v19 = vld [vmem:[#allocation11 + $0x214] sm:$0xf] }
 0x11c   :  { %2039 = vmatpush.bf16.msrb.mxu3 %v6567_v54  ;;  %v6444_v54 = vld [vmem:[#allocation8 + $0x358] sm:$0xf0]  ;;  %v7052_v21 = vld [vmem:[#allocation11 + $0xa8] sm:$0xf0] }
 0x11d   :  { %2962 = vmatpush.bf16.msrb.mxu2 %v7123_v57  ;;  %v1788_v57 = vadd.f32 %v1787_v52, %v10090_v13  ;;  %v6447_v4 = vor.u32 %v8908_v49, %v6444_v54  ;;  %v9125_v49 = vld [vmem:[#allocation11 + $0x284] sm:$0xf0]  ;;  %v9122_v52 = vld [vmem:[#allocation11 + $0x274] sm:$0xf] }
 0x11e   :  { %2065 = vmatpush.bf16.msrb.mxu1 %v6951_v60  ;;  %2057 = vmatpush.bf16.msra.mxu0 %v6639_v29  ;;  %v9053_v60 = vld [vmem:[#allocation11 + $0x44] sm:$0xf0]  ;;  %v1815_v16 = vpop.f32.mrf.mxu1  ;;  %v9062_v20 = vld [vmem:[#allocation11 + $0x94] sm:$0xf] }
 0x11f   :  { %v1801_v3 = vadd.f32 %v10097_v0, %v1788_v57  ;;  %v7003_v13 = vor.u32 %v9053_v60, %v7002_v59  ;;  %v9134_v0 = vld [vmem:[#allocation11 + $0x2d4] sm:$0xf]  ;;  %v2077_v29 = vld [vmem:[#allocation6] sm:$0xff]  ;;  %v7435_v57 = vor.u32 %v9161_v46, %v7434_v45  ;;  %v9155_v60 = vld [vmem:[#allocation11 + $0x374] sm:$0xf0] }
 0x120   :  { %2040 = vmatpush.bf16.msrb.mxu3 %v6543_v5  ;;  %v8902_v5 = vld [vmem:[#allocation8 + $0x314] sm:$0xf]  ;;  %v10108_v43 = vpack.c.bf16 %v2077_v29, %v2077_v29  ;;  %v7410_v59 = vld [vmem:[#allocation11 + $0x360] sm:$0xf]  ;;  %v9113_v16 = vld [vmem:[#allocation11 + $0x224] sm:$0xf0] }
 0x121   :  { %2963 = vmatpush.bf16.msrb.mxu2 %v7099_v10  ;;  %v7507_v10 = vor.u32 %v9179_v56, %v7506_v55  ;;  %v10105_v17 = vadd.f32 %v1813_v38, %v1801_v3  ;;  %v7316_v38 = vld [vmem:[#allocation11 + $0x2b8] sm:$0xf0]  ;;  %v9074_v55 = vld [vmem:[#allocation11 + $0xf4] sm:$0xf]  ;;  %v7100_v56 = vld [vmem:[#allocation11 + $0x108] sm:$0xf0] }
 0x122   :  { %2066 = vmatpush.bf16.msrb.mxu1 %v6927_v15  ;;  %2058 = vmatpush.bf16.msra.mxu0 %v6615_v47  ;;  %v9173_v15 = vld [vmem:[#allocation11 + $0x404] sm:$0xf0]  ;;  %v1789_v27 = vpop.f32.mrf.mxu3  ;;  %v7319_v47 = vor.u32 %v9128_v37, %v7316_v38  ;;  %v10111_v54 = vpop.f32.mrf.mxu0  ;;  %v7103_v3 = vor.u32 %v9074_v55, %v7100_v56  ;;  %v2079_v37 = vld [vmem:[#allocation6 + $0x10] sm:$0xff]  ;;  %v7004_v56 = vld [vmem:[#allocation11 + $0x48] sm:$0xf0] }
 0x123   :  { %v1828_v33 = vpop.f32.mrf.mxu2  ;;  %v9107_v27 = vld [vmem:[#allocation11 + $0x1f4] sm:$0xf0]  ;;  %v9101_v45 = vld [vmem:[#allocation11 + $0x1c4] sm:$0xf0]  ;;  %v9050_v55 = vld [vmem:[#allocation11 + $0x34] sm:$0xf] }
 0x124   :  { %2041 = vmatpush.bf16.msrb.mxu3 %v6519_v6  ;;  %v7340_v6 = vld [vmem:[#allocation11 + $0x2e8] sm:$0xf0]  ;;  %v7028_v33 = vld [vmem:[#allocation11 + $0x78] sm:$0xf0]  ;;  %v7130_v46 = vld [vmem:[#allocation11 + $0x128] sm:$0xf] }
 0x125   :  { %2964 = vmatpush.bf16.msrb.mxu2 %v7075_v22  ;;  %2059 = vmatmul.bf16.vlgmr.msra.gmra.mxu0 %v10060_v9  ;;  %v6423_v22 = vor.u32 %v8902_v5, %v6420_v7  ;;  %v9131_v9 = vld [vmem:[#allocation11 + $0x2b4] sm:$0xf0]  ;;  %v7268_v5 = vld [vmem:[#allocation11 + $0x258] sm:$0xf0]  ;;  %v9068_v7 = vld [vmem:[#allocation11 + $0xc4] sm:$0xf] }
 0x126   :  { %2067 = vmatpush.bf16.msrb.mxu1 %v6903_v24  ;;  %2987 = vmatpush.bf16.msrb.mxu0 %v7531_v50  ;;  %v7483_v24 = vor.u32 %v9173_v15, %v7482_v12  ;;  %v7315_v44 = vor.u32 %v9131_v9, %v7314_v31  ;;  %v7127_v50 = vor.u32 %v9080_v39, %v7124_v40  ;;  %v9149_v12 = vld [vmem:[#allocation11 + $0x344] sm:$0xf0]  ;;  %v7242_v15 = vld [vmem:[#allocation11 + $0x210] sm:$0xf]  ;;  %v9104_v31 = vld [vmem:[#allocation11 + $0x1e4] sm:$0xf] }
 0x127   :  { %v7079_v41 = vor.u32 %v9068_v7, %v7076_v8  ;;  %v7220_v9 = vld [vmem:[#allocation11 + $0x1f8] sm:$0xf0]  ;;  %v7194_v39 = vld [vmem:[#allocation11 + $0x1b0] sm:$0xf] }
 0x128   :  { %2042 = vmatpush.bf16.msrb.mxu3 %v6495_v30  ;;  %v7343_v30 = vor.u32 %v9134_v0, %v7340_v6  ;;  %v7244_v0 = vld [vmem:[#allocation11 + $0x228] sm:$0xf0] }
 0x129   :  { %2965 = vmatpush.bf16.msrb.mxu2 %v7051_v34  ;;  %v7151_v34 = vor.u32 %v9086_v23, %v7148_v36  ;;  %v7243_v23 = vor.u32 %v9113_v16, %v7242_v15  ;;  %v7218_v36 = vld [vmem:[#allocation11 + $0x1e0] sm:$0xf]  ;;  %v6980_v15 = vld [vmem:[#allocation11 + $0x18] sm:$0xf0] }
 0x12a   :  { %2068 = vmatpush.bf16.msrb.mxu1 %v6879_v42  ;;  %2988 = vmatpush.bf16.msrb.mxu0 %v7507_v10  ;;  %v7459_v42 = vor.u32 %v9167_v28, %v7458_v2  ;;  %v7411_v10 = vor.u32 %v9155_v60, %v7410_v59  ;;  %v1854_v6 = vpop.f32.mrf.mxu0  ;;  %v7154_v28 = vld [vmem:[#allocation11 + $0x158] sm:$0xf]  ;;  %v7219_v38 = vor.u32 %v9107_v27, %v7218_v36  ;;  %v7170_v59 = vld [vmem:[#allocation11 + $0x180] sm:$0xf] }
 0x12b   :  { %v9095_v60 = vld [vmem:[#allocation11 + $0x194] sm:$0xf0]  ;;  %v2078_v6 = vld [vmem:[#allocation6 + $0x8] sm:$0xff]  ;;  %v9072_v36 = vld [vmem:[#allocation11 + $0xdc] sm:$0xf0] }
 0x12c   :  { %2043 = vmatpush.bf16.msrb.mxu3 %v6471_v48  ;;  %v7290_v48 = vld [vmem:[#allocation11 + $0x270] sm:$0xf] }
 0x12d   :  { %2966 = vmatpush.bf16.msrb.mxu2 %v7027_v53  ;;  %v7292_v53 = vld [vmem:[#allocation11 + $0x288] sm:$0xf0] }
 0x12e   :  { %2069 = vmatpush.bf16.msrb.mxu1 %v6855_v58  ;;  %2989 = vmatpush.bf16.msrb.mxu0 %v7483_v24  ;;  %v7291_v58 = vor.u32 %v9125_v49, %v7290_v48  ;;  %v7362_v24 = vld [vmem:[#allocation11 + $0x300] sm:$0xf] }
 0x130   :  { %2044 = vmatpush.bf16.msrb.mxu3 %v6447_v4  ;;  %v9116_v4 = vld [vmem:[#allocation11 + $0x244] sm:$0xf] }
 0x131   :  { %2967 = vmatpush.bf16.msrb.mxu2 %v7003_v13  ;;  %v7267_v13 = vor.u32 %v9119_v1, %v7266_v63 }
 0x132   :  { %2070 = vmatpush.bf16.msrb.mxu1 %v6831_v18  ;;  %2990 = vmatpush.bf16.msrb.mxu0 %v7459_v42  ;;  %v477_v18 = vperm.slane %v10077_v51, 2  ;;  %v9090_v51 = vld [vmem:[#allocation11 + $0x16c] sm:$0xf0] }
 0x133   :  { %v7155_v40 = vor.u32 %v9090_v51, %v7154_v28  ;;  %v7514_v51 = vld [vmem:[#allocation11 + $0x428] sm:$0xf] }
 0x134   :  { %2045 = vmatpush.bf16.msrb.mxu3 %v6423_v22  ;;  %v7387_v22 = vor.u32 %v9149_v12, %v7386_v11  ;;  %v1827_v29 = vadd.f32 %v10102_v62, %v477_v18  ;;  %v7172_v11 = vld [vmem:[#allocation11 + $0x198] sm:$0xf0]  ;;  %v7538_v12 = vld [vmem:[#allocation11 + $0x458] sm:$0xf]  ;;  %v7171_v18 = vor.u32 %v9095_v60, %v7170_v59  ;;  %v7466_v59 = vld [vmem:[#allocation11 + $0x3c8] sm:$0xf] }
 0x135   :  { %2968 = vmatpush.bf16.msrb.mxu2 %v6979_v26  ;;  %v7247_v26 = vor.u32 %v9110_v19, %v7244_v0  ;;  %v9138_v19 = vld [vmem:[#allocation11 + $0x2ec] sm:$0xf0]  ;;  %v9168_v60 = vld [vmem:[#allocation11 + $0x3dc] sm:$0xf0] }
 0x136   :  { %2071 = vmatpush.bf16.msrb.mxu1 %v6807_v32  ;;  %2991 = vmatpush.bf16.msrb.mxu0 %v7435_v57  ;;  %v1865_v2 = vpop.f32.mrf.mxu1  ;;  %v9056_v32 = vld [vmem:[#allocation11 + $0x64] sm:$0xf] }
 0x137   :  { %2046 = vmatmul.bf16.vlgmr.msrb.gmra.mxu3 %v10051_v61  ;;  %v7295_v61 = vor.u32 %v9122_v52, %v7292_v53  ;;  %v7031_v49 = vor.u32 %v9056_v32, %v7028_v33  ;;  %v7196_v52 = vld [vmem:[#allocation11 + $0x1c8] sm:$0xf0]  ;;  %v10117_v53 = vpack.c.bf16 %v2079_v37, %v2079_v37  ;;  %v9066_v37 = vld [vmem:[#allocation11 + $0xac] sm:$0xf0] }
 0x138   :  { %2974 = vmatpush.bf16.msra.mxu3 %v7339_v25  ;;  %2969 = vmatmul.bf16.vlgmr.msrb.gmra.mxu2 %v10108_v43  ;;  %v9143_v25 = vld [vmem:[#allocation11 + $0x314] sm:$0xf0] }
 0x139   :  { %3013 = vmatpush.bf16.msra.mxu2 %v7343_v30  ;;  %2072 = vmatmul.bf16.vlgmr.msrb.gmra.mxu1 %v10057_v35  ;;  %v7271_v35 = vor.u32 %v9116_v4, %v7268_v5  ;;  %v7055_v30 = vor.u32 %v9062_v20, %v7052_v21  ;;  %v7106_v4 = vld [vmem:[#allocation11 + $0xf8] sm:$0xf]  ;;  %v9078_v5 = vld [vmem:[#allocation11 + $0x10c] sm:$0xf0] }
 0x13a   :  { %3000 = vmatpush.bf16.msra.mxu1 %v7151_v34  ;;  %2992 = vmatpush.bf16.msrb.mxu0 %v7411_v10  ;;  %v7363_v34 = vor.u32 %v9143_v25, %v7362_v24  ;;  %v1839_v42 = vpop.f32.mrf.mxu3  ;;  %v7007_v10 = vor.u32 %v9050_v55, %v7004_v56  ;;  %v7107_v0 = vor.u32 %v9078_v5, %v7106_v4  ;;  %v9176_v25 = vld [vmem:[#allocation11 + $0x424] sm:$0xf]  ;;  %v7460_v56 = vld [vmem:[#allocation11 + $0x3d8] sm:$0xf0]  ;;  %v7010_v4 = vld [vmem:[#allocation11 + $0x38] sm:$0xf] }
 0x13b   :  { %v1840_v62 = vadd.f32 %v1839_v42, %v1827_v29  ;;  %v1878_v48 = vpop.f32.mrf.mxu2  ;;  %v9180_v29 = vld [vmem:[#allocation11 + $0x43c] sm:$0xf0]  ;;  %v9164_v55 = vld [vmem:[#allocation11 + $0x3c4] sm:$0xf]  ;;  %v9054_v5 = vld [vmem:[#allocation11 + $0x4c] sm:$0xf0] }
 0x13c   :  { %2975 = vmatpush.bf16.msra.mxu3 %v7315_v44  ;;  %v7223_v44 = vor.u32 %v9104_v31, %v7220_v9  ;;  %v7322_v31 = vld [vmem:[#allocation11 + $0x2a8] sm:$0xf]  ;;  %v9132_v9 = vld [vmem:[#allocation11 + $0x2bc] sm:$0xf0] }
 0x13d   :  { %3014 = vmatpush.bf16.msra.mxu2 %v7319_v47  ;;  %v9084_v47 = vld [vmem:[#allocation11 + $0x13c] sm:$0xf0]  ;;  %v1853_v57 = vadd.f32 %v10111_v54, %v1840_v62  ;;  %v9186_v54 = vld [vmem:[#allocation11 + $0x46c] sm:$0xf0]  ;;  %v7323_v42 = vor.u32 %v9132_v9, %v7322_v31  ;;  %v9146_v9 = vld [vmem:[#allocation11 + $0x334] sm:$0xf] }
 0x13e   :  { %3001 = vmatpush.bf16.msra.mxu1 %v7127_v50  ;;  %2993 = vmatpush.bf16.msrb.mxu0 %v7387_v22  ;;  %v9098_v50 = vld [vmem:[#allocation11 + $0x1b4] sm:$0xf]  ;;  %v7131_v63 = vor.u32 %v9084_v47, %v7130_v46  ;;  %v1867_v7 = vpop.f32.mrf.mxu1  ;;  %v7539_v24 = vor.u32 %v9186_v54, %v7538_v12  ;;  %v7298_v46 = vld [vmem:[#allocation11 + $0x278] sm:$0xf]  ;;  %v9126_v47 = vld [vmem:[#allocation11 + $0x28c] sm:$0xf0] }
 0x13f   :  { %v7199_v1 = vor.u32 %v9098_v50, %v7196_v52  ;;  %v1866_v8 = vadd.f32 %v1865_v2, %v1853_v57  ;;  %v9060_v50 = vld [vmem:[#allocation11 + $0x7c] sm:$0xf0]  ;;  %v7467_v7 = vor.u32 %v9168_v60, %v7466_v59  ;;  %v9162_v12 = vld [vmem:[#allocation11 + $0x3ac] sm:$0xf0]  ;;  %v7250_v54 = vld [vmem:[#allocation11 + $0x218] sm:$0xf] }
 0x140   :  { %2976 = vmatpush.bf16.msra.mxu3 %v7291_v58  ;;  %v7195_v58 = vor.u32 %v9101_v45, %v7194_v39  ;;  %v9170_v39 = vld [vmem:[#allocation11 + $0x3f4] sm:$0xf]  ;;  %v9174_v45 = vld [vmem:[#allocation11 + $0x40c] sm:$0xf0]  ;;  %v9123_v60 = vld [vmem:[#allocation11 + $0x27c] sm:$0xf] }
 0x141   :  { %3015 = vmatpush.bf16.msra.mxu2 %v7295_v61  ;;  %v9182_v61 = vld [vmem:[#allocation11 + $0x454] sm:$0xf]  ;;  %v10121_v16 = vadd.f32 %v1878_v48, %v1866_v8 }
 0x142   :  { %3002 = vmatpush.bf16.msra.mxu1 %v7103_v3  ;;  %2994 = vmatpush.bf16.msrb.mxu0 %v7363_v34  ;;  %v7532_v3 = vld [vmem:[#allocation11 + $0x468] sm:$0xf0]  ;;  %v1841_v22 = vpop.f32.mrf.mxu3  ;;  %v7058_v34 = vld [vmem:[#allocation11 + $0x98] sm:$0xf]  ;;  %v10128_v57 = vpop.f32.mrf.mxu0  ;;  %v9158_v8 = vld [vmem:[#allocation11 + $0x394] sm:$0xf] }
 0x143   :  { %v7535_v20 = vor.u32 %v9182_v61, %v7532_v3  ;;  %v1880_v2 = vpop.f32.mrf.mxu2  ;;  %v7059_v62 = vor.u32 %v9066_v37, %v7058_v34  ;;  %v7274_v61 = vld [vmem:[#allocation11 + $0x248] sm:$0xf]  ;;  %v7463_v3 = vor.u32 %v9164_v55, %v7460_v56  ;;  %v7348_v22 = vld [vmem:[#allocation11 + $0x2f0] sm:$0xf0]  ;;  %v7388_v34 = vld [vmem:[#allocation11 + $0x348] sm:$0xf0] }
 0x144   :  { %2977 = vmatpush.bf16.msra.mxu3 %v7267_v13  ;;  %v9092_v13 = vld [vmem:[#allocation11 + $0x184] sm:$0xf]  ;;  %v7156_v59 = vld [vmem:[#allocation11 + $0x170] sm:$0xf0] }
 0x145   :  { %3016 = vmatpush.bf16.msra.mxu2 %v7271_v35  ;;  %2995 = vmatmul.bf16.vlgmr.msrb.gmra.mxu0 %v10117_v53  ;;  %v9044_v35 = vld [vmem:[#allocation11 + $0x4] sm:$0xf]  ;;  %v7175_v21 = vor.u32 %v9092_v13, %v7172_v11  ;;  %v7442_v11 = vld [vmem:[#allocation11 + $0x398] sm:$0xf] }
 0x146   :  { %3003 = vmatpush.bf16.msra.mxu1 %v7079_v41  ;;  %3039 = vmatpush.bf16.msra.mxu0 %v7155_v40  ;;  %v7346_v41 = vld [vmem:[#allocation11 + $0x2d8] sm:$0xf]  ;;  %v6983_v27 = vor.u32 %v9044_v35, %v6980_v15  ;;  %v7484_v40 = vld [vmem:[#allocation11 + $0x408] sm:$0xf0]  ;;  %v9114_v35 = vld [vmem:[#allocation11 + $0x22c] sm:$0xf0]  ;;  %v7011_v15 = vor.u32 %v9054_v5, %v7010_v4 }
 0x147   :  { %v7347_v28 = vor.u32 %v9138_v19, %v7346_v41  ;;  %v7487_v48 = vor.u32 %v9170_v39, %v7484_v40  ;;  %v9152_v41 = vld [vmem:[#allocation11 + $0x364] sm:$0xf]  ;;  %v6986_v19 = vld [vmem:[#allocation11 + $0x8] sm:$0xf]  ;;  %v9144_v4 = vld [vmem:[#allocation11 + $0x31c] sm:$0xf0] }
 0x148   :  { %2978 = vmatpush.bf16.msra.mxu3 %v7243_v23  ;;  %v7082_v23 = vld [vmem:[#allocation11 + $0xc8] sm:$0xf]  ;;  %v7324_v39 = vld [vmem:[#allocation11 + $0x2c0] sm:$0xf0] }
 0x149   :  { %3017 = vmatpush.bf16.msra.mxu2 %v7247_v26  ;;  %v7508_v26 = vld [vmem:[#allocation11 + $0x438] sm:$0xf0]  ;;  %v7083_v32 = vor.u32 %v9072_v36, %v7082_v23  ;;  %v7178_v5 = vld [vmem:[#allocation11 + $0x188] sm:$0xf] }
 0x14a   :  { %3004 = vmatpush.bf16.msra.mxu1 %v7055_v30  ;;  %3040 = vmatpush.bf16.msra.mxu0 %v7131_v63  ;;  %v10123_v30 = vpack.c.bf16 %v2078_v6, %v2078_v6  ;;  %v7511_v33 = vor.u32 %v9176_v25, %v7508_v26  ;;  %v9120_v63 = vld [vmem:[#allocation11 + $0x25c] sm:$0xf0]  ;;  %v7443_v6 = vor.u32 %v9162_v12, %v7442_v11  ;;  %v1906_v36 = vpop.f32.mrf.mxu0  ;;  %v7418_v25 = vld [vmem:[#allocation11 + $0x368] sm:$0xf]  ;;  %v9183_v11 = vld [vmem:[#allocation11 + $0x45c] sm:$0xf] }
 0x14b   :  { %v7275_v13 = vor.u32 %v9120_v63, %v7274_v61  ;;  %v9156_v26 = vld [vmem:[#allocation11 + $0x37c] sm:$0xf0]  ;;  %v7300_v61 = vld [vmem:[#allocation11 + $0x290] sm:$0xf0] }
 0x14c   :  { %2979 = vmatpush.bf16.msra.mxu3 %v7219_v38  ;;  %v7515_v38 = vor.u32 %v9180_v29, %v7514_v51  ;;  %v9108_v51 = vld [vmem:[#allocation11 + $0x1fc] sm:$0xf0]  ;;  %v7540_v12 = vld [vmem:[#allocation11 + $0x470] sm:$0xf0] }
 0x14d   :  { %3018 = vmatpush.bf16.msra.mxu2 %v7223_v44  ;;  %v7490_v44 = vld [vmem:[#allocation11 + $0x3f8] sm:$0xf]  ;;  %v7543_v36 = vor.u32 %v9183_v11, %v7540_v12 }
 0x14e   :  { %3005 = vmatpush.bf16.msra.mxu1 %v7031_v49  ;;  %3041 = vmatpush.bf16.msra.mxu0 %v7107_v0  ;;  %v7034_v49 = vld [vmem:[#allocation11 + $0x68] sm:$0xf]  ;;  %v7491_v52 = vor.u32 %v9174_v45, %v7490_v44  ;;  %v9048_v0 = vld [vmem:[#allocation11 + $0x1c] sm:$0xf0]  ;;  %v9150_v44 = vld [vmem:[#allocation11 + $0x34c] sm:$0xf0] }
 0x14f   :  { %v6987_v29 = vor.u32 %v9048_v0, %v6986_v19  ;;  %v9117_v19 = vld [vmem:[#allocation11 + $0x24c] sm:$0xf]  ;;  %v7276_v0 = vld [vmem:[#allocation11 + $0x260] sm:$0xf0] }
 0x150   :  { %2980 = vmatpush.bf16.msra.mxu3 %v7195_v58  ;;  %v7299_v58 = vor.u32 %v9126_v47, %v7298_v46  ;;  %v7202_v47 = vld [vmem:[#allocation11 + $0x1b8] sm:$0xf] }
 0x151   :  { %3019 = vmatpush.bf16.msra.mxu2 %v7199_v1  ;;  %v7035_v1 = vor.u32 %v9060_v50, %v7034_v49  ;;  %v9140_v49 = vld [vmem:[#allocation11 + $0x304] sm:$0xf]  ;;  %v7364_v50 = vld [vmem:[#allocation11 + $0x318] sm:$0xf0] }
 0x152   :  { %3006 = vmatpush.bf16.msra.mxu1 %v7007_v10  ;;  %3042 = vmatpush.bf16.msra.mxu0 %v7083_v32  ;;  %v7436_v10 = vld [vmem:[#allocation11 + $0x3a8] sm:$0xf0] }
 0x154   :  { %2981 = vmatpush.bf16.msra.mxu3 %v7171_v18  ;;  %v7439_v18 = vor.u32 %v9158_v8, %v7436_v10  ;;  %v9096_v8 = vld [vmem:[#allocation11 + $0x19c] sm:$0xf0] }
 0x155   :  { %3020 = vmatpush.bf16.msra.mxu2 %v7175_v21  ;;  %v9135_v21 = vld [vmem:[#allocation11 + $0x2dc] sm:$0xf]  ;;  %v7162_v10 = vld [vmem:[#allocation11 + $0x160] sm:$0xf] }
 0x156   :  { %3007 = vmatpush.bf16.msra.mxu1 %v6983_v27  ;;  %3043 = vmatpush.bf16.msra.mxu0 %v7059_v62  ;;  %v1917_v23 = vpop.f32.mrf.mxu1  ;;  %v10130_v27 = vld [vmem:[#allocation9] sm:$0x3f]  ;;  %v7351_v32 = vor.u32 %v9135_v21, %v7348_v22  ;;  %v9102_v62 = vld [vmem:[#allocation11 + $0x1cc] sm:$0xf0]  ;;  %v7179_v21 = vor.u32 %v9096_v8, %v7178_v5 }
 0x157   :  { %2982 = vmatmul.bf16.vlgmr.msra.gmra.mxu3 %v10123_v30  ;;  %v478_v2 = vperm.slane %v10130_v27, 3  ;;  %v9067_v8 = vld [vmem:[#allocation11 + $0xb4] sm:$0xf0] }
 0x158   :  { %3026 = vmatpush.bf16.msrb.mxu3 %v7535_v20  ;;  %3021 = vmatmul.bf16.vlgmr.msra.gmra.mxu2 %v10123_v30  ;;  %v7412_v20 = vld [vmem:[#allocation11 + $0x378] sm:$0xf0] }
 0x159   :  { %3065 = vmatpush.bf16.msrb.mxu2 %v7539_v24  ;;  %3008 = vmatmul.bf16.vlgmr.msra.gmra.mxu1 %v10108_v43  ;;  %v7251_v24 = vor.u32 %v9114_v35, %v7250_v54  ;;  %v7415_v31 = vor.u32 %v9152_v41, %v7412_v20  ;;  %v7303_v35 = vor.u32 %v9123_v60, %v7300_v61  ;;  %v7132_v20 = vld [vmem:[#allocation11 + $0x140] sm:$0xf0]  ;;  %v9099_v61 = vld [vmem:[#allocation11 + $0x1bc] sm:$0xf] }
 0x15a   :  { %3052 = vmatpush.bf16.msrb.mxu1 %v7347_v28  ;;  %3044 = vmatpush.bf16.msra.mxu0 %v7035_v1  ;;  %v7226_v28 = vld [vmem:[#allocation11 + $0x1e8] sm:$0xf]  ;;  %v1891_v37 = vpop.f32.mrf.mxu3  ;;  %v7203_v1 = vor.u32 %v9102_v62, %v7202_v47  ;;  %v7228_v47 = vld [vmem:[#allocation11 + $0x200] sm:$0xf0]  ;;  %v9069_v62 = vld [vmem:[#allocation11 + $0xcc] sm:$0xf] }
 0x15b   :  { %v7227_v40 = vor.u32 %v9108_v51, %v7226_v28  ;;  %v1892_v45 = vadd.f32 %v1891_v37, %v478_v2  ;;  %v1930_v46 = vpop.f32.mrf.mxu2  ;;  %v7516_v2 = vld [vmem:[#allocation11 + $0x440] sm:$0xf0]  ;;  %v7279_v28 = vor.u32 %v9117_v19, %v7276_v0  ;;  %v7114_v37 = vld [vmem:[#allocation11 + $0x100] sm:$0xf] }
 0x15c   :  { %3027 = vmatpush.bf16.msrb.mxu3 %v7511_v33  ;;  %v7419_v33 = vor.u32 %v9156_v26, %v7418_v25  ;;  %v9085_v25 = vld [vmem:[#allocation11 + $0x144] sm:$0xf0]  ;;  %v9177_v26 = vld [vmem:[#allocation11 + $0x42c] sm:$0xf]  ;;  %v7546_v0 = vld [vmem:[#allocation11 + $0x460] sm:$0xf] }
 0x15d   :  { %3066 = vmatpush.bf16.msrb.mxu2 %v7515_v38  ;;  %v9129_v38 = vld [vmem:[#allocation11 + $0x2ac] sm:$0xf]  ;;  %v1905_v55 = vadd.f32 %v10128_v57, %v1892_v45  ;;  %v7367_v57 = vor.u32 %v9140_v49, %v7364_v50 }
 0x15e   :  { %3053 = vmatpush.bf16.msrb.mxu1 %v7323_v42  ;;  %3045 = vmatpush.bf16.msra.mxu0 %v7011_v15  ;;  %v7394_v42 = vld [vmem:[#allocation11 + $0x338] sm:$0xf]  ;;  %v7327_v56 = vor.u32 %v9129_v38, %v7324_v39  ;;  %v1919_v63 = vpop.f32.mrf.mxu1 }
 0x15f   :  { %v9079_v38 = vld [vmem:[#allocation11 + $0x114] sm:$0xf0]  ;;  %v7204_v63 = vld [vmem:[#allocation11 + $0x1d0] sm:$0xf0] }
 0x160   :  { %3028 = vmatpush.bf16.msrb.mxu3 %v7487_v48  ;;  %v7391_v48 = vor.u32 %v9146_v9, %v7388_v34  ;;  %v9075_v9 = vld [vmem:[#allocation11 + $0xfc] sm:$0xf]  ;;  %v7519_v34 = vor.u32 %v9177_v26, %v7516_v2  ;;  %v7115_v49 = vor.u32 %v9079_v38, %v7114_v37  ;;  %v7207_v11 = vor.u32 %v9099_v61, %v7204_v63  ;;  %v9055_v37 = vld [vmem:[#allocation11 + $0x54] sm:$0xf0]  ;;  %v7372_v61 = vld [vmem:[#allocation11 + $0x320] sm:$0xf0] }
 0x161   :  { %3067 = vmatpush.bf16.msrb.mxu2 %v7491_v52  ;;  %v9087_v52 = vld [vmem:[#allocation11 + $0x15c] sm:$0xf]  ;;  %v9136_v63 = vld [vmem:[#allocation11 + $0x2e4] sm:$0xf] }
 0x162   :  { %3054 = vmatpush.bf16.msrb.mxu1 %v7299_v58  ;;  %3046 = vmatpush.bf16.msra.mxu0 %v6987_v29  ;;  %v7395_v58 = vor.u32 %v9150_v44, %v7394_v42  ;;  %v7159_v15 = vor.u32 %v9087_v52, %v7156_v59  ;;  %v1893_v41 = vpop.f32.mrf.mxu3  ;;  %v9111_v29 = vld [vmem:[#allocation11 + $0x21c] sm:$0xf]  ;;  %v10138_v39 = vpop.f32.mrf.mxu0  ;;  %v7492_v42 = vld [vmem:[#allocation11 + $0x410] sm:$0xf0]  ;;  %v7090_v52 = vld [vmem:[#allocation11 + $0xd0] sm:$0xf] }
 0x163   :  { %v7036_v41 = vld [vmem:[#allocation11 + $0x80] sm:$0xf0]  ;;  %v9051_v2 = vld [vmem:[#allocation11 + $0x3c] sm:$0xf] }
 0x164   :  { %3029 = vmatpush.bf16.msrb.mxu3 %v7463_v3  ;;  %v7370_v3 = vld [vmem:[#allocation11 + $0x308] sm:$0xf] }
 0x165   :  { %3068 = vmatpush.bf16.msrb.mxu2 %v7467_v7  ;;  %3047 = vmatmul.bf16.vlgmr.msra.gmra.mxu0 %v10108_v43  ;;  %v1918_v7 = vadd.f32 %v1917_v23, %v1905_v55  ;;  %v1932_v23 = vpop.f32.mrf.mxu2  ;;  %v9073_v55 = vld [vmem:[#allocation11 + $0xe4] sm:$0xf0] }
 0x166   :  { %3055 = vmatpush.bf16.msrb.mxu1 %v7275_v13  ;;  %3091 = vmatpush.bf16.msrb.mxu0 %v7351_v32  ;;  %v9091_v13 = vld [vmem:[#allocation11 + $0x174] sm:$0xf0]  ;;  %v7108_v32 = vld [vmem:[#allocation11 + $0x110] sm:$0xf0]  ;;  %v9061_v23 = vld [vmem:[#allocation11 + $0x84] sm:$0xf0] }
 0x167   :  { %v10135_v54 = vadd.f32 %v1930_v46, %v1918_v7  ;;  %v7163_v22 = vor.u32 %v9091_v13, %v7162_v10  ;;  %v7111_v45 = vor.u32 %v9075_v9, %v7108_v32  ;;  %v9105_v46 = vld [vmem:[#allocation11 + $0x1ec] sm:$0xf]  ;;  %v7066_v7 = vld [vmem:[#allocation11 + $0xa0] sm:$0xf]  ;;  %v9159_v13 = vld [vmem:[#allocation11 + $0x39c] sm:$0xf] }
 0x168   :  { %3030 = vmatpush.bf16.msrb.mxu3 %v7439_v18  ;;  %v7371_v18 = vor.u32 %v9144_v4, %v7370_v3  ;;  %v7231_v59 = vor.u32 %v9105_v46, %v7228_v47  ;;  %v7060_v3 = vld [vmem:[#allocation11 + $0xb0] sm:$0xf0]  ;;  %v7091_v4 = vor.u32 %v9073_v55, %v7090_v52  ;;  %v7067_v19 = vor.u32 %v9067_v8, %v7066_v7  ;;  %v7522_v9 = vld [vmem:[#allocation11 + $0x430] sm:$0xf]  ;;  %v9181_v32 = vld [vmem:[#allocation11 + $0x444] sm:$0xf0] }
 0x169   :  { %3069 = vmatpush.bf16.msrb.mxu2 %v7443_v6  ;;  %v9081_v6 = vld [vmem:[#allocation11 + $0x12c] sm:$0xf]  ;;  %v6988_v46 = vld [vmem:[#allocation11 + $0x20] sm:$0xf0]  ;;  %v7354_v47 = vld [vmem:[#allocation11 + $0x2e0] sm:$0xf] }
 0x16a   :  { %3056 = vmatpush.bf16.msrb.mxu1 %v7251_v24  ;;  %3092 = vmatpush.bf16.msrb.mxu0 %v7327_v56  ;;  %v7138_v24 = vld [vmem:[#allocation11 + $0x130] sm:$0xf]  ;;  %v7135_v51 = vor.u32 %v9081_v6, %v7132_v20  ;;  %v9165_v56 = vld [vmem:[#allocation11 + $0x3cc] sm:$0xf]  ;;  %v1958_v10 = vpop.f32.mrf.mxu0  ;;  %v9187_v6 = vld [vmem:[#allocation11 + $0x474] sm:$0xf0] }
 0x16b   :  { %v9175_v52 = vld [vmem:[#allocation11 + $0x414] sm:$0xf0]  ;;  %v7164_v7 = vld [vmem:[#allocation11 + $0x178] sm:$0xf0] }
 0x16c   :  { %3031 = vmatpush.bf16.msrb.mxu3 %v7415_v31  ;;  %v7252_v31 = vld [vmem:[#allocation11 + $0x230] sm:$0xf0] }
 0x16d   :  { %3070 = vmatpush.bf16.msrb.mxu2 %v7419_v33  ;;  %v7139_v33 = vor.u32 %v9085_v25, %v7138_v24  ;;  %v7255_v44 = vor.u32 %v9111_v29, %v7252_v31  ;;  %v7420_v24 = vld [vmem:[#allocation11 + $0x380] sm:$0xf0]  ;;  %v7012_v29 = vld [vmem:[#allocation11 + $0x50] sm:$0xf0] }
 0x16e   :  { %3057 = vmatpush.bf16.msrb.mxu1 %v7227_v40  ;;  %3093 = vmatpush.bf16.msrb.mxu0 %v7303_v35  ;;  %v9171_v40 = vld [vmem:[#allocation11 + $0x3fc] sm:$0xf]  ;;  %v9057_v35 = vld [vmem:[#allocation11 + $0x6c] sm:$0xf] }
 0x16f   :  { %v7495_v50 = vor.u32 %v9171_v40, %v7492_v42  ;;  %v7039_v26 = vor.u32 %v9057_v35, %v7036_v41  ;;  %v9147_v40 = vld [vmem:[#allocation11 + $0x33c] sm:$0xf]  ;;  %v7396_v42 = vld [vmem:[#allocation11 + $0x350] sm:$0xf0]  ;;  %v9133_v35 = vld [vmem:[#allocation11 + $0x2c4] sm:$0xf0] }
 0x170   :  { %3032 = vmatpush.bf16.msrb.mxu3 %v7391_v48  ;;  %v7084_v48 = vld [vmem:[#allocation11 + $0xe0] sm:$0xf0] }
 0x171   :  { %3071 = vmatpush.bf16.msrb.mxu2 %v7395_v58  ;;  %v7468_v58 = vld [vmem:[#allocation11 + $0x3e0] sm:$0xf0]  ;;  %v7087_v60 = vor.u32 %v9069_v62, %v7084_v48  ;;  %v7523_v62 = vor.u32 %v9181_v32, %v7522_v9  ;;  %v9139_v48 = vld [vmem:[#allocation11 + $0x2f4] sm:$0xf0]  ;;  %v7308_v32 = vld [vmem:[#allocation11 + $0x298] sm:$0xf0] }
 0x172   :  { %3058 = vmatpush.bf16.msrb.mxu1 %v7203_v1  ;;  %3094 = vmatpush.bf16.msrb.mxu0 %v7279_v28  ;;  %v9063_v1 = vld [vmem:[#allocation11 + $0x9c] sm:$0xf]  ;;  %v7471_v5 = vor.u32 %v9165_v56, %v7468_v58  ;;  %v7547_v28 = vor.u32 %v9187_v6, %v7546_v0  ;;  %v7399_v56 = vor.u32 %v9147_v40, %v7396_v42  ;;  %v9141_v58 = vld [vmem:[#allocation11 + $0x30c] sm:$0xf]  ;;  %v9130_v0 = vld [vmem:[#allocation11 + $0x2b4] sm:$0xf] }
 0x173   :  { %v7063_v12 = vor.u32 %v9063_v1, %v7060_v3  ;;  %v7356_v1 = vld [vmem:[#allocation11 + $0x2f8] sm:$0xf0]  ;;  %v7355_v8 = vor.u32 %v9139_v48, %v7354_v47  ;;  %v7332_v6 = vld [vmem:[#allocation11 + $0x2c8] sm:$0xf0]  ;;  %v9124_v9 = vld [vmem:[#allocation11 + $0x284] sm:$0xf] }
 0x174   :  { %3033 = vmatpush.bf16.msrb.mxu3 %v7367_v57  ;;  %v7444_v57 = vld [vmem:[#allocation11 + $0x3b0] sm:$0xf0]  ;;  %v7426_v42 = vld [vmem:[#allocation11 + $0x370] sm:$0xf]  ;;  %v7311_v47 = vor.u32 %v9124_v9, %v7308_v32  ;;  %v9052_v32 = vld [vmem:[#allocation11 + $0x44] sm:$0xf] }
 0x175   :  { %3072 = vmatpush.bf16.msrb.mxu2 %v7371_v18  ;;  %v7180_v18 = vld [vmem:[#allocation11 + $0x1a0] sm:$0xf0]  ;;  %v9118_v48 = vld [vmem:[#allocation11 + $0x254] sm:$0xf] }
 0x176   :  { %3059 = vmatpush.bf16.msrb.mxu1 %v7179_v21  ;;  %3095 = vmatpush.bf16.msrb.mxu0 %v7255_v44  ;;  %v10142_v20 = vpop.f32.mrf.mxu1  ;;  %v7447_v21 = vor.u32 %v9159_v13, %v7444_v57  ;;  %v7015_v44 = vor.u32 %v9051_v2, %v7012_v29  ;;  %v7474_v57 = vld [vmem:[#allocation11 + $0x3d0] sm:$0xf]  ;;  %v9127_v2 = vld [vmem:[#allocation11 + $0x294] sm:$0xf0] }
 0x177   :  { %3034 = vmatmul.bf16.vlgmr.msrb.gmra.mxu3 %v10117_v53 }
 0x178   :  { %3078 = vmatpush.bf16.msra.mxu3 %v7159_v15  ;;  %3073 = vmatmul.bf16.vlgmr.msrb.gmra.mxu2 %v10117_v53  ;;  %v9093_v15 = vld [vmem:[#allocation11 + $0x18c] sm:$0xf] }
 0x179   :  { %3117 = vmatpush.bf16.msra.mxu2 %v7163_v22  ;;  %3060 = vmatmul.bf16.vlgmr.msrb.gmra.mxu1 %v10123_v30  ;;  %v7042_v22 = vld [vmem:[#allocation11 + $0x70] sm:$0xf]  ;;  %v7183_v25 = vor.u32 %v9093_v15, %v7180_v18  ;;  %v7375_v15 = vor.u32 %v9141_v58, %v7372_v61  ;;  %v7359_v18 = vor.u32 %v9136_v63, %v7356_v1  ;;  %v7402_v58 = vld [vmem:[#allocation11 + $0x340] sm:$0xf]  ;;  %v9115_v61 = vld [vmem:[#allocation11 + $0x234] sm:$0xf0] }
 0x17a   :  { %3104 = vmatpush.bf16.msra.mxu1 %v7543_v36  ;;  %3096 = vmatpush.bf16.msrb.mxu0 %v7231_v59  ;;  %v9153_v36 = vld [vmem:[#allocation11 + $0x36c] sm:$0xf]  ;;  %v7043_v31 = vor.u32 %v9061_v23, %v7042_v22  ;;  %v6994_v59 = vld [vmem:[#allocation11 + $0x10] sm:$0xf]  ;;  %v9082_v22 = vld [vmem:[#allocation11 + $0x134] sm:$0xf] }
 0x17b   :  { %v10146_v38 = vpop.f32.mrf.mxu2  ;;  %v7140_v23 = vld [vmem:[#allocation11 + $0x148] sm:$0xf0] }
 0x17c   :  { %3079 = vmatpush.bf16.msra.mxu3 %v7135_v51  ;;  %v10144_v51 = vpop.f32.mrf.mxu3 }
 0x17d   :  { %3118 = vmatpush.bf16.msra.mxu2 %v7139_v33  ;;  %v7423_v33 = vor.u32 %v9153_v36, %v7420_v24  ;;  %v7450_v24 = vld [vmem:[#allocation11 + $0x3a0] sm:$0xf] }
 0x17e   :  { %3105 = vmatpush.bf16.msra.mxu1 %v7519_v34  ;;  %3097 = vmatpush.bf16.msrb.mxu0 %v7207_v11  ;;  %v7018_v34 = vld [vmem:[#allocation11 + $0x40] sm:$0xf]  ;;  %v1971_v55 = vpop.f32.mrf.mxu1  ;;  %v9169_v11 = vld [vmem:[#allocation11 + $0x3e4] sm:$0xf0] }
 0x17f   :  { %v7092_v55 = vld [vmem:[#allocation11 + $0xe8] sm:$0xf0] }
 0x180   :  { %3080 = vmatpush.bf16.msra.mxu3 %v7111_v45  ;;  %v9045_v45 = vld [vmem:[#allocation11 + $0xc] sm:$0xf] }
 0x181   :  { %3119 = vmatpush.bf16.msra.mxu2 %v7115_v49  ;;  %v7019_v49 = vor.u32 %v9055_v37, %v7018_v34  ;;  %v6991_v3 = vor.u32 %v9045_v45, %v6988_v46  ;;  %v9076_v34 = vld [vmem:[#allocation11 + $0x104] sm:$0xf]  ;;  %v7116_v37 = vld [vmem:[#allocation11 + $0x118] sm:$0xf0]  ;;  %v7282_v45 = vld [vmem:[#allocation11 + $0x250] sm:$0xf] }
 0x182   :  { %3106 = vmatpush.bf16.msra.mxu1 %v7495_v50  ;;  %3098 = vmatpush.bf16.msrb.mxu0 %v7183_v25  ;;  %v7498_v50 = vld [vmem:[#allocation11 + $0x400] sm:$0xf]  ;;  %v9163_v25 = vld [vmem:[#allocation11 + $0x3b4] sm:$0xf0]  ;;  %v10150_v29 = vpop.f32.mrf.mxu0  ;;  %v9121_v46 = vld [vmem:[#allocation11 + $0x264] sm:$0xf0] }
 0x183   :  { %v1984_v41 = vpop.f32.mrf.mxu2 }
 0x184   :  { %3081 = vmatpush.bf16.msra.mxu3 %v7087_v60  ;;  %v9049_v60 = vld [vmem:[#allocation11 + $0x24] sm:$0xf0]  ;;  %v1945_v10 = vpop.f32.mrf.mxu3 }
 0x185   :  { %3120 = vmatpush.bf16.msra.mxu2 %v7091_v4  ;;  %3099 = vmatmul.bf16.vlgmr.msrb.gmra.mxu0 %v10123_v30  ;;  %v7499_v4 = vor.u32 %v9175_v52, %v7498_v50  ;;  %v6995_v13 = vor.u32 %v9049_v60, %v6994_v59  ;;  %v9070_v52 = vld [vmem:[#allocation11 + $0xd4] sm:$0xf]  ;;  %v9151_v59 = vld [vmem:[#allocation11 + $0x354] sm:$0xf0]  ;;  %v7258_v60 = vld [vmem:[#allocation11 + $0x220] sm:$0xf] }
 0x186   :  { %3107 = vmatpush.bf16.msra.mxu1 %v7471_v5  ;;  %3143 = vmatpush.bf16.msra.mxu0 %v7547_v28  ;;  %v9088_v5 = vld [vmem:[#allocation11 + $0x164] sm:$0xf]  ;;  %v7335_v28 = vor.u32 %v9130_v0, %v7332_v6  ;;  %v7095_v1 = vor.u32 %v9070_v52, %v7092_v55  ;;  %v7068_v10 = vld [vmem:[#allocation11 + $0xb8] sm:$0xf0]  ;;  %v7236_v0 = vld [vmem:[#allocation11 + $0x208] sm:$0xf0] }
 0x187   :  { %v479_v55 = vperm.slane %v10130_v27, 4 }
 0x188   :  { %3082 = vmatpush.bf16.msra.mxu3 %v7063_v12  ;;  %v7330_v12 = vld [vmem:[#allocation11 + $0x2b0] sm:$0xf] }
 0x189   :  { %3121 = vmatpush.bf16.msra.mxu2 %v7067_v19  ;;  %v7167_v19 = vor.u32 %v9088_v5, %v7164_v7  ;;  %v7331_v36 = vor.u32 %v9133_v35, %v7330_v12  ;;  %v7403_v7 = vor.u32 %v9151_v59, %v7402_v58  ;;  %v7234_v12 = vld [vmem:[#allocation11 + $0x1f0] sm:$0xf]  ;;  %v9109_v35 = vld [vmem:[#allocation11 + $0x204] sm:$0xf0] }
 0x18a   :  { %3108 = vmatpush.bf16.msra.mxu1 %v7447_v21  ;;  %3144 = vmatpush.bf16.msra.mxu0 %v7523_v62  ;;  %v7475_v21 = vor.u32 %v9169_v11, %v7474_v57  ;;  %v7119_v62 = vor.u32 %v9076_v34, %v7116_v37  ;;  %v2010_v5 = vpop.f32.mrf.mxu0  ;;  %v7378_v57 = vld [vmem:[#allocation11 + $0x310] sm:$0xf]  ;;  %v9145_v11 = vld [vmem:[#allocation11 + $0x324] sm:$0xf0] }
 0x18b   :  { %v7379_v6 = vor.u32 %v9145_v11, %v7378_v57  ;;  %v7186_v37 = vld [vmem:[#allocation11 + $0x190] sm:$0xf]  ;;  %v9172_v5 = vld [vmem:[#allocation11 + $0x404] sm:$0xf]  ;;  %v9166_v57 = vld [vmem:[#allocation11 + $0x3d4] sm:$0xf] }
 0x18c   :  { %3083 = vmatpush.bf16.msra.mxu3 %v7039_v26  ;;  %v7306_v26 = vld [vmem:[#allocation11 + $0x280] sm:$0xf]  ;;  %v7476_v11 = vld [vmem:[#allocation11 + $0x3e8] sm:$0xf0] }
 0x18d   :  { %3122 = vmatpush.bf16.msra.mxu2 %v7043_v31  ;;  %v7143_v31 = vor.u32 %v9082_v22, %v7140_v23  ;;  %v7307_v40 = vor.u32 %v9127_v2, %v7306_v26  ;;  %v7044_v22 = vld [vmem:[#allocation11 + $0x88] sm:$0xf0]  ;;  %v7235_v23 = vor.u32 %v9109_v35, %v7234_v12  ;;  %v7479_v35 = vor.u32 %v9166_v57, %v7476_v11 }
 0x18e   :  { %3109 = vmatpush.bf16.msra.mxu1 %v7423_v33  ;;  %3145 = vmatpush.bf16.msra.mxu0 %v7499_v4  ;;  %v7451_v33 = vor.u32 %v9163_v25, %v7450_v24  ;;  %v7260_v4 = vld [vmem:[#allocation11 + $0x238] sm:$0xf0]  ;;  %v7210_v24 = vld [vmem:[#allocation11 + $0x1c0] sm:$0xf]  ;;  %v9103_v25 = vld [vmem:[#allocation11 + $0x1d4] sm:$0xf0] }
 0x18f   :  { %v7211_v34 = vor.u32 %v9103_v25, %v7210_v24 }
 0x190   :  { %3084 = vmatpush.bf16.msra.mxu3 %v7015_v44  ;;  %v9157_v44 = vld [vmem:[#allocation11 + $0x384] sm:$0xf0] }
 0x191   :  { %3123 = vmatpush.bf16.msra.mxu2 %v7019_v49  ;;  %v7284_v49 = vld [vmem:[#allocation11 + $0x268] sm:$0xf0]  ;;  %v7427_v50 = vor.u32 %v9157_v44, %v7426_v42  ;;  %v9184_v42 = vld [vmem:[#allocation11 + $0x464] sm:$0xf] }
 0x192   :  { %3110 = vmatpush.bf16.msra.mxu1 %v7399_v56  ;;  %3146 = vmatpush.bf16.msra.mxu0 %v7475_v21  ;;  %v7283_v56 = vor.u32 %v9121_v46, %v7282_v45  ;;  %v7287_v63 = vor.u32 %v9118_v48, %v7284_v49  ;;  %v9058_v21 = vld [vmem:[#allocation11 + $0x74] sm:$0xf]  ;;  %v7548_v46 = vld [vmem:[#allocation11 + $0x478] sm:$0xf0]  ;;  %v7188_v48 = vld [vmem:[#allocation11 + $0x1a8] sm:$0xf0] }
 0x193   :  { %v7047_v2 = vor.u32 %v9058_v21, %v7044_v22  ;;  %v9046_v49 = vld [vmem:[#allocation11 + $0x14] sm:$0xf]  ;;  %v7428_v21 = vld [vmem:[#allocation11 + $0x388] sm:$0xf0]  ;;  %v3196_v22 = vmul.f32 %v10105_v17, %v10105_v17 }
 0x194   :  { %3085 = vmatpush.bf16.msra.mxu3 %v6991_v3  ;;  %v9112_v3 = vld [vmem:[#allocation11 + $0x224] sm:$0xf] }
 0x195   :  { %3124 = vmatpush.bf16.msra.mxu2 %v6995_v13  ;;  %v7259_v13 = vor.u32 %v9115_v61, %v7258_v60  ;;  %v9178_v60 = vld [vmem:[#allocation11 + $0x434] sm:$0xf]  ;;  %v7524_v61 = vld [vmem:[#allocation11 + $0x448] sm:$0xf0] }
 0x196   :  { %3111 = vmatpush.bf16.msra.mxu1 %v7375_v15  ;;  %3147 = vmatpush.bf16.msra.mxu0 %v7451_v33  ;;  %v10154_v15 = vpop.f32.mrf.mxu1  ;;  %v7020_v33 = vld [vmem:[#allocation11 + $0x58] sm:$0xf0] }
 0x197   :  { %3086 = vmatmul.bf16.vlgmr.msra.gmra.mxu3 %v10108_v43 }
 0x198   :  { %3130 = vmatpush.bf16.msrb.mxu3 %v7355_v8  ;;  %3125 = vmatmul.bf16.vlgmr.msra.gmra.mxu2 %v10108_v43  ;;  %v9064_v8 = vld [vmem:[#allocation11 + $0xa4] sm:$0xf] }
 0x199   :  { %3169 = vmatpush.bf16.msrb.mxu2 %v7359_v18  ;;  %3112 = vmatmul.bf16.vlgmr.msra.gmra.mxu1 %v10117_v53  ;;  %v7263_v18 = vor.u32 %v9112_v3, %v7260_v4  ;;  %v7071_v41 = vor.u32 %v9064_v8, %v7068_v10  ;;  %v1957_v3 = vadd.f32 %v10138_v39, %v479_v55  ;;  %v480_v39 = vperm.slane %v10130_v27, 5 }
 0x19a   :  { %3156 = vmatpush.bf16.msrb.mxu1 %v7167_v19  ;;  %3148 = vmatpush.bf16.msra.mxu0 %v7427_v50  ;;  %v9106_v19 = vld [vmem:[#allocation11 + $0x1f4] sm:$0xf]  ;;  %v6996_v50 = vld [vmem:[#allocation11 + $0x28] sm:$0xf0]  ;;  %v7527_v4 = vor.u32 %v9178_v60, %v7524_v61  ;;  %v10175_v27 = vadd.f32 %v10144_v51, %v10135_v54 }
 0x19b   :  { %v7239_v26 = vor.u32 %v9106_v19, %v7236_v0  ;;  %v10158_v9 = vpop.f32.mrf.mxu2  ;;  %v1970_v10 = vadd.f32 %v10142_v20, %v1957_v3  ;;  %v2022_v19 = vadd.f32 %v10154_v15, %v480_v39  ;;  %v3195_v15 = vmul.f32 %v10093_v14, %v10093_v14 }
 0x19c   :  { %3131 = vmatpush.bf16.msrb.mxu3 %v7331_v36  ;;  %v10156_v36 = vpop.f32.mrf.mxu3  ;;  %v3198_v54 = vmul.f32 %v10175_v27, %v10175_v27 }
 0x19d   :  { %3170 = vmatpush.bf16.msrb.mxu2 %v7335_v28  ;;  %v9100_v28 = vld [vmem:[#allocation11 + $0x1c4] sm:$0xf]  ;;  %v1983_v12 = vadd.f32 %v10146_v38, %v1970_v10  ;;  %v2035_v38 = vadd.f32 %v10158_v9, %v2022_v19 }
 0x19e   :  { %3157 = vmatpush.bf16.msrb.mxu1 %v7143_v31  ;;  %3149 = vmatpush.bf16.msra.mxu0 %v7403_v7  ;;  %v7212_v31 = vld [vmem:[#allocation11 + $0x1d8] sm:$0xf0]  ;;  %v2023_v44 = vpop.f32.mrf.mxu1 }
 0x19f   :  { %v7215_v45 = vor.u32 %v9100_v28, %v7212_v31  ;;  %v7500_v7 = vld [vmem:[#allocation11 + $0x418] sm:$0xf0]  ;;  %v3201_v28 = vadd.f32 %v3196_v22, %v3195_v15 }
 0x1a0   :  { %3132 = vmatpush.bf16.msrb.mxu3 %v7307_v40  ;;  %v9097_v40 = vld [vmem:[#allocation11 + $0x1a4] sm:$0xf0] }
 0x1a1   :  { %3171 = vmatpush.bf16.msrb.mxu2 %v7311_v47  ;;  %v7023_v47 = vor.u32 %v9052_v32, %v7020_v33  ;;  %v7187_v52 = vor.u32 %v9097_v40, %v7186_v37  ;;  %v7380_v37 = vld [vmem:[#allocation11 + $0x328] sm:$0xf0] }
 0x1a2   :  { %3158 = vmatpush.bf16.msrb.mxu1 %v7119_v62  ;;  %3150 = vmatpush.bf16.msra.mxu0 %v7379_v6  ;;  %v9094_v62 = vld [vmem:[#allocation11 + $0x194] sm:$0xf]  ;;  %v2060_v8 = vpop.f32.mrf.mxu0 }
 0x1a3   :  { %v7191_v59 = vor.u32 %v9094_v62, %v7188_v48  ;;  %v9154_v6 = vld [vmem:[#allocation11 + $0x374] sm:$0xf] }
 0x1a4   :  { %3133 = vmatpush.bf16.msrb.mxu3 %v7283_v56  ;;  %v7551_v56 = vor.u32 %v9184_v42, %v7548_v46  ;;  %v1997_v58 = vpop.f32.mrf.mxu3  ;;  %v7431_v24 = vor.u32 %v9154_v6, %v7428_v21 }
 0x1a5   :  { %3172 = vmatpush.bf16.msrb.mxu2 %v7287_v63  ;;  %3151 = vmatmul.bf16.vlgmr.msra.gmra.mxu0 %v10117_v53  ;;  %v6999_v63 = vor.u32 %v9046_v49, %v6996_v50 }
 0x1a6   :  { %3159 = vmatpush.bf16.msrb.mxu1 %v7095_v1  ;;  %v2036_v1 = vpop.f32.mrf.mxu2 }
 0x1a8   :  { %3134 = vmatpush.bf16.msrb.mxu3 %v7259_v13  ;;  %v7503_v13 = vor.u32 %v9172_v5, %v7500_v7 }
 0x1a9   :  { %3173 = vmatpush.bf16.msrb.mxu2 %v7263_v18  ;;  %v9160_v18 = vld [vmem:[#allocation11 + $0x3a4] sm:$0xf] }
 0x1aa   :  { %3160 = vmatpush.bf16.msrb.mxu1 %v7071_v41  ;;  %v7452_v41 = vld [vmem:[#allocation11 + $0x3b8] sm:$0xf0]  ;;  %v2062_v0 = vpop.f32.mrf.mxu0 }
 0x1ab   :  { %v7455_v20 = vor.u32 %v9160_v18, %v7452_v41 }
 0x1ac   :  { %3135 = vmatpush.bf16.msrb.mxu3 %v7235_v23  ;;  %v3197_v23 = vmul.f32 %v10121_v16, %v10121_v16 }
 0x1ad   :  { %3174 = vmatpush.bf16.msrb.mxu2 %v7239_v26  ;;  %v9148_v26 = vld [vmem:[#allocation11 + $0x344] sm:$0xf] }
 0x1ae   :  { %3161 = vmatpush.bf16.msrb.mxu1 %v7047_v2  ;;  %v7404_v2 = vld [vmem:[#allocation11 + $0x358] sm:$0xf0]  ;;  %v3202_v9 = vadd.f32 %v3201_v28, %v3197_v23 }
 0x1b0   :  { %3136 = vmatpush.bf16.msrb.mxu3 %v7211_v34  ;;  %v7407_v34 = vor.u32 %v9148_v26, %v7404_v2  ;;  %v3203_v44 = vadd.f32 %v3202_v9, %v3198_v54  ;;  %v7914_v9 = vld [vmem:[#allocation14 + $0x2d0] sm:$0xf] }
 0x1b1   :  { %3175 = vmatpush.bf16.msrb.mxu2 %v7215_v45 }
 0x1b2   :  { %3162 = vmatpush.bf16.msrb.mxu1 %v7023_v47 }
 0x1b4   :  { %3137 = vmatpush.bf16.msrb.mxu3 %v7187_v52  ;;  %v10194_v52 = vld [vmem:[#allocation12] sm:$0x3f] }
 0x1b5   :  { %3176 = vmatpush.bf16.msrb.mxu2 %v7191_v59  ;;  %v2229_v55 = vperm.slane %v10194_v52, 0  ;;  %v2230_v58 = vperm.slane %v10194_v52, 1  ;;  %v2231_v26 = vperm.slane %v10194_v52, 2  ;;  %v2232_v2 = vperm.slane %v10194_v52, 3 }
 0x1b6   :  { %3163 = vmatpush.bf16.msrb.mxu1 %v6999_v63  ;;  %v2233_v28 = vperm.slane %v10194_v52, 4 }
 0x1b7   :  { %3138 = vmatmul.bf16.vlgmr.msrb.gmra.mxu3 %v10123_v30 }
 0x1b8   :  { %3182 = vmatpush.bf16.msra.mxu3 %v7551_v56  ;;  %3177 = vmatmul.bf16.vlgmr.msrb.gmra.mxu2 %v10123_v30  ;;  %v1996_v30 = vadd.f32 %v10156_v36, %v1983_v12 }
 0x1b9   :  { %3164 = vmatmul.bf16.vlgmr.msrb.gmra.mxu1 %v10108_v43  ;;  %v2073_v43 = vpop.f32.mrf.mxu1 }
 0x1ba   :  { %v10183_v36 = vadd.f32 %v10150_v29, %v1996_v30  ;;  %v2047_v25 = vpop.f32.mrf.mxu3  ;;  %v9142_v29 = vld [vmem:[#allocation11 + $0x314] sm:$0xf] }
 0x1bb   :  { %v2048_v51 = vadd.f32 %v2047_v25, %v2035_v38  ;;  %v2970_v31 = vpop.f32.mrf.mxu2  ;;  %v7383_v45 = vor.u32 %v9142_v29, %v7380_v37  ;;  %v9329_v29 = vld [vmem:[#allocation14 + $0x464] sm:$0xf0] }
 0x1bc   :  { %3183 = vmatpush.bf16.msra.mxu3 %v7527_v4  ;;  %v3199_v32 = vmul.f32 %v10183_v36, %v10183_v36  ;;  %v2971_v60 = vadd.f32 %v2970_v31, %v2229_v55  ;;  %v9233_v31 = vld [vmem:[#allocation14 + $0x164] sm:$0xf0]  ;;  %v9275_v55 = vld [vmem:[#allocation14 + $0x2b4] sm:$0xf0] }
 0x1bd   :  { %v2061_v33 = vadd.f32 %v2060_v8, %v2048_v51  ;;  %v7722_v51 = vld [vmem:[#allocation14 + $0x150] sm:$0xf] }
 0x1be   :  { %v3204_v47 = vadd.f32 %v3203_v44, %v3199_v32  ;;  %v7723_v32 = vor.u32 %v9233_v31, %v7722_v51  ;;  %v8298_v44 = vld [vmem:[#allocation14 + $0x5d0] sm:$0xf]  ;;  %v7842_v51 = vld [vmem:[#allocation14 + $0x240] sm:$0xf] }
 0x1bf   :  { %v10189_v42 = vadd.f32 %v2073_v43, %v2061_v33  ;;  %v9281_v33 = vld [vmem:[#allocation14 + $0x2e4] sm:$0xf0] }
 0x1c0   :  { %3184 = vmatpush.bf16.msra.mxu3 %v7503_v13  ;;  %v7915_v37 = vor.u32 %v9281_v33, %v7914_v9  ;;  %5013 = vmatpush.bf16.msrb.mxu0 %v7723_v32  ;;  %v9263_v9 = vld [vmem:[#allocation14 + $0x254] sm:$0xf0]  ;;  %v8034_v32 = vld [vmem:[#allocation14 + $0x3c0] sm:$0xf] }
 0x1c1   :  { %v2075_v40 = vpop.f32.mrf.mxu1  ;;  %v3200_v46 = vmul.f32 %v10189_v42, %v10189_v42  ;;  %v9311_v33 = vld [vmem:[#allocation14 + $0x3d4] sm:$0xf0] }
 0x1c2   :  { %v2049_v62 = vpop.f32.mrf.mxu3  ;;  %v2996_v50 = vpop.f32.mrf.mxu0  ;;  %5027 = vmatpush.bf16.msra.mxu1 %v7915_v37 }
 0x1c3   :  { %v3205_v48 = vadd.f32 %v3204_v47, %v3200_v46  ;;  %v2972_v49 = vpop.f32.mrf.mxu2  ;;  %v7698_v46 = vld [vmem:[#allocation14 + $0x120] sm:$0xf] }
 0x1c4   :  { %3185 = vmatpush.bf16.msra.mxu3 %v7479_v35  ;;  %v9227_v49 = vld [vmem:[#allocation14 + $0x134] sm:$0xf0] }
 0x1c5   :  { %3206 = vadd.xlane.f32.xlu0 %v3205_v48 }
 0x1c8   :  { %3186 = vmatpush.bf16.msra.mxu3 %v7455_v20 }
 0x1ca   :  { %v2998_v56 = vpop.f32.mrf.mxu0 }
 0x1cc   :  { %3187 = vmatpush.bf16.msra.mxu3 %v7431_v24 }
 0x1d0   :  { %3188 = vmatpush.bf16.msra.mxu3 %v7407_v34  ;;  %v8106_v34 = vld [vmem:[#allocation14 + $0x450] sm:$0xf] }
 0x1d1   :  { %v8107_v40 = vor.u32 %v9329_v29, %v8106_v34  ;;  %v9359_v34 = vld [vmem:[#allocation14 + $0x554] sm:$0xf0] }
 0x1d3   :  { %5041 = vmatpush.bf16.msra.mxu2 %v8107_v40  ;;  %v2234_v40 = vperm.slane %v10194_v52, 5  ;;  %v9257_v52 = vld [vmem:[#allocation14 + $0x224] sm:$0xf0] }
 0x1d4   :  { %3189 = vmatpush.bf16.msra.mxu3 %v7383_v45  ;;  %v9377_v45 = vld [vmem:[#allocation14 + $0x5e4] sm:$0xf0] }
 0x1d5   :  { %v8299_v48 = vor.u32 %v9377_v45, %v8298_v44 }
 0x1d6   :  { %v3009_v59 = vpop.f32.mrf.mxu1 }
 0x1d7   :  { %3190 = vmatmul.bf16.vlgmr.msra.gmra.mxu3 %v10117_v53  ;;  %v3010_v61 = vadd.f32 %v3009_v59, %v2230_v58  ;;  %v7699_v58 = vor.u32 %v9227_v49, %v7698_v46  ;;  %v8010_v49 = vld [vmem:[#allocation14 + $0x390] sm:$0xf] }
 0x1d8   :  { %5055 = vmatpush.bf16.msrb.mxu3 %v8299_v48  ;;  %v7818_v48 = vld [vmem:[#allocation14 + $0x210] sm:$0xf] }
 0x1d9   :  { %5014 = vmatpush.bf16.msrb.mxu0 %v7699_v58  ;;  %v9353_v58 = vld [vmem:[#allocation14 + $0x524] sm:$0xf0] }
 0x1da   :  { %v2983_v63 = vpop.f32.mrf.mxu3 }
 0x1db   :  { %v2984_v1 = vadd.f32 %v2983_v63, %v2971_v60  ;;  %v3022_v3 = vpop.f32.mrf.mxu2  ;;  %v8082_v60 = vld [vmem:[#allocation14 + $0x420] sm:$0xf] }
 0x1dc   :  { %v3023_v4 = vadd.f32 %v3022_v3, %v3010_v61  ;;  %v9323_v61 = vld [vmem:[#allocation14 + $0x434] sm:$0xf0]  ;;  %v8274_v63 = vld [vmem:[#allocation14 + $0x5a0] sm:$0xf] }
 0x1dd   :  { %v10198_v5 = vadd.f32 %v2996_v50, %v2984_v1  ;;  %v7890_v50 = vld [vmem:[#allocation14 + $0x2a0] sm:$0xf]  ;;  %v8083_v3 = vor.u32 %v9323_v61, %v8082_v60 }
 0x1de   :  { %v3011_v7 = vpop.f32.mrf.mxu1  ;;  %v7891_v59 = vor.u32 %v9275_v55, %v7890_v50  ;;  %v9305_v50 = vld [vmem:[#allocation14 + $0x3a4] sm:$0xf0] }
 0x1df   :  { %v7674_v7 = vld [vmem:[#allocation14 + $0xf0] sm:$0xf]  ;;  %5042 = vmatpush.bf16.msra.mxu2 %v8083_v3 }
 0x1e0   :  { %5028 = vmatpush.bf16.msra.mxu1 %v7891_v59 }
 0x1e2   :  { %v2985_v8 = vpop.f32.mrf.mxu3  ;;  %v3048_v10 = vpop.f32.mrf.mxu0 }
 0x1e3   :  { %v3024_v53 = vpop.f32.mrf.mxu2  ;;  %v3049_v47 = vadd.f32 %v3048_v10, %v2231_v26  ;;  %v9221_v8 = vld [vmem:[#allocation14 + $0x104] sm:$0xf0]  ;;  %v7866_v10 = vld [vmem:[#allocation14 + $0x270] sm:$0xf]  ;;  %v7650_v26 = vld [vmem:[#allocation14 + $0xc0] sm:$0xf] }
 0x1ea   :  { %v3050_v13 = vpop.f32.mrf.mxu0 }
 0x1eb   :  { %v9269_v13 = vld [vmem:[#allocation14 + $0x284] sm:$0xf0] }
 0x1f6   :  { %v3061_v57 = vpop.f32.mrf.mxu1 }
 0x1fa   :  { %v3035_v11 = vpop.f32.mrf.mxu3 }
 0x1fb   :  { %v10200_v39 = vadd.f32 %v3035_v11, %v3023_v4  ;;  %v10202_v12 = vpop.f32.mrf.mxu2  ;;  %v9371_v4 = vld [vmem:[#allocation14 + $0x5b4] sm:$0xf0]  ;;  %v8058_v11 = vld [vmem:[#allocation14 + $0x3f0] sm:$0xf] }
 0x1fc   :  { %v8275_v53 = vor.u32 %v9371_v4, %v8274_v63  ;;  %v7819_v4 = vor.u32 %v9257_v52, %v7818_v48 }
 0x1fd   :  { %v3225_v46 = vmul.f32 %v10200_v39, %v10200_v39 }
 0x1fe   :  { %v3063_v35 = vpop.f32.mrf.mxu1  ;;  %5056 = vmatpush.bf16.msrb.mxu3 %v8275_v53  ;;  %v9203_v53 = vld [vmem:[#allocation14 + $0x74] sm:$0xf0] }
 0x1ff   :  { %v3062_v35 = vadd.f32 %v3061_v57, %v3049_v47  ;;  %v3224_v57 = vmul.f32 %v10198_v5, %v10198_v5  ;;  %v7843_v47 = vor.u32 %v9263_v9, %v7842_v51  ;;  %v7770_v51 = vld [vmem:[#allocation14 + $0x1b0] sm:$0xf] }
 0x201   :  { %v10228_v29 = vadd.f32 %v10202_v12, %v3062_v35  ;;  %v3230_v3 = vadd.f32 %v3225_v46, %v3224_v57  ;;  %v9251_v35 = vld [vmem:[#allocation14 + $0x1f4] sm:$0xf0] }
 0x202   :  { %v3037_v18 = vpop.f32.mrf.mxu3  ;;  %v10204_v19 = vpop.f32.mrf.mxu0 }
 0x203   :  { %v3076_v41 = vpop.f32.mrf.mxu2  ;;  %v3226_v59 = vmul.f32 %v10228_v29, %v10228_v29 }
 0x204   :  { %v7675_v41 = vor.u32 %v9221_v8, %v7674_v7  ;;  %v8011_v7 = vor.u32 %v9305_v50, %v8010_v49  ;;  %v7602_v8 = vld [vmem:[#allocation14 + $0x60] sm:$0xf]  ;;  %v9287_v50 = vld [vmem:[#allocation14 + $0x314] sm:$0xf0] }
 0x206   :  { %5015 = vmatpush.bf16.msrb.mxu0 %v7675_v41  ;;  %v9299_v41 = vld [vmem:[#allocation14 + $0x374] sm:$0xf0] }
 0x20a   :  { %v3102_v0 = vpop.f32.mrf.mxu0 }
 0x20b   :  { %v9317_v0 = vld [vmem:[#allocation14 + $0x404] sm:$0xf0] }
 0x216   :  { %v10206_v30 = vpop.f32.mrf.mxu1 }
 0x21a   :  { %v3087_v20 = vpop.f32.mrf.mxu3 }
 0x21b   :  { %v10208_v6 = vpop.f32.mrf.mxu2  ;;  %v3088_v18 = vadd.f32 %v3087_v20, %v2232_v2  ;;  %v8226_v2 = vld [vmem:[#allocation14 + $0x540] sm:$0xf] }
 0x21c   :  { %v3127_v20 = vadd.f32 %v10208_v6, %v2233_v28  ;;  %v8035_v6 = vor.u32 %v9311_v33, %v8034_v32  ;;  %v7626_v28 = vld [vmem:[#allocation14 + $0x90] sm:$0xf] }
 0x21d   :  { %v3101_v37 = vadd.f32 %v10204_v19, %v3088_v18  ;;  %v8227_v19 = vor.u32 %v9359_v34, %v8226_v2  ;;  %v9293_v2 = vld [vmem:[#allocation14 + $0x344] sm:$0xf0]  ;;  %v8154_v34 = vld [vmem:[#allocation14 + $0x4b0] sm:$0xf] }
 0x21e   :  { %v3115_v21 = vpop.f32.mrf.mxu1 }
 0x21f   :  { %v8250_v21 = vld [vmem:[#allocation14 + $0x570] sm:$0xf]  ;;  %v10242_v60 = vadd.f32 %v10206_v30, %v3101_v37  ;;  %v7986_v30 = vld [vmem:[#allocation14 + $0x360] sm:$0xf]  ;;  %v9341_v37 = vld [vmem:[#allocation14 + $0x4c4] sm:$0xf0] }
 0x220   :  { %v7987_v33 = vor.u32 %v9299_v41, %v7986_v30  ;;  %v8466_v41 = vld [vmem:[#allocation14 + $0x720] sm:$0xf] }
 0x222   :  { %v3089_v43 = vpop.f32.mrf.mxu3  ;;  %v10210_v38 = vpop.f32.mrf.mxu0 }
 0x223   :  { %v3128_v22 = vpop.f32.mrf.mxu2  ;;  %v9365_v43 = vld [vmem:[#allocation14 + $0x584] sm:$0xf0] }
 0x224   :  { %v7867_v22 = vor.u32 %v9269_v13, %v7866_v10  ;;  %v8251_v31 = vor.u32 %v9365_v43, %v8250_v21  ;;  %v9347_v21 = vld [vmem:[#allocation14 + $0x4f4] sm:$0xf0]  ;;  %v3227_v43 = vmul.f32 %v10242_v60, %v10242_v60 }
 0x226   :  { %5029 = vmatpush.bf16.msra.mxu1 %v7867_v22  ;;  %5057 = vmatpush.bf16.msrb.mxu3 %v8251_v31  ;;  %v9245_v31 = vld [vmem:[#allocation14 + $0x1c4] sm:$0xf0] }
 0x22a   :  { %v3154_v15 = vpop.f32.mrf.mxu0  ;;  %5030 = vmatpush.bf16.msra.mxu1 %v7843_v47  ;;  %5058 = vmatpush.bf16.msrb.mxu3 %v8227_v19 }
 0x22b   :  { %v8059_v15 = vor.u32 %v9317_v0, %v8058_v11  ;;  %v8178_v0 = vld [vmem:[#allocation14 + $0x4e0] sm:$0xf] }
 0x22c   :  { %v8179_v57 = vor.u32 %v9347_v21, %v8178_v0  ;;  %v9419_v0 = vld [vmem:[#allocation14 + $0x734] sm:$0xf0] }
 0x22d   :  { %5043 = vmatpush.bf16.msra.mxu2 %v8059_v15  ;;  %v7603_v15 = vor.u32 %v9203_v53, %v7602_v8  ;;  %v9230_v53 = vld [vmem:[#allocation14 + $0x154] sm:$0xf] }
 0x22e   :  { %5031 = vmatpush.bf16.msra.mxu1 %v7819_v4  ;;  %v9473_v4 = vld [vmem:[#allocation14 + $0x8e4] sm:$0xf0] }
 0x231   :  { %5044 = vmatpush.bf16.msra.mxu2 %v8035_v6  ;;  %v7771_v6 = vor.u32 %v9245_v31, %v7770_v51  ;;  %v8467_v51 = vor.u32 %v9419_v0, %v8466_v41  ;;  %v9272_v31 = vld [vmem:[#allocation14 + $0x2a4] sm:$0xf]  ;;  %v8370_v41 = vld [vmem:[#allocation14 + $0x660] sm:$0xf]  ;;  %v9395_v0 = vld [vmem:[#allocation14 + $0x674] sm:$0xf0] }
 0x235   :  { %5045 = vmatpush.bf16.msra.mxu2 %v8011_v7 }
 0x236   :  { %v10212_v23 = vpop.f32.mrf.mxu1 }
 0x237   :  { %v3166_v13 = vadd.f32 %v10212_v23, %v2234_v40  ;;  %v3231_v23 = vadd.f32 %v3230_v3, %v3226_v59  ;;  %v7554_v40 = vld [vmem:[#allocation14] sm:$0xf]  ;;  %v9335_v59 = vld [vmem:[#allocation14 + $0x494] sm:$0xf0]  ;;  %v8682_v3 = vld [vmem:[#allocation14 + $0x8d0] sm:$0xf] }
 0x238   :  { %v10221_v1 = vpop.xlane.xlu0 %3206  ;;  %v8683_v21 = vor.u32 %v9473_v4, %v8682_v3  ;;  %v8394_v4 = vld [vmem:[#allocation14 + $0x690] sm:$0xf] }
 0x239   :  { %9521 = vrsqrt.f32 %v10221_v1  ;;  %vm3214_vm1 = vweird.f32 %v10221_v1  ;;  %v3232_v46 = vadd.f32 %v3231_v23, %v3227_v43  ;;  %5046 = vmatpush.bf16.msra.mxu2 %v7987_v33  ;;  %v9224_v23 = vld [vmem:[#allocation14 + $0x124] sm:$0xf] }
 0x23a   :  { %v10214_v24 = vpop.f32.mrf.mxu3 }
 0x23b   :  { %v10216_v25 = vpop.f32.mrf.mxu2  ;;  %v3140_v55 = vadd.f32 %v10214_v24, %v3127_v20  ;;  %v7794_v24 = vld [vmem:[#allocation14 + $0x1e0] sm:$0xf]  ;;  %v7962_v20 = vld [vmem:[#allocation14 + $0x330] sm:$0xf] }
 0x23c   :  { %v3179_v32 = vadd.f32 %v10216_v25, %v3166_v13  ;;  %v9239_v25 = vld [vmem:[#allocation14 + $0x194] sm:$0xf0]  ;;  %v7963_v49 = vor.u32 %v9293_v2, %v7962_v20  ;;  %v9278_v13 = vld [vmem:[#allocation14 + $0x2d4] sm:$0xf]  ;;  %v8442_v20 = vld [vmem:[#allocation14 + $0x6f0] sm:$0xf] }
 0x23d   :  { %v10247_v18 = vadd.f32 %v10210_v38, %v3140_v55  ;;  %v9197_v38 = vld [vmem:[#allocation14 + $0x44] sm:$0xf0]  ;;  %v8130_v55 = vld [vmem:[#allocation14 + $0x480] sm:$0xf] }
 0x23e   :  { %v3167_v54 = vpop.f32.mrf.mxu1  ;;  %5047 = vmatpush.bf16.msra.mxu2 %v7963_v49  ;;  %v8131_v30 = vor.u32 %v9335_v59, %v8130_v55  ;;  %v9413_v2 = vld [vmem:[#allocation14 + $0x704] sm:$0xf0]  ;;  %v8610_v49 = vld [vmem:[#allocation14 + $0x840] sm:$0xf]  ;;  %v9212_v55 = vld [vmem:[#allocation14 + $0xc4] sm:$0xf] }
 0x23f   :  { %v9215_v54 = vld [vmem:[#allocation14 + $0xd4] sm:$0xf0]  ;;  %v10232_v45 = vpop.eup %9521 }
 0x240   :  { %v7651_v44 = vor.u32 %v9215_v54, %v7650_v26  ;;  %v3209_v12 = vmul.f32 %v10232_v45, %v10221_v1  ;;  %vm3215_vm0 = vweird.f32 %v10232_v45  ;;  %v7578_v26 = vld [vmem:[#allocation14 + $0x30] sm:$0xf]  ;;  %v7795_v54 = vor.u32 %v9251_v35, %v7794_v24  ;;  %v7724_v24 = vld [vmem:[#allocation14 + $0x168] sm:$0xf0] }
 0x241   :  { %vm3216_vm2 = vmor %vm3214_vm1, %vm3215_vm0  ;;  %v3228_v1 = vmul.f32 %v10247_v18, %v10247_v18  ;;  %v7579_v47 = vor.u32 %v9197_v38, %v7578_v26  ;;  %v7727_v43 = vor.u32 %v9230_v53, %v7724_v24  ;;  %v9449_v24 = vld [vmem:[#allocation14 + $0x824] sm:$0xf0] }
 0x242   :  { %v3141_v62 = vpop.f32.mrf.mxu3  ;;  %v3210_v61 = vmul.f32 %v10232_v45, %v3209_v12  ;;  %5016 = vmatpush.bf16.msrb.mxu0 %v7651_v44  ;;  %5032 = vmatpush.bf16.msra.mxu1 %v7795_v54  ;;  %v7700_v54 = vld [vmem:[#allocation14 + $0x138] sm:$0xf0] }
 0x243   :  { %v3180_v56 = vpop.f32.mrf.mxu2  ;;  %v9209_v62 = vld [vmem:[#allocation14 + $0xa4] sm:$0xf0]  ;;  %v7703_v33 = vor.u32 %v9224_v23, %v7700_v54 }
 0x244   :  { %v8202_v56 = vld [vmem:[#allocation14 + $0x510] sm:$0xf]  ;;  %v7627_v63 = vor.u32 %v9209_v62, %v7626_v28  ;;  %v3211_v10 = vmul.f32 0.5, %v3210_v61  ;;  %v9191_v28 = vld [vmem:[#allocation14 + $0x14] sm:$0xf0] }
 0x245   :  { %v8203_v11 = vor.u32 %v9353_v58, %v8202_v56  ;;  %v7746_v62 = vld [vmem:[#allocation14 + $0x180] sm:$0xf]  ;;  %v9425_v61 = vld [vmem:[#allocation14 + $0x764] sm:$0xf0]  ;;  %v7555_v8 = vor.u32 %v9191_v28, %v7554_v40  ;;  %v9218_v40 = vld [vmem:[#allocation14 + $0xf4] sm:$0xf] }
 0x246   :  { %v3212_v22 = vsub.f32 1.5, %v3211_v10  ;;  %5017 = vmatpush.bf16.msrb.mxu0 %v7627_v63  ;;  %v3233_v63 = vadd.f32 %v3232_v46, %v3228_v1  ;;  %5033 = vmatpush.bf16.msra.mxu1 %v7771_v6  ;;  %v8634_v1 = vld [vmem:[#allocation14 + $0x870] sm:$0xf]  ;;  %v9266_v6 = vld [vmem:[#allocation14 + $0x274] sm:$0xf] }
 0x247   :  { %5059 = vmatpush.bf16.msrb.mxu3 %v8203_v11  ;;  %v7916_v11 = vld [vmem:[#allocation14 + $0x2e8] sm:$0xf0] }
 0x248   :  { %v3213_v9 = vmul.f32 %v10232_v45, %v3212_v22  ;;  %v8658_v22 = vld [vmem:[#allocation14 + $0x8a0] sm:$0xf]  ;;  %v7919_v26 = vor.u32 %v9278_v13, %v7916_v11  ;;  %v7868_v28 = vld [vmem:[#allocation14 + $0x288] sm:$0xf0] }
 0x24a   :  { %v3217_v44 = vsel %vm3216_vm2, %v10232_v45, %v3213_v9  ;;  %5018 = vmatpush.bf16.msrb.mxu0 %v7603_v15  ;;  %v7938_v45 = vld [vmem:[#allocation14 + $0x300] sm:$0xf]  ;;  %v9467_v15 = vld [vmem:[#allocation14 + $0x8b4] sm:$0xf0]  ;;  %v7892_v9 = vld [vmem:[#allocation14 + $0x2b8] sm:$0xf0] }
 0x24b   :  { %v10261_v48 = vmul.f32 %v3217_v44, %v10093_v14  ;;  %v10264_v12 = vmul.f32 %v3217_v44, %v10105_v17  ;;  %v10267_v19 = vmul.f32 %v3217_v44, %v10121_v16  ;;  %v10270_v56 = vmul.f32 %v3217_v44, %v10175_v27  ;;  %5060 = vmatpush.bf16.msrb.mxu3 %v8179_v57  ;;  %v8490_v17 = vld [vmem:[#allocation14 + $0x750] sm:$0xf] }
 0x24c   :  { %v8155_v14 = vor.u32 %v9341_v37, %v8154_v34  ;;  %v10275_v16 = vmul.f32 %v3217_v44, %v10183_v36  ;;  %v10279_v7 = vmul.f32 %v3217_v44, %v10189_v42  ;;  %v7747_v36 = vor.u32 %v9239_v25, %v7746_v62  ;;  %v9461_v37 = vld [vmem:[#allocation14 + $0x884] sm:$0xf0]  ;;  %v7676_v44 = vld [vmem:[#allocation14 + $0x108] sm:$0xf0]  ;;  %v8418_v25 = vld [vmem:[#allocation14 + $0x6c0] sm:$0xf] }
 0x24d   :  { %3253 = vst [vmem:[#allocation23] sm:$0xff] %v10261_v48  ;;  %v8491_v10 = vor.u32 %v9425_v61, %v8490_v17  ;;  %v7939_v35 = vor.u32 %v9287_v50, %v7938_v45  ;;  %v7895_v57 = vor.u32 %v9272_v31, %v7892_v9  ;;  %v8443_v34 = vor.u32 %v9413_v2, %v8442_v20  ;;  %v9455_v50 = vld [vmem:[#allocation14 + $0x854] sm:$0xf0]  ;;  %v9260_v61 = vld [vmem:[#allocation14 + $0x244] sm:$0xf] }
 0x24e   :  { %3254 = vst [vmem:[#allocation23 + $0x8] sm:$0xff] %v10264_v12  ;;  %5019 = vmatpush.bf16.msrb.mxu0 %v7579_v47  ;;  %5034 = vmatpush.bf16.msra.mxu1 %v7747_v36  ;;  %v8635_v46 = vor.u32 %v9461_v37, %v8634_v1  ;;  %v7679_v47 = vor.u32 %v9218_v40, %v7676_v44  ;;  %v9206_v36 = vld [vmem:[#allocation14 + $0x94] sm:$0xf]  ;;  %v8346_v9 = vld [vmem:[#allocation14 + $0x630] sm:$0xf] }
 0x24f   :  { %3255 = vst [vmem:[#allocation23 + $0x10] sm:$0xff] %v10267_v19  ;;  %5061 = vmatpush.bf16.msrb.mxu3 %v8155_v14  ;;  %5048 = vmatpush.bf16.msra.mxu2 %v7939_v35  ;;  %v7871_v62 = vor.u32 %v9266_v6, %v7868_v28  ;;  %v7652_v14 = vld [vmem:[#allocation14 + $0xd8] sm:$0xf0]  ;;  %v8611_v59 = vor.u32 %v9455_v50, %v8610_v49  ;;  %v7820_v35 = vld [vmem:[#allocation14 + $0x228] sm:$0xf0] }
 0x250   :  { %3256 = vst [vmem:[#allocation23 + $0x18] sm:$0xff] %v10270_v56  ;;  %v7655_v17 = vor.u32 %v9212_v55, %v7652_v14  ;;  %v9437_v20 = vld [vmem:[#allocation14 + $0x7c4] sm:$0xf0]  ;;  %v9194_v2 = vld [vmem:[#allocation14 + $0x34] sm:$0xf] }
 0x251   :  { %3257 = vst [vmem:[#allocation23 + $0x20] sm:$0xff] %v10275_v16  ;;  %v7580_v1 = vld [vmem:[#allocation14 + $0x48] sm:$0xf0]  ;;  %v9242_v40 = vld [vmem:[#allocation14 + $0x1b4] sm:$0xf] }
 0x252   :  { %3258 = vst [vmem:[#allocation23 + $0x28] sm:$0xff] %v10279_v7  ;;  %5020 = vmatpush.bf16.msrb.mxu0 %v7555_v8  ;;  %5083 = vmatpush.bf16.msrb.mxu1 %v8683_v21  ;;  %v8586_v8 = vld [vmem:[#allocation14 + $0x810] sm:$0xf]  ;;  %v8562_v21 = vld [vmem:[#allocation14 + $0x7e0] sm:$0xf]  ;;  %v7583_v37 = vor.u32 %v9194_v2, %v7580_v1 }
 0x253   :  { %5062 = vmatpush.bf16.msrb.mxu3 %v8131_v30  ;;  %5097 = vmatpush.bf16.msrb.mxu2 %v7727_v43  ;;  %v8587_v13 = vor.u32 %v9449_v24, %v8586_v8  ;;  %v8371_v43 = vor.u32 %v9395_v0, %v8370_v41  ;;  %v7772_v44 = vld [vmem:[#allocation14 + $0x1c8] sm:$0xf0]  ;;  %v9383_v6 = vld [vmem:[#allocation14 + $0x614] sm:$0xf0]  ;;  %v8514_v28 = vld [vmem:[#allocation14 + $0x780] sm:$0xf] }
 0x254   :  { %v7556_v49 = vld [vmem:[#allocation14 + $0x18] sm:$0xf0]  ;;  %v9236_v55 = vld [vmem:[#allocation14 + $0x184] sm:$0xf]  ;;  %v8108_v24 = vld [vmem:[#allocation14 + $0x468] sm:$0xf0] }
 0x255   :  { %v7748_v14 = vld [vmem:[#allocation14 + $0x198] sm:$0xf0]  ;;  %v8492_v0 = vld [vmem:[#allocation14 + $0x768] sm:$0xf0]  ;;  %5972 = dma.vmem_to_hbm [thread:$0]  %s5968_s4, 768, %s5970_s26, [#allocation5]  }
 0x256   :  { %5069 = vmatpush.bf16.msra.mxu0 %v8491_v10  ;;  %v7628_v10 = vld [vmem:[#allocation14 + $0xa8] sm:$0xf0] }
 0x257   :  { %5111 = vmatpush.bf16.msra.mxu3 %v7919_v26  ;;  %5098 = vmatpush.bf16.msrb.mxu2 %v7703_v33  ;;  %v7631_v11 = vor.u32 %v9206_v36, %v7628_v10  ;;  %v7604_v26 = vld [vmem:[#allocation14 + $0x78] sm:$0xf0]  ;;  %v8538_v33 = vld [vmem:[#allocation14 + $0x7b0] sm:$0xf]  ;;  %v9374_v36 = vld [vmem:[#allocation14 + $0x5d4] sm:$0xf] }
 0x258   :  { %v8300_v10 = vld [vmem:[#allocation14 + $0x5e8] sm:$0xf0] }
 0x25a   :  { %v3191_v52 = vpop.f32.mrf.mxu3  ;;  %5070 = vmatpush.bf16.msra.mxu0 %v8467_v51  ;;  %v7796_v51 = vld [vmem:[#allocation14 + $0x1f8] sm:$0xf0] }
 0x25b   :  { %v10272_v58 = vadd.f32 %v3191_v52, %v3179_v32  ;;  %v8659_v32 = vor.u32 %v9467_v15, %v8658_v22  ;;  %5112 = vmatpush.bf16.msra.mxu3 %v7895_v57  ;;  %5099 = vmatpush.bf16.msrb.mxu2 %v7679_v47  ;;  %v9407_v52 = vld [vmem:[#allocation14 + $0x6d4] sm:$0xf0]  ;;  %v9200_v15 = vld [vmem:[#allocation14 + $0x64] sm:$0xf]  ;;  %v8322_v47 = vld [vmem:[#allocation14 + $0x600] sm:$0xf] }
 0x25c   :  { %v8419_v45 = vor.u32 %v9407_v52, %v8418_v25  ;;  %v9443_v22 = vld [vmem:[#allocation14 + $0x7f4] sm:$0xf0]  ;;  %v7607_v54 = vor.u32 %v9200_v15, %v7604_v26  ;;  %v9188_v52 = vld [vmem:[#allocation14 + $0x4] sm:$0xf]  ;;  %v8303_v26 = vor.u32 %v9374_v36, %v8300_v10  ;;  %v8396_v36 = vld [vmem:[#allocation14 + $0x6a8] sm:$0xf0] }
 0x25d   :  { %v3229_v27 = vmul.f32 %v10272_v58, %v10272_v58  ;;  %5084 = vmatpush.bf16.msrb.mxu1 %v8659_v32  ;;  %v8563_v23 = vor.u32 %v9443_v22, %v8562_v21  ;;  %v9389_v32 = vld [vmem:[#allocation14 + $0x644] sm:$0xf0]  ;;  %v9431_v25 = vld [vmem:[#allocation14 + $0x794] sm:$0xf0]  ;;  %v7559_v50 = vor.u32 %v9188_v52, %v7556_v49  ;;  %v9470_v21 = vld [vmem:[#allocation14 + $0x8d4] sm:$0xf] }
 0x25e   :  { %5071 = vmatpush.bf16.msra.mxu0 %v8443_v34  ;;  %v8347_v57 = vor.u32 %v9389_v32, %v8346_v9  ;;  %v8539_v34 = vor.u32 %v9437_v20, %v8538_v33  ;;  %v9416_v32 = vld [vmem:[#allocation14 + $0x724] sm:$0xf]  ;;  %v9362_v20 = vld [vmem:[#allocation14 + $0x574] sm:$0xf] }
 0x25f   :  { %v3234_v42 = vadd.f32 %v3233_v63, %v3229_v27  ;;  %5113 = vmatpush.bf16.msra.mxu3 %v7871_v62  ;;  %v7844_v63 = vld [vmem:[#allocation14 + $0x258] sm:$0xf0]  ;;  %5100 = vmatpush.bf16.msrb.mxu2 %v7655_v17  ;;  %v9401_v27 = vld [vmem:[#allocation14 + $0x6a4] sm:$0xf0]  ;;  %v8323_v62 = vor.u32 %v9383_v6, %v8322_v47  ;;  %v9356_v49 = vld [vmem:[#allocation14 + $0x544] sm:$0xf] }
 0x260   :  { %v7847_v3 = vor.u32 %v9260_v61, %v7844_v63  ;;  %v8395_v53 = vor.u32 %v9401_v27, %v8394_v4  ;;  %v9446_v10 = vld [vmem:[#allocation14 + $0x814] sm:$0xf] }
 0x261   :  { %3235 = vadd.xlane.f32.xlu0 %v3234_v42  ;;  %5085 = vmatpush.bf16.msrb.mxu1 %v8635_v46  ;;  %v9254_v42 = vld [vmem:[#allocation14 + $0x214] sm:$0xf]  ;;  %v7775_v46 = vor.u32 %v9242_v40, %v7772_v44  ;;  %v8444_v40 = vld [vmem:[#allocation14 + $0x708] sm:$0xf0] }
 0x262   :  { %v3193_v38 = vpop.f32.mrf.mxu3  ;;  %5072 = vmatpush.bf16.msra.mxu0 %v8419_v45  ;;  %v7823_v30 = vor.u32 %v9254_v42, %v7820_v35  ;;  %v8515_v45 = vor.u32 %v9431_v25, %v8514_v28  ;;  %v9458_v44 = vld [vmem:[#allocation14 + $0x874] sm:$0xf]  ;;  %v9308_v28 = vld [vmem:[#allocation14 + $0x3c4] sm:$0xf] }
 0x263   :  { %5114 = vmatpush.bf16.msra.mxu3 %v7847_v3  ;;  %5101 = vmatpush.bf16.msrb.mxu2 %v7631_v11  ;;  %v9248_v38 = vld [vmem:[#allocation14 + $0x1e4] sm:$0xf]  ;;  %v9422_v11 = vld [vmem:[#allocation14 + $0x754] sm:$0xf] }
 0x264   :  { %v7799_v31 = vor.u32 %v9248_v38, %v7796_v51 }
 0x265   :  { %5086 = vmatpush.bf16.msrb.mxu1 %v8611_v59  ;;  %v7751_v59 = vor.u32 %v9236_v55, %v7748_v14  ;;  %v8420_v55 = vld [vmem:[#allocation14 + $0x6d8] sm:$0xf0]  ;;  %v9452_v14 = vld [vmem:[#allocation14 + $0x844] sm:$0xf] }
 0x266   :  { %5073 = vmatpush.bf16.msra.mxu0 %v8395_v53  ;;  %v9326_v53 = vld [vmem:[#allocation14 + $0x454] sm:$0xf] }
 0x267   :  { %5115 = vmatpush.bf16.msra.mxu3 %v7823_v30  ;;  %5102 = vmatpush.bf16.msrb.mxu2 %v7607_v54  ;;  %v8111_v15 = vor.u32 %v9326_v53, %v8108_v24  ;;  %v8084_v54 = vld [vmem:[#allocation14 + $0x438] sm:$0xf0]  ;;  %v8204_v53 = vld [vmem:[#allocation14 + $0x528] sm:$0xf0]  ;;  %v9398_v24 = vld [vmem:[#allocation14 + $0x694] sm:$0xf] }
 0x269   :  { %5087 = vmatpush.bf16.msrb.mxu1 %v8587_v13 }
 0x26a   :  { %5074 = vmatpush.bf16.msra.mxu0 %v8371_v43  ;;  %v8684_v43 = vld [vmem:[#allocation14 + $0x8e8] sm:$0xf0] }
 0x26b   :  { %5116 = vmatpush.bf16.msra.mxu3 %v7799_v31  ;;  %5103 = vmatpush.bf16.msrb.mxu2 %v7583_v37  ;;  %v8495_v31 = vor.u32 %v9422_v11, %v8492_v0  ;;  %v8687_v9 = vor.u32 %v9470_v21, %v8684_v43  ;;  %v9410_v37 = vld [vmem:[#allocation14 + $0x6f4] sm:$0xf]  ;;  %v7988_v0 = vld [vmem:[#allocation14 + $0x378] sm:$0xf0]  ;;  %v8399_v21 = vor.u32 %v9398_v24, %v8396_v36  ;;  %v7898_v24 = vld [vmem:[#allocation14 + $0x2a8] sm:$0xf] }
 0x26c   :  { %v8447_v25 = vor.u32 %v9410_v37, %v8444_v40  ;;  %v9276_v36 = vld [vmem:[#allocation14 + $0x2bc] sm:$0xf0] }
 0x26d   :  { %5088 = vmatpush.bf16.msrb.mxu1 %v8563_v23  ;;  %v9320_v23 = vld [vmem:[#allocation14 + $0x424] sm:$0xf] }
 0x26e   :  { %5075 = vmatpush.bf16.msra.mxu0 %v8347_v57  ;;  %v8060_v57 = vld [vmem:[#allocation14 + $0x408] sm:$0xf0] }
 0x26f   :  { %5117 = vmatpush.bf16.msra.mxu3 %v7775_v46  ;;  %5104 = vmatpush.bf16.msrb.mxu2 %v7559_v50  ;;  %v8636_v46 = vld [vmem:[#allocation14 + $0x888] sm:$0xf0]  ;;  %v9404_v50 = vld [vmem:[#allocation14 + $0x6c4] sm:$0xf] }
 0x270   :  { %v8639_v52 = vor.u32 %v9458_v44, %v8636_v46  ;;  %v9380_v44 = vld [vmem:[#allocation14 + $0x604] sm:$0xf]  ;;  %v8324_v46 = vld [vmem:[#allocation14 + $0x618] sm:$0xf0] }
 0x271   :  { %5089 = vmatpush.bf16.msrb.mxu1 %v8539_v34  ;;  %v8252_v34 = vld [vmem:[#allocation14 + $0x588] sm:$0xf0] }
 0x272   :  { %5076 = vmatpush.bf16.msra.mxu0 %v8323_v62  ;;  %v8255_v6 = vor.u32 %v9362_v20, %v8252_v34  ;;  %v8036_v62 = vld [vmem:[#allocation14 + $0x3d8] sm:$0xf0] }
 0x273   :  { %5118 = vmatpush.bf16.msra.mxu3 %v7751_v59  ;;  %v8612_v59 = vld [vmem:[#allocation14 + $0x858] sm:$0xf0] }
 0x274   :  { %v8132_v34 = vld [vmem:[#allocation14 + $0x498] sm:$0xf0] }
 0x275   :  { %5090 = vmatpush.bf16.msrb.mxu1 %v8515_v45  ;;  %v8228_v45 = vld [vmem:[#allocation14 + $0x558] sm:$0xf0] }
 0x2d4   :  { %v3236_v17 = vpop.xlane.xlu0 %3235 }
 0x2d5   :  { %9523 = vrsqrt.f32 %v3236_v17  ;;  %vm3243_vm4 = vweird.f32 %v3236_v17 }
 0x2db   :  { %v9524_v61 = vpop.eup %9523 }
 0x2dc   :  { %v3238_v63 = vmul.f32 %v9524_v61, %v3236_v17  ;;  %vm3244_vm3 = vweird.f32 %v9524_v61  ;;  %v8039_v17 = vor.u32 %v9308_v28, %v8036_v62  ;;  %v7730_v28 = vld [vmem:[#allocation14 + $0x158] sm:$0xf]  ;;  %v9234_v62 = vld [vmem:[#allocation14 + $0x16c] sm:$0xf0] }
 0x2dd   :  { %vm3245_vm5 = vmor %vm3243_vm4, %vm3244_vm3 }
 0x2de   :  { %v3239_v3 = vmul.f32 %v9524_v61, %v3238_v63  ;;  %v9302_v63 = vld [vmem:[#allocation14 + $0x394] sm:$0xf] }
 0x2e0   :  { %v3240_v4 = vmul.f32 0.5, %v3239_v3  ;;  %v8012_v3 = vld [vmem:[#allocation14 + $0x3a8] sm:$0xf0] }
 0x2e1   :  { %v8015_v11 = vor.u32 %v9302_v63, %v8012_v3  ;;  %v7731_v63 = vor.u32 %v9234_v62, %v7730_v28  ;;  %v8210_v28 = vld [vmem:[#allocation14 + $0x518] sm:$0xf]  ;;  %v9354_v62 = vld [vmem:[#allocation14 + $0x52c] sm:$0xf0] }
 0x2e2   :  { %v3241_v27 = vsub.f32 1.5, %v3240_v4  ;;  %v8423_v4 = vor.u32 %v9404_v50, %v8420_v55  ;;  %v9330_v55 = vld [vmem:[#allocation14 + $0x46c] sm:$0xf0] }
 0x2e4   :  { %v3242_v8 = vmul.f32 %v9524_v61, %v3241_v27  ;;  %v8615_v27 = vor.u32 %v9452_v14, %v8612_v59  ;;  %v8306_v14 = vld [vmem:[#allocation14 + $0x5d8] sm:$0xf]  ;;  %v9378_v59 = vld [vmem:[#allocation14 + $0x5ec] sm:$0xf0] }
 0x2e6   :  { %v3246_v13 = vsel %vm3245_vm5, %v9524_v61, %v3242_v8  ;;  %v8231_v61 = vor.u32 %v9356_v49, %v8228_v45  ;;  %v9350_v8 = vld [vmem:[#allocation14 + $0x514] sm:$0xf]  ;;  %v8114_v49 = vld [vmem:[#allocation14 + $0x458] sm:$0xf] }
 0x2e7   :  { %v3247_v42 = vmul.f32 %v3246_v13, %v10198_v5  ;;  %v3248_v35 = vmul.f32 %v3246_v13, %v10200_v39  ;;  %v3249_v30 = vmul.f32 %v3246_v13, %v10228_v29  ;;  %v3250_v41 = vmul.f32 %v3246_v13, %v10242_v60  ;;  %v9368_v60 = vld [vmem:[#allocation14 + $0x5a4] sm:$0xf] }
 0x2e8   :  { %v10293_v22 = vmul.f32 %v3246_v13, %v10247_v18  ;;  %v8276_v18 = vld [vmem:[#allocation14 + $0x5b8] sm:$0xf0]  ;;  %v10308_v51 = vmul.f32 %v3246_v13, %v10272_v58  ;;  %v8087_v58 = vor.u32 %v9320_v23, %v8084_v54  ;;  %v8588_v13 = vld [vmem:[#allocation14 + $0x828] sm:$0xf0]  ;;  %v9392_v23 = vld [vmem:[#allocation14 + $0x664] sm:$0xf] }
 0x2e9   :  { %3259 = vst [vmem:[#allocation24] sm:$0xff] %v3247_v42  ;;  %v10296_v38 = vpack.c.bf16 %v3247_v42, %v10261_v48  ;;  %v10299_v5 = vpack.c.bf16 %v3248_v35, %v10264_v12  ;;  %v10302_v39 = vpack.c.bf16 %v3249_v30, %v10267_v19  ;;  %v10305_v29 = vpack.c.bf16 %v3250_v41, %v10270_v56  ;;  %v8468_v48 = vld [vmem:[#allocation14 + $0x738] sm:$0xf0]  ;;  %v9464_v12 = vld [vmem:[#allocation14 + $0x8a4] sm:$0xf] }
 0x2ea   :  { %3260 = vst [vmem:[#allocation24 + $0x8] sm:$0xff] %v3248_v35  ;;  %v8660_v19 = vld [vmem:[#allocation14 + $0x8b8] sm:$0xf0]  ;;  %v9314_v56 = vld [vmem:[#allocation14 + $0x3f4] sm:$0xf]  ;;  %v8279_v33 = vor.u32 %v9368_v60, %v8276_v18  ;;  %v8471_v2 = vor.u32 %v9416_v32, %v8468_v48  ;;  %v10318_v42 = vpack.c.bf16 %v10293_v22, %v10275_v16  ;;  %v10322_v35 = vpack.c.bf16 %v10308_v51, %v10279_v7 }
 0x2eb   :  { %3261 = vst [vmem:[#allocation24 + $0x10] sm:$0xff] %v3249_v30  ;;  %5021 = vmatmul.bf16.vlgmr.msrb.gmra.mxu0 %v10296_v38  ;;  %5035 = vmatmul.bf16.vlgmr.msra.gmra.mxu1 %v10299_v5  ;;  %v8663_v1 = vor.u32 %v9464_v12, %v8660_v19  ;;  %v8063_v47 = vor.u32 %v9314_v56, %v8060_v57  ;;  %v8372_v16 = vld [vmem:[#allocation14 + $0x678] sm:$0xf0]  ;;  %v9290_v18 = vld [vmem:[#allocation14 + $0x334] sm:$0xf] }
 0x2ec   :  { %3262 = vst [vmem:[#allocation24 + $0x18] sm:$0xff] %v3250_v41  ;;  %5049 = vmatmul.bf16.vlgmr.msra.gmra.mxu2 %v10302_v39  ;;  %5063 = vmatmul.bf16.vlgmr.msrb.gmra.mxu3 %v10305_v29  ;;  %v8207_v30 = vor.u32 %v9350_v8, %v8204_v53  ;;  %v9296_v41 = vld [vmem:[#allocation14 + $0x364] sm:$0xf]  ;;  %v8591_v43 = vor.u32 %v9446_v10, %v8588_v13  ;;  %v8564_v7 = vld [vmem:[#allocation14 + $0x7f8] sm:$0xf0] }
 0x2ed   :  { %3263 = vst [vmem:[#allocation24 + $0x20] sm:$0xff] %v10293_v22  ;;  %5125 = vmatpush.bf16.msrb.mxu0 %v8111_v15  ;;  %5139 = vmatpush.bf16.msra.mxu1 %v8303_v26  ;;  %v9344_v15 = vld [vmem:[#allocation14 + $0x4e4] sm:$0xf]  ;;  %v8180_v26 = vld [vmem:[#allocation14 + $0x4f8] sm:$0xf0]  ;;  %v7991_v54 = vor.u32 %v9296_v41, %v7988_v0  ;;  %v8115_v8 = vor.u32 %v9330_v55, %v8114_v49 }
 0x2ee   :  { %3264 = vst [vmem:[#allocation24 + $0x28] sm:$0xff] %v10308_v51  ;;  %5153 = vmatpush.bf16.msra.mxu2 %v8495_v31  ;;  %5167 = vmatpush.bf16.msrb.mxu3 %v8687_v9  ;;  %v9440_v22 = vld [vmem:[#allocation14 + $0x7e4] sm:$0xf]  ;;  %v8183_v60 = vor.u32 %v9344_v15, %v8180_v26  ;;  %v7964_v51 = vld [vmem:[#allocation14 + $0x348] sm:$0xf0]  ;;  %v8375_v31 = vor.u32 %v9392_v23, %v8372_v16 }
 0x2ef   :  { %v8567_v9 = vor.u32 %v9440_v22, %v8564_v7  ;;  %v9338_v32 = vld [vmem:[#allocation14 + $0x4b4] sm:$0xf]  ;;  %v8156_v48 = vld [vmem:[#allocation14 + $0x4c8] sm:$0xf0]  ;;  %v7967_v57 = vor.u32 %v9290_v18, %v7964_v51  ;;  %v8307_v53 = vor.u32 %v9378_v59, %v8306_v14  ;;  %v8090_v10 = vld [vmem:[#allocation14 + $0x428] sm:$0xf]  ;;  %v7899_v0 = vor.u32 %v9276_v36, %v7898_v24 }
 0x2f0   :  { %v9386_v12 = vld [vmem:[#allocation14 + $0x634] sm:$0xf]  ;;  %v8348_v19 = vld [vmem:[#allocation14 + $0x648] sm:$0xf0]  ;;  %v8159_v20 = vor.u32 %v9338_v32, %v8156_v48  ;;  %v9324_v13 = vld [vmem:[#allocation14 + $0x43c] sm:$0xf0]  ;;  %v8211_v55 = vor.u32 %v9354_v62, %v8210_v28 }
 0x2f1   :  { %5126 = vmatpush.bf16.msrb.mxu0 %v8087_v58  ;;  %5140 = vmatpush.bf16.msra.mxu1 %v8279_v33  ;;  %v9434_v56 = vld [vmem:[#allocation14 + $0x7b4] sm:$0xf]  ;;  %v8540_v58 = vld [vmem:[#allocation14 + $0x7c8] sm:$0xf0]  ;;  %v9284_v33 = vld [vmem:[#allocation14 + $0x304] sm:$0xf]  ;;  %v8351_v37 = vor.u32 %v9386_v12, %v8348_v19  ;;  %v8091_v15 = vor.u32 %v9324_v13, %v8090_v10 }
 0x2f2   :  { %5154 = vmatpush.bf16.msra.mxu2 %v8471_v2  ;;  %5168 = vmatpush.bf16.msrb.mxu3 %v8663_v1  ;;  %v7940_v2 = vld [vmem:[#allocation14 + $0x318] sm:$0xf0]  ;;  %v9332_v1 = vld [vmem:[#allocation14 + $0x484] sm:$0xf]  ;;  %v8543_v40 = vor.u32 %v9434_v56, %v8540_v58  ;;  %v7874_v23 = vld [vmem:[#allocation14 + $0x278] sm:$0xf] }
 0x2f3   :  { %v7943_v45 = vor.u32 %v9284_v33, %v7940_v2  ;;  %v8135_v50 = vor.u32 %v9332_v1, %v8132_v34  ;;  %v9270_v16 = vld [vmem:[#allocation14 + $0x28c] sm:$0xf0]  ;;  %v8066_v22 = vld [vmem:[#allocation14 + $0x3f8] sm:$0xf]  ;;  %v7850_v12 = vld [vmem:[#allocation14 + $0x248] sm:$0xf] }
 0x2f4   :  { %v9318_v7 = vld [vmem:[#allocation14 + $0x40c] sm:$0xf0]  ;;  %v7875_v51 = vor.u32 %v9270_v16, %v7874_v23  ;;  %v9264_v19 = vld [vmem:[#allocation14 + $0x25c] sm:$0xf0]  ;;  %v8042_v56 = vld [vmem:[#allocation14 + $0x3c8] sm:$0xf] }
 0x2f5   :  { %5127 = vmatpush.bf16.msrb.mxu0 %v8063_v47  ;;  %5141 = vmatpush.bf16.msra.mxu1 %v8255_v6  ;;  %v9428_v47 = vld [vmem:[#allocation14 + $0x784] sm:$0xf]  ;;  %v8516_v6 = vld [vmem:[#allocation14 + $0x798] sm:$0xf0]  ;;  %v8067_v32 = vor.u32 %v9318_v7, %v8066_v22  ;;  %v9312_v58 = vld [vmem:[#allocation14 + $0x3dc] sm:$0xf0]  ;;  %v7851_v2 = vor.u32 %v9264_v19, %v7850_v12 }
 0x2f6   :  { %5155 = vmatpush.bf16.msra.mxu2 %v8447_v25  ;;  %5169 = vmatpush.bf16.msrb.mxu3 %v8639_v52  ;;  %v7922_v25 = vld [vmem:[#allocation14 + $0x2d8] sm:$0xf]  ;;  %v9282_v52 = vld [vmem:[#allocation14 + $0x2ec] sm:$0xf0]  ;;  %v8234_v33 = vld [vmem:[#allocation14 + $0x548] sm:$0xf] }
 0x2f7   :  { %v7923_v3 = vor.u32 %v9282_v52, %v7922_v25  ;;  %v7634_v1 = vld [vmem:[#allocation14 + $0x98] sm:$0xf]  ;;  %v9210_v34 = vld [vmem:[#allocation14 + $0xac] sm:$0xf0]  ;;  %v7610_v49 = vld [vmem:[#allocation14 + $0x68] sm:$0xf] }
 0x2f8   :  { %v7635_v25 = vor.u32 %v9210_v34, %v7634_v1  ;;  %v7802_v14 = vld [vmem:[#allocation14 + $0x1e8] sm:$0xf]  ;;  %v9252_v59 = vld [vmem:[#allocation14 + $0x1fc] sm:$0xf0]  ;;  %v7778_v10 = vld [vmem:[#allocation14 + $0x1b8] sm:$0xf] }
 0x2f9   :  { %5128 = vmatpush.bf16.msrb.mxu0 %v8039_v17  ;;  %5142 = vmatpush.bf16.msra.mxu1 %v8231_v61  ;;  %v8327_v17 = vor.u32 %v9380_v44, %v8324_v46  ;;  %v8519_v61 = vor.u32 %v9428_v47, %v8516_v6  ;;  %v7826_v44 = vld [vmem:[#allocation14 + $0x218] sm:$0xf]  ;;  %v9258_v46 = vld [vmem:[#allocation14 + $0x22c] sm:$0xf0]  ;;  %v7754_v23 = vld [vmem:[#allocation14 + $0x188] sm:$0xf] }
 0x2fa   :  { %5156 = vmatpush.bf16.msra.mxu2 %v8423_v4  ;;  %5170 = vmatpush.bf16.msrb.mxu3 %v8615_v27  ;;  %v7706_v4 = vld [vmem:[#allocation14 + $0x128] sm:$0xf]  ;;  %v9228_v27 = vld [vmem:[#allocation14 + $0x13c] sm:$0xf0]  ;;  %v8018_v47 = vld [vmem:[#allocation14 + $0x398] sm:$0xf]  ;;  %v7827_v52 = vor.u32 %v9258_v46, %v7826_v44 }
 0x2fb   :  { %5077 = vmatmul.bf16.vlgmr.msra.gmra.mxu0 %v10318_v42  ;;  %5091 = vmatmul.bf16.vlgmr.msrb.gmra.mxu1 %v10322_v35  ;;  %v7707_v41 = vor.u32 %v9228_v27, %v7706_v4  ;;  %v9306_v6 = vld [vmem:[#allocation14 + $0x3ac] sm:$0xf0]  ;;  %v7803_v27 = vor.u32 %v9252_v59, %v7802_v14  ;;  %v9240_v16 = vld [vmem:[#allocation14 + $0x19c] sm:$0xf0]  ;;  %v9231_v12 = vld [vmem:[#allocation14 + $0x15c] sm:$0xf] }
 0x2fc   :  { %5105 = vmatmul.bf16.vlgmr.msrb.gmra.mxu2 %v10296_v38  ;;  %5119 = vmatmul.bf16.vlgmr.msra.gmra.mxu3 %v10299_v5  ;;  %v9246_v13 = vld [vmem:[#allocation14 + $0x1cc] sm:$0xf0]  ;;  %v9225_v28 = vld [vmem:[#allocation14 + $0x12c] sm:$0xf]  ;;  %v7708_v62 = vld [vmem:[#allocation14 + $0x140] sm:$0xf0] }
 0x2fd   :  { %5129 = vmatpush.bf16.msrb.mxu0 %v8015_v11  ;;  %5143 = vmatpush.bf16.msra.mxu1 %v8207_v30  ;;  %v8282_v11 = vld [vmem:[#allocation14 + $0x5a8] sm:$0xf]  ;;  %v9372_v30 = vld [vmem:[#allocation14 + $0x5bc] sm:$0xf0]  ;;  %v7711_v14 = vor.u32 %v9225_v28, %v7708_v62  ;;  %v8546_v28 = vld [vmem:[#allocation14 + $0x7b8] sm:$0xf] }
 0x2fe   :  { %5157 = vmatpush.bf16.msra.mxu2 %v8399_v21  ;;  %5171 = vmatpush.bf16.msrb.mxu3 %v8591_v43  ;;  %v7682_v21 = vld [vmem:[#allocation14 + $0xf8] sm:$0xf]  ;;  %v9222_v43 = vld [vmem:[#allocation14 + $0x10c] sm:$0xf0]  ;;  %v8283_v26 = vor.u32 %v9372_v30, %v8282_v11 }
 0x2ff   :  { %v7683_v18 = vor.u32 %v9222_v43, %v7682_v21  ;;  %v7970_v11 = vld [vmem:[#allocation14 + $0x338] sm:$0xf]  ;;  %v9294_v30 = vld [vmem:[#allocation14 + $0x34c] sm:$0xf0]  ;;  %v7562_v21 = vld [vmem:[#allocation14 + $0x8] sm:$0xf] }
 0x300   :  { %v7971_v22 = vor.u32 %v9294_v30, %v7970_v11  ;;  %v8618_v11 = vld [vmem:[#allocation14 + $0x848] sm:$0xf]  ;;  %v9456_v30 = vld [vmem:[#allocation14 + $0x85c] sm:$0xf0]  ;;  %v9438_v62 = vld [vmem:[#allocation14 + $0x7cc] sm:$0xf0] }
 0x301   :  { %5130 = vmatpush.bf16.msrb.mxu0 %v7991_v54  ;;  %5144 = vmatpush.bf16.msra.mxu1 %v8183_v60  ;;  %v8258_v54 = vld [vmem:[#allocation14 + $0x578] sm:$0xf]  ;;  %v9366_v60 = vld [vmem:[#allocation14 + $0x58c] sm:$0xf0] }
 0x302   :  { %5158 = vmatpush.bf16.msra.mxu2 %v8375_v31  ;;  %5172 = vmatpush.bf16.msrb.mxu3 %v8567_v9  ;;  %v7658_v31 = vld [vmem:[#allocation14 + $0xc8] sm:$0xf]  ;;  %v9216_v9 = vld [vmem:[#allocation14 + $0xdc] sm:$0xf0]  ;;  %v8259_v48 = vor.u32 %v9366_v60, %v8258_v54 }
 0x303   :  { %v7946_v54 = vld [vmem:[#allocation14 + $0x308] sm:$0xf]  ;;  %v9288_v60 = vld [vmem:[#allocation14 + $0x31c] sm:$0xf0] }
 0x305   :  { %5131 = vmatpush.bf16.msrb.mxu0 %v7967_v57  ;;  %5145 = vmatpush.bf16.msra.mxu1 %v8159_v20  ;;  %v9360_v57 = vld [vmem:[#allocation14 + $0x55c] sm:$0xf0]  ;;  %v7659_v20 = vor.u32 %v9216_v9, %v7658_v31  ;;  %v8498_v31 = vld [vmem:[#allocation14 + $0x758] sm:$0xf]  ;;  %v9426_v9 = vld [vmem:[#allocation14 + $0x76c] sm:$0xf0] }
 0x306   :  { %5159 = vmatpush.bf16.msra.mxu2 %v8351_v37  ;;  %5173 = vmatpush.bf16.msrb.mxu3 %v8543_v40  ;;  %v8043_v37 = vor.u32 %v9312_v58, %v8042_v56  ;;  %v8235_v40 = vor.u32 %v9360_v57, %v8234_v33  ;;  %v7755_v56 = vor.u32 %v9240_v16, %v7754_v23  ;;  %v7732_v58 = vld [vmem:[#allocation14 + $0x170] sm:$0xf0]  ;;  %v9279_v33 = vld [vmem:[#allocation14 + $0x2dc] sm:$0xf]  ;;  %v8402_v23 = vld [vmem:[#allocation14 + $0x698] sm:$0xf] }
 0x307   :  { %v7924_v57 = vld [vmem:[#allocation14 + $0x2f0] sm:$0xf0]  ;;  %v8499_v1 = vor.u32 %v9426_v9, %v8498_v31  ;;  %v7735_v44 = vor.u32 %v9231_v12, %v7732_v58  ;;  %v9402_v16 = vld [vmem:[#allocation14 + $0x6ac] sm:$0xf0]  ;;  %v9255_v31 = vld [vmem:[#allocation14 + $0x21c] sm:$0xf] }
 0x308   :  { %v7927_v46 = vor.u32 %v9279_v33, %v7924_v57  ;;  %v7828_v9 = vld [vmem:[#allocation14 + $0x230] sm:$0xf0]  ;;  %v8378_v12 = vld [vmem:[#allocation14 + $0x668] sm:$0xf]  ;;  %v9444_v57 = vld [vmem:[#allocation14 + $0x7fc] sm:$0xf0] }
 0x309   :  { %5132 = vmatpush.bf16.msrb.mxu0 %v7943_v45  ;;  %5146 = vmatpush.bf16.msra.mxu1 %v8135_v50  ;;  %v9204_v45 = vld [vmem:[#allocation14 + $0x7c] sm:$0xf0]  ;;  %v8019_v50 = vor.u32 %v9306_v6, %v8018_v47  ;;  %v8666_v47 = vld [vmem:[#allocation14 + $0x8a8] sm:$0xf]  ;;  %v7831_v58 = vor.u32 %v9255_v31, %v7828_v9  ;;  %v9417_v31 = vld [vmem:[#allocation14 + $0x72c] sm:$0xf] }
 0x30a   :  { %5160 = vmatpush.bf16.msra.mxu2 %v8327_v17  ;;  %5174 = vmatpush.bf16.msrb.mxu3 %v8519_v61  ;;  %v7994_v17 = vld [vmem:[#allocation14 + $0x368] sm:$0xf]  ;;  %v9300_v61 = vld [vmem:[#allocation14 + $0x37c] sm:$0xf0]  ;;  %v7611_v4 = vor.u32 %v9204_v45, %v7610_v49  ;;  %v8476_v9 = vld [vmem:[#allocation14 + $0x740] sm:$0xf0] }
 0x30b   :  { %v7995_v24 = vor.u32 %v9300_v61, %v7994_v17  ;;  %v9468_v6 = vld [vmem:[#allocation14 + $0x8bc] sm:$0xf0]  ;;  %v8642_v17 = vld [vmem:[#allocation14 + $0x878] sm:$0xf]  ;;  %v9462_v61 = vld [vmem:[#allocation14 + $0x88c] sm:$0xf0] }
 0x30c   :  { %5133 = vmatmul.bf16.vlgmr.msrb.gmra.mxu0 %v10302_v39  ;;  %5147 = vmatmul.bf16.vlgmr.msra.gmra.mxu1 %v10305_v29  ;;  %v8667_v45 = vor.u32 %v9468_v6, %v8666_v47  ;;  %v8570_v33 = vld [vmem:[#allocation14 + $0x7e8] sm:$0xf] }
 0x30d   :  { %5181 = vmatpush.bf16.msra.mxu0 %v7731_v63  ;;  %5195 = vmatpush.bf16.msrb.mxu1 %v7923_v3  ;;  %v8186_v63 = vld [vmem:[#allocation14 + $0x4e8] sm:$0xf]  ;;  %v9348_v3 = vld [vmem:[#allocation14 + $0x4fc] sm:$0xf0] }
 0x30e   :  { %5209 = vmatpush.bf16.msrb.mxu2 %v8115_v8  ;;  %5223 = vmatpush.bf16.msra.mxu3 %v8307_v53  ;;  %v7586_v8 = vld [vmem:[#allocation14 + $0x38] sm:$0xf]  ;;  %v9198_v53 = vld [vmem:[#allocation14 + $0x4c] sm:$0xf0]  ;;  %v8187_v36 = vor.u32 %v9348_v3, %v8186_v63  ;;  %v9219_v63 = vld [vmem:[#allocation14 + $0xfc] sm:$0xf] }
 0x30f   :  { %5161 = vmatmul.bf16.vlgmr.msra.gmra.mxu2 %v10318_v42  ;;  %5175 = vmatmul.bf16.vlgmr.msrb.gmra.mxu3 %v10322_v35  ;;  %v7587_v43 = vor.u32 %v9198_v53, %v7586_v8  ;;  %v7684_v3 = vld [vmem:[#allocation14 + $0x110] sm:$0xf0]  ;;  %v8643_v53 = vor.u32 %v9462_v61, %v8642_v17  ;;  %v8522_v17 = vld [vmem:[#allocation14 + $0x788] sm:$0xf]  ;;  %v9432_v61 = vld [vmem:[#allocation14 + $0x79c] sm:$0xf0] }
 0x311   :  { %5182 = vmatpush.bf16.msra.mxu0 %v7707_v41  ;;  %5196 = vmatpush.bf16.msrb.mxu1 %v7899_v0  ;;  %v8162_v41 = vld [vmem:[#allocation14 + $0x4b8] sm:$0xf]  ;;  %v9342_v0 = vld [vmem:[#allocation14 + $0x4cc] sm:$0xf0] }
 0x312   :  { %5210 = vmatpush.bf16.msrb.mxu2 %v8091_v15  ;;  %5224 = vmatpush.bf16.msra.mxu3 %v8283_v26  ;;  %v7779_v15 = vor.u32 %v9246_v13, %v7778_v10  ;;  %v9192_v26 = vld [vmem:[#allocation14 + $0x1c] sm:$0xf0]  ;;  %v8163_v7 = vor.u32 %v9342_v0, %v8162_v41  ;;  %v7687_v10 = vor.u32 %v9219_v63, %v7684_v3  ;;  %v9213_v41 = vld [vmem:[#allocation14 + $0xcc] sm:$0xf]  ;;  %v7660_v0 = vld [vmem:[#allocation14 + $0xe0] sm:$0xf0] }
 0x313   :  { %v7563_v19 = vor.u32 %v9192_v26, %v7562_v21  ;;  %v9261_v21 = vld [vmem:[#allocation14 + $0x24c] sm:$0xf]  ;;  %v8619_v26 = vor.u32 %v9456_v30, %v8618_v11  ;;  %v9423_v11 = vld [vmem:[#allocation14 + $0x75c] sm:$0xf] }
 0x315   :  { %5183 = vmatpush.bf16.msra.mxu0 %v7683_v18  ;;  %5197 = vmatpush.bf16.msrb.mxu1 %v7875_v51  ;;  %v8138_v18 = vld [vmem:[#allocation14 + $0x488] sm:$0xf]  ;;  %v9336_v51 = vld [vmem:[#allocation14 + $0x49c] sm:$0xf0] }
 0x316   :  { %5211 = vmatpush.bf16.msrb.mxu2 %v8067_v32  ;;  %5225 = vmatpush.bf16.msra.mxu3 %v8259_v48  ;;  %v8690_v32 = vld [vmem:[#allocation14 + $0x8d8] sm:$0xf]  ;;  %v9474_v48 = vld [vmem:[#allocation14 + $0x8ec] sm:$0xf0] }
 0x317   :  { %v8691_v34 = vor.u32 %v9474_v48, %v8690_v32  ;;  %v8403_v32 = vor.u32 %v9402_v16, %v8402_v23 }
 0x319   :  { %5184 = vmatpush.bf16.msra.mxu0 %v7659_v20  ;;  %5198 = vmatpush.bf16.msrb.mxu1 %v7851_v2  ;;  %v7947_v20 = vor.u32 %v9288_v60, %v7946_v54  ;;  %v8139_v2 = vor.u32 %v9336_v51, %v8138_v18  ;;  %v8594_v54 = vld [vmem:[#allocation14 + $0x818] sm:$0xf]  ;;  %v9450_v60 = vld [vmem:[#allocation14 + $0x82c] sm:$0xf0]  ;;  %v9207_v18 = vld [vmem:[#allocation14 + $0x9c] sm:$0xf] }
 0x31a   :  { %5212 = vmatpush.bf16.msrb.mxu2 %v8043_v37  ;;  %5226 = vmatpush.bf16.msra.mxu3 %v8235_v40  ;;  %v8474_v37 = vld [vmem:[#allocation14 + $0x728] sm:$0xf]  ;;  %v9420_v40 = vld [vmem:[#allocation14 + $0x73c] sm:$0xf0]  ;;  %v7636_v51 = vld [vmem:[#allocation14 + $0xb0] sm:$0xf0]  ;;  %v8595_v48 = vor.u32 %v9450_v60, %v8594_v54 }
 0x31b   :  { %v8475_v49 = vor.u32 %v9420_v40, %v8474_v37  ;;  %v8571_v40 = vor.u32 %v9444_v57, %v8570_v33  ;;  %v8479_v33 = vor.u32 %v9417_v31, %v8476_v9  ;;  %v9339_v31 = vld [vmem:[#allocation14 + $0x4bc] sm:$0xf]  ;;  %v8164_v9 = vld [vmem:[#allocation14 + $0x4d0] sm:$0xf0] }
 0x31d   :  { %5185 = vmatpush.bf16.msra.mxu0 %v7635_v25  ;;  %5199 = vmatpush.bf16.msrb.mxu1 %v7827_v52  ;;  %v9273_v25 = vld [vmem:[#allocation14 + $0x2ac] sm:$0xf]  ;;  %v7900_v52 = vld [vmem:[#allocation14 + $0x2c0] sm:$0xf0] }
 0x31e   :  { %5213 = vmatpush.bf16.msrb.mxu2 %v8019_v50  ;;  %5227 = vmatpush.bf16.msra.mxu3 %v8211_v55  ;;  %v8450_v50 = vld [vmem:[#allocation14 + $0x6f8] sm:$0xf]  ;;  %v9414_v55 = vld [vmem:[#allocation14 + $0x70c] sm:$0xf0]  ;;  %v7903_v59 = vor.u32 %v9273_v25, %v7900_v52  ;;  %v9195_v25 = vld [vmem:[#allocation14 + $0x3c] sm:$0xf] }
 0x31f   :  { %v8451_v8 = vor.u32 %v9414_v55, %v8450_v50  ;;  %v7588_v52 = vld [vmem:[#allocation14 + $0x50] sm:$0xf0]  ;;  %v8330_v50 = vld [vmem:[#allocation14 + $0x608] sm:$0xf] }
 0x320   :  { %v7591_v63 = vor.u32 %v9195_v25, %v7588_v52  ;;  %v9357_v25 = vld [vmem:[#allocation14 + $0x54c] sm:$0xf]  ;;  %v8236_v52 = vld [vmem:[#allocation14 + $0x560] sm:$0xf0] }
 0x321   :  { %5186 = vmatpush.bf16.msra.mxu0 %v7611_v4  ;;  %5200 = vmatpush.bf16.msrb.mxu1 %v7803_v27  ;;  %v9267_v4 = vld [vmem:[#allocation14 + $0x27c] sm:$0xf]  ;;  %v7876_v27 = vld [vmem:[#allocation14 + $0x290] sm:$0xf0] }
 0x322   :  { %5214 = vmatpush.bf16.msrb.mxu2 %v7995_v24  ;;  %5228 = vmatpush.bf16.msra.mxu3 %v8187_v36  ;;  %v8426_v24 = vld [vmem:[#allocation14 + $0x6c8] sm:$0xf]  ;;  %v9408_v36 = vld [vmem:[#allocation14 + $0x6dc] sm:$0xf0]  ;;  %v7879_v13 = vor.u32 %v9267_v4, %v7876_v27  ;;  %v9189_v4 = vld [vmem:[#allocation14 + $0xc] sm:$0xf] }
 0x323   :  { %v7564_v27 = vld [vmem:[#allocation14 + $0x20] sm:$0xf0] }
 0x325   :  { %5187 = vmatpush.bf16.msra.mxu0 %v7587_v43  ;;  %5201 = vmatpush.bf16.msrb.mxu1 %v7779_v15  ;;  %v7852_v43 = vld [vmem:[#allocation14 + $0x260] sm:$0xf0]  ;;  %v8427_v15 = vor.u32 %v9408_v36, %v8426_v24  ;;  %v9327_v24 = vld [vmem:[#allocation14 + $0x45c] sm:$0xf]  ;;  %v8116_v36 = vld [vmem:[#allocation14 + $0x470] sm:$0xf0] }
 0x326   :  { %5215 = vmatpush.bf16.msrb.mxu2 %v7971_v22  ;;  %5229 = vmatpush.bf16.msra.mxu3 %v8163_v7  ;;  %v7663_v22 = vor.u32 %v9213_v41, %v7660_v0  ;;  %v7855_v7 = vor.u32 %v9261_v21, %v7852_v43  ;;  %v8523_v41 = vor.u32 %v9432_v61, %v8522_v17  ;;  %v8500_v0 = vld [vmem:[#allocation14 + $0x770] sm:$0xf0]  ;;  %v9471_v21 = vld [vmem:[#allocation14 + $0x8dc] sm:$0xf] }
 0x327   :  { %v8692_v43 = vld [vmem:[#allocation14 + $0x8f0] sm:$0xf0]  ;;  %v8119_v23 = vor.u32 %v9327_v24, %v8116_v36  ;;  %v8503_v54 = vor.u32 %v9423_v11, %v8500_v0  ;;  %v9303_v17 = vld [vmem:[#allocation14 + $0x39c] sm:$0xf]  ;;  %v9297_v11 = vld [vmem:[#allocation14 + $0x36c] sm:$0xf] }
 0x328   :  { %v8695_v60 = vor.u32 %v9471_v21, %v8692_v43  ;;  %v8020_v61 = vld [vmem:[#allocation14 + $0x3b0] sm:$0xf0]  ;;  %v9447_v24 = vld [vmem:[#allocation14 + $0x81c] sm:$0xf]  ;;  %v9345_v21 = vld [vmem:[#allocation14 + $0x4ec] sm:$0xf] }
 0x329   :  { %5188 = vmatpush.bf16.msra.mxu0 %v7563_v19  ;;  %5202 = vmatpush.bf16.msrb.mxu1 %v7755_v56  ;;  %v9396_v19 = vld [vmem:[#allocation14 + $0x67c] sm:$0xf0]  ;;  %v7639_v56 = vor.u32 %v9207_v18, %v7636_v51  ;;  %v9369_v18 = vld [vmem:[#allocation14 + $0x5ac] sm:$0xf]  ;;  %v8284_v51 = vld [vmem:[#allocation14 + $0x5c0] sm:$0xf0] }
 0x32a   :  { %5216 = vmatpush.bf16.msrb.mxu2 %v7947_v20  ;;  %5230 = vmatpush.bf16.msra.mxu3 %v8139_v2  ;;  %v9201_v20 = vld [vmem:[#allocation14 + $0x6c] sm:$0xf]  ;;  %v7612_v2 = vld [vmem:[#allocation14 + $0x80] sm:$0xf0]  ;;  %v8379_v37 = vor.u32 %v9396_v19, %v8378_v12  ;;  %v8287_v19 = vor.u32 %v9369_v18, %v8284_v51  ;;  %v8596_v36 = vld [vmem:[#allocation14 + $0x830] sm:$0xf0] }
 0x32b   :  { %v7615_v47 = vor.u32 %v9201_v20, %v7612_v2  ;;  %v9363_v20 = vld [vmem:[#allocation14 + $0x57c] sm:$0xf]  ;;  %v8260_v2 = vld [vmem:[#allocation14 + $0x590] sm:$0xf0]  ;;  %v8599_v0 = vor.u32 %v9447_v24, %v8596_v36  ;;  %v8188_v43 = vld [vmem:[#allocation14 + $0x500] sm:$0xf0] }
 0x32c   :  { %5189 = vmatmul.bf16.vlgmr.msra.gmra.mxu0 %v10296_v38  ;;  %5203 = vmatmul.bf16.vlgmr.msrb.gmra.mxu1 %v10299_v5  ;;  %v8098_v24 = vld [vmem:[#allocation14 + $0x430] sm:$0xf]  ;;  %v10340_v36 = vld [vmem:[#allocation15] sm:$0x3f] }
 0x32d   :  { %5237 = vmatpush.bf16.msrb.mxu0 %v8499_v1  ;;  %5251 = vmatpush.bf16.msra.mxu1 %v8691_v34  ;;  %v9249_v1 = vld [vmem:[#allocation14 + $0x1ec] sm:$0xf]  ;;  %v7804_v34 = vld [vmem:[#allocation14 + $0x200] sm:$0xf0] }
 0x32e   :  { %5265 = vmatpush.bf16.msra.mxu2 %v7735_v44  ;;  %5279 = vmatpush.bf16.msrb.mxu3 %v7927_v46  ;;  %v8354_v44 = vld [vmem:[#allocation14 + $0x638] sm:$0xf]  ;;  %v9390_v46 = vld [vmem:[#allocation14 + $0x64c] sm:$0xf0]  ;;  %v7807_v6 = vor.u32 %v9249_v1, %v7804_v34  ;;  %v9411_v1 = vld [vmem:[#allocation14 + $0x6fc] sm:$0xf] }
 0x32f   :  { %5217 = vmatmul.bf16.vlgmr.msrb.gmra.mxu2 %v10302_v39  ;;  %5231 = vmatmul.bf16.vlgmr.msra.gmra.mxu3 %v10305_v29  ;;  %v8355_v55 = vor.u32 %v9390_v46, %v8354_v44  ;;  %v8452_v34 = vld [vmem:[#allocation14 + $0x710] sm:$0xf0]  ;;  %v8263_v46 = vor.u32 %v9363_v20, %v8260_v2  ;;  %v9333_v20 = vld [vmem:[#allocation14 + $0x48c] sm:$0xf]  ;;  %v8140_v2 = vld [vmem:[#allocation14 + $0x4a0] sm:$0xf0] }
 0x331   :  { %5238 = vmatpush.bf16.msrb.mxu0 %v8475_v49  ;;  %5252 = vmatpush.bf16.msra.mxu1 %v8667_v45  ;;  %v9243_v49 = vld [vmem:[#allocation14 + $0x1bc] sm:$0xf]  ;;  %v7780_v45 = vld [vmem:[#allocation14 + $0x1d0] sm:$0xf0] }
 0x332   :  { %5266 = vmatpush.bf16.msra.mxu2 %v7711_v14  ;;  %5280 = vmatpush.bf16.msrb.mxu3 %v7903_v59  ;;  %v8547_v14 = vor.u32 %v9438_v62, %v8546_v28  ;;  %v9384_v59 = vld [vmem:[#allocation14 + $0x61c] sm:$0xf0]  ;;  %v7783_v3 = vor.u32 %v9243_v49, %v7780_v45  ;;  %v8455_v28 = vor.u32 %v9411_v1, %v8452_v34  ;;  %v9405_v49 = vld [vmem:[#allocation14 + $0x6cc] sm:$0xf]  ;;  %v8428_v45 = vld [vmem:[#allocation14 + $0x6e0] sm:$0xf0] }
 0x333   :  { %v8331_v30 = vor.u32 %v9384_v59, %v8330_v50  ;;  %v9453_v50 = vld [vmem:[#allocation14 + $0x84c] sm:$0xf]  ;;  %v8239_v59 = vor.u32 %v9357_v25, %v8236_v52  ;;  %v8122_v25 = vld [vmem:[#allocation14 + $0x460] sm:$0xf] }
 0x335   :  { %5239 = vmatpush.bf16.msrb.mxu0 %v8451_v8  ;;  %5253 = vmatpush.bf16.msra.mxu1 %v8643_v53  ;;  %v9237_v8 = vld [vmem:[#allocation14 + $0x18c] sm:$0xf]  ;;  %v7756_v53 = vld [vmem:[#allocation14 + $0x1a0] sm:$0xf0] }
 0x336   :  { %5267 = vmatpush.bf16.msra.mxu2 %v7687_v10  ;;  %5281 = vmatpush.bf16.msrb.mxu3 %v7879_v13  ;;  %v9375_v10 = vld [vmem:[#allocation14 + $0x5dc] sm:$0xf]  ;;  %v8308_v13 = vld [vmem:[#allocation14 + $0x5f0] sm:$0xf0] }
 0x337   :  { %v8311_v16 = vor.u32 %v9375_v10, %v8308_v13  ;;  %v8023_v10 = vor.u32 %v9303_v17, %v8020_v61 }
 0x339   :  { %5240 = vmatpush.bf16.msrb.mxu0 %v8427_v15  ;;  %5254 = vmatpush.bf16.msra.mxu1 %v8619_v26  ;;  %v7567_v15 = vor.u32 %v9189_v4, %v7564_v27  ;;  %v7759_v26 = vor.u32 %v9237_v8, %v7756_v53  ;;  %v9351_v4 = vld [vmem:[#allocation14 + $0x51c] sm:$0xf]  ;;  %v8212_v27 = vld [vmem:[#allocation14 + $0x530] sm:$0xf0] }
 0x33a   :  { %5268 = vmatpush.bf16.msra.mxu2 %v7663_v22  ;;  %5282 = vmatpush.bf16.msrb.mxu3 %v7855_v7  ;;  %v9321_v22 = vld [vmem:[#allocation14 + $0x42c] sm:$0xf]  ;;  %v8092_v7 = vld [vmem:[#allocation14 + $0x440] sm:$0xf0]  ;;  %v9399_v8 = vld [vmem:[#allocation14 + $0x69c] sm:$0xf]  ;;  %v8215_v13 = vor.u32 %v9351_v4, %v8212_v27 }
 0x33b   :  { %v8095_v12 = vor.u32 %v9321_v22, %v8092_v7  ;;  %v8404_v53 = vld [vmem:[#allocation14 + $0x6b0] sm:$0xf0]  ;;  %v8191_v7 = vor.u32 %v9345_v21, %v8188_v43  ;;  %v7906_v4 = vld [vmem:[#allocation14 + $0x2b0] sm:$0xf]  ;;  %v9223_v21 = vld [vmem:[#allocation14 + $0x114] sm:$0xf0] }
 0x33c   :  { %v3561_v43 = vperm.slane %v10340_v36, 0 }
 0x33d   :  { %5241 = vmatpush.bf16.msrb.mxu0 %v8403_v32  ;;  %5255 = vmatpush.bf16.msra.mxu1 %v8595_v48  ;;  %v9465_v32 = vld [vmem:[#allocation14 + $0x8ac] sm:$0xf]  ;;  %v8668_v48 = vld [vmem:[#allocation14 + $0x8c0] sm:$0xf0] }
 0x33e   :  { %5269 = vmatpush.bf16.msra.mxu2 %v7639_v56  ;;  %5283 = vmatpush.bf16.msrb.mxu3 %v7831_v58  ;;  %v9315_v56 = vld [vmem:[#allocation14 + $0x3fc] sm:$0xf]  ;;  %v8068_v58 = vld [vmem:[#allocation14 + $0x410] sm:$0xf0]  ;;  %v8671_v57 = vor.u32 %v9465_v32, %v8668_v48 }
 0x33f   :  { %v8071_v44 = vor.u32 %v9315_v56, %v8068_v58  ;;  %v9387_v32 = vld [vmem:[#allocation14 + $0x63c] sm:$0xf]  ;;  %v8356_v48 = vld [vmem:[#allocation14 + $0x650] sm:$0xf0]  ;;  %v9285_v56 = vld [vmem:[#allocation14 + $0x30c] sm:$0xf] }
 0x340   :  { %v8359_v1 = vor.u32 %v9387_v32, %v8356_v48  ;;  %v7666_v48 = vld [vmem:[#allocation14 + $0xd0] sm:$0xf] }
 0x341   :  { %5242 = vmatpush.bf16.msrb.mxu0 %v8379_v37  ;;  %5256 = vmatpush.bf16.msra.mxu1 %v8571_v40  ;;  %v9459_v37 = vld [vmem:[#allocation14 + $0x87c] sm:$0xf]  ;;  %v8644_v40 = vld [vmem:[#allocation14 + $0x890] sm:$0xf0] }
 0x342   :  { %5270 = vmatpush.bf16.msra.mxu2 %v7615_v47  ;;  %5284 = vmatpush.bf16.msrb.mxu3 %v7807_v6  ;;  %v9309_v47 = vld [vmem:[#allocation14 + $0x3cc] sm:$0xf]  ;;  %v8044_v6 = vld [vmem:[#allocation14 + $0x3e0] sm:$0xf0]  ;;  %v8647_v62 = vor.u32 %v9459_v37, %v8644_v40 }
 0x343   :  { %v9381_v37 = vld [vmem:[#allocation14 + $0x60c] sm:$0xf]  ;;  %v8332_v40 = vld [vmem:[#allocation14 + $0x620] sm:$0xf0] }
 0x345   :  { %5243 = vmatpush.bf16.msrb.mxu0 %v8355_v55  ;;  %5257 = vmatpush.bf16.msra.mxu1 %v8547_v14  ;;  %v8620_v55 = vld [vmem:[#allocation14 + $0x860] sm:$0xf0]  ;;  %v8047_v14 = vor.u32 %v9309_v47, %v8044_v6  ;;  %v7738_v47 = vld [vmem:[#allocation14 + $0x160] sm:$0xf]  ;;  %v9235_v6 = vld [vmem:[#allocation14 + $0x174] sm:$0xf0] }
 0x346   :  { %5271 = vmatpush.bf16.msra.mxu2 %v7591_v63  ;;  %5285 = vmatpush.bf16.msrb.mxu3 %v7783_v3  ;;  %v8431_v63 = vor.u32 %v9405_v49, %v8428_v45  ;;  %v8623_v3 = vor.u32 %v9453_v50, %v8620_v55  ;;  %v8143_v49 = vor.u32 %v9333_v20, %v8140_v2  ;;  %v9331_v45 = vld [vmem:[#allocation14 + $0x474] sm:$0xf0]  ;;  %v8314_v50 = vld [vmem:[#allocation14 + $0x5e0] sm:$0xf]  ;;  %v9313_v2 = vld [vmem:[#allocation14 + $0x3e4] sm:$0xf0] }
 0x347   :  { %v9379_v55 = vld [vmem:[#allocation14 + $0x5f4] sm:$0xf0]  ;;  %v7739_v17 = vor.u32 %v9235_v6, %v7738_v47  ;;  %v8123_v27 = vor.u32 %v9331_v45, %v8122_v25  ;;  %v8026_v25 = vld [vmem:[#allocation14 + $0x3a0] sm:$0xf] }
 0x348   :  { %v9307_v45 = vld [vmem:[#allocation14 + $0x3b4] sm:$0xf0] }
 0x349   :  { %5244 = vmatpush.bf16.msrb.mxu0 %v8331_v30  ;;  %5258 = vmatpush.bf16.msra.mxu1 %v8523_v41  ;;  %v7996_v30 = vld [vmem:[#allocation14 + $0x380] sm:$0xf0]  ;;  %v8407_v41 = vor.u32 %v9399_v8, %v8404_v53  ;;  %v8315_v8 = vor.u32 %v9379_v55, %v8314_v50  ;;  %v9277_v53 = vld [vmem:[#allocation14 + $0x2c4] sm:$0xf0]  ;;  %v8218_v50 = vld [vmem:[#allocation14 + $0x520] sm:$0xf] }
 0x34a   :  { %5272 = vmatpush.bf16.msra.mxu2 %v7567_v15  ;;  %5286 = vmatpush.bf16.msrb.mxu3 %v7759_v26  ;;  %v9393_v15 = vld [vmem:[#allocation14 + $0x66c] sm:$0xf]  ;;  %v8380_v26 = vld [vmem:[#allocation14 + $0x680] sm:$0xf0]  ;;  %v7999_v22 = vor.u32 %v9297_v11, %v7996_v30  ;;  %v9373_v11 = vld [vmem:[#allocation14 + $0x5c4] sm:$0xf0] }
 0x34b   :  { %v8383_v18 = vor.u32 %v9393_v15, %v8380_v26  ;;  %v9355_v55 = vld [vmem:[#allocation14 + $0x534] sm:$0xf0] }
 0x34c   :  { %5245 = vmatmul.bf16.vlgmr.msrb.gmra.mxu0 %v10318_v42  ;;  %5259 = vmatmul.bf16.vlgmr.msra.gmra.mxu1 %v10322_v35 }
 0x34d   :  { %5293 = vmatpush.bf16.msra.mxu0 %v8119_v23  ;;  %5307 = vmatpush.bf16.msrb.mxu1 %v8311_v16  ;;  %v9441_v23 = vld [vmem:[#allocation14 + $0x7ec] sm:$0xf]  ;;  %v8572_v16 = vld [vmem:[#allocation14 + $0x800] sm:$0xf0] }
 0x34e   :  { %5321 = vmatpush.bf16.msrb.mxu2 %v8503_v54  ;;  %5335 = vmatpush.bf16.msra.mxu3 %v8695_v60  ;;  %v9291_v54 = vld [vmem:[#allocation14 + $0x33c] sm:$0xf]  ;;  %v7972_v60 = vld [vmem:[#allocation14 + $0x350] sm:$0xf0]  ;;  %v8575_v51 = vor.u32 %v9441_v23, %v8572_v16  ;;  %v7882_v23 = vld [vmem:[#allocation14 + $0x280] sm:$0xf] }
 0x34f   :  { %5273 = vmatmul.bf16.vlgmr.msra.gmra.mxu2 %v10296_v38  ;;  %5287 = vmatmul.bf16.vlgmr.msrb.gmra.mxu3 %v10299_v5  ;;  %v7975_v58 = vor.u32 %v9291_v54, %v7972_v60  ;;  %v9271_v16 = vld [vmem:[#allocation14 + $0x294] sm:$0xf0]  ;;  %v8266_v54 = vld [vmem:[#allocation14 + $0x580] sm:$0xf] }
 0x350   :  { %v9367_v60 = vld [vmem:[#allocation14 + $0x594] sm:$0xf0] }
 0x351   :  { %5294 = vmatpush.bf16.msra.mxu0 %v8095_v12  ;;  %5308 = vmatpush.bf16.msrb.mxu1 %v8287_v19  ;;  %v9435_v12 = vld [vmem:[#allocation14 + $0x7bc] sm:$0xf]  ;;  %v8548_v19 = vld [vmem:[#allocation14 + $0x7d0] sm:$0xf0] }
 0x352   :  { %5322 = vmatpush.bf16.msrb.mxu2 %v8479_v33  ;;  %5336 = vmatpush.bf16.msra.mxu3 %v8671_v57  ;;  %v8167_v33 = vor.u32 %v9339_v31, %v8164_v9  ;;  %v7948_v57 = vld [vmem:[#allocation14 + $0x320] sm:$0xf0]  ;;  %v8551_v34 = vor.u32 %v9435_v12, %v8548_v19  ;;  %v7883_v9 = vor.u32 %v9271_v16, %v7882_v23  ;;  %v9217_v12 = vld [vmem:[#allocation14 + $0xe4] sm:$0xf0]  ;;  %v7786_v16 = vld [vmem:[#allocation14 + $0x1c0] sm:$0xf] }
 0x353   :  { %v7951_v52 = vor.u32 %v9285_v56, %v7948_v57  ;;  %v8267_v56 = vor.u32 %v9367_v60, %v8266_v54  ;;  %v8050_v57 = vld [vmem:[#allocation14 + $0x3d0] sm:$0xf] }
 0x354   :  { %v8051_v47 = vor.u32 %v9313_v2, %v8050_v57  ;;  %v9241_v57 = vld [vmem:[#allocation14 + $0x1a4] sm:$0xf0]  ;;  %v7954_v2 = vld [vmem:[#allocation14 + $0x310] sm:$0xf] }
 0x355   :  { %5295 = vmatpush.bf16.msra.mxu0 %v8071_v44  ;;  %5309 = vmatpush.bf16.msrb.mxu1 %v8263_v46  ;;  %v9429_v44 = vld [vmem:[#allocation14 + $0x78c] sm:$0xf]  ;;  %v8524_v46 = vld [vmem:[#allocation14 + $0x7a0] sm:$0xf0] }
 0x356   :  { %5323 = vmatpush.bf16.msrb.mxu2 %v8455_v28  ;;  %5337 = vmatpush.bf16.msra.mxu3 %v8647_v62  ;;  %v7930_v28 = vld [vmem:[#allocation14 + $0x2e0] sm:$0xf]  ;;  %v9283_v62 = vld [vmem:[#allocation14 + $0x2f4] sm:$0xf0] }
 0x357   :  { %v7931_v61 = vor.u32 %v9283_v62, %v7930_v28  ;;  %v7834_v28 = vld [vmem:[#allocation14 + $0x220] sm:$0xf]  ;;  %v9259_v62 = vld [vmem:[#allocation14 + $0x234] sm:$0xf0] }
 0x359   :  { %5296 = vmatpush.bf16.msra.mxu0 %v8047_v14  ;;  %5310 = vmatpush.bf16.msrb.mxu1 %v8239_v59  ;;  %v8335_v14 = vor.u32 %v9381_v37, %v8332_v40  ;;  %v8527_v59 = vor.u32 %v9429_v44, %v8524_v46  ;;  %v7667_v37 = vor.u32 %v9217_v12, %v7666_v48  ;;  %v7642_v44 = vld [vmem:[#allocation14 + $0xa0] sm:$0xf]  ;;  %v9211_v46 = vld [vmem:[#allocation14 + $0xb4] sm:$0xf0]  ;;  %v7570_v12 = vld [vmem:[#allocation14 + $0x10] sm:$0xf] }
 0x35a   :  { %5324 = vmatpush.bf16.msrb.mxu2 %v8431_v63  ;;  %5338 = vmatpush.bf16.msra.mxu3 %v8623_v3  ;;  %v7714_v63 = vld [vmem:[#allocation14 + $0x130] sm:$0xf]  ;;  %v9229_v3 = vld [vmem:[#allocation14 + $0x144] sm:$0xf0] }
 0x35b   :  { %v7715_v30 = vor.u32 %v9229_v3, %v7714_v63  ;;  %v7618_v3 = vld [vmem:[#allocation14 + $0x70] sm:$0xf] }
 0x35d   :  { %5297 = vmatpush.bf16.msra.mxu0 %v8023_v10  ;;  %5311 = vmatpush.bf16.msrb.mxu1 %v8215_v13  ;;  %v9325_v10 = vld [vmem:[#allocation14 + $0x444] sm:$0xf0]  ;;  %v8290_v13 = vld [vmem:[#allocation14 + $0x5b0] sm:$0xf] }
 0x35e   :  { %5325 = vmatpush.bf16.msrb.mxu2 %v8407_v41  ;;  %5339 = vmatpush.bf16.msra.mxu3 %v8599_v0  ;;  %v7907_v41 = vor.u32 %v9277_v53, %v7906_v4  ;;  %v7690_v0 = vld [vmem:[#allocation14 + $0x100] sm:$0xf]  ;;  %v8099_v15 = vor.u32 %v9325_v10, %v8098_v24  ;;  %v8291_v26 = vor.u32 %v9373_v11, %v8290_v13  ;;  %v9205_v4 = vld [vmem:[#allocation14 + $0x84] sm:$0xf0]  ;;  %v7810_v53 = vld [vmem:[#allocation14 + $0x1f0] sm:$0xf] }
 0x35f   :  { %v7691_v31 = vor.u32 %v9223_v21, %v7690_v0  ;;  %v9253_v24 = vld [vmem:[#allocation14 + $0x204] sm:$0xf0]  ;;  %v8002_v10 = vld [vmem:[#allocation14 + $0x370] sm:$0xf]  ;;  %v7619_v0 = vor.u32 %v9205_v4, %v7618_v3 }
 0x360   :  { %v9301_v11 = vld [vmem:[#allocation14 + $0x384] sm:$0xf0]  ;;  %v7811_v21 = vor.u32 %v9253_v24, %v7810_v53  ;;  %v8482_v53 = vld [vmem:[#allocation14 + $0x730] sm:$0xf] }
 0x361   :  { %5298 = vmatpush.bf16.msra.mxu0 %v7999_v22  ;;  %5312 = vmatpush.bf16.msrb.mxu1 %v8191_v7  ;;  %v8074_v22 = vld [vmem:[#allocation14 + $0x400] sm:$0xf]  ;;  %v9319_v7 = vld [vmem:[#allocation14 + $0x414] sm:$0xf0]  ;;  %v9421_v24 = vld [vmem:[#allocation14 + $0x744] sm:$0xf0] }
 0x362   :  { %5326 = vmatpush.bf16.msrb.mxu2 %v8383_v18  ;;  %5340 = vmatpush.bf16.msra.mxu3 %v8575_v51  ;;  %v8075_v19 = vor.u32 %v9319_v7, %v8074_v22  ;;  %v9247_v22 = vld [vmem:[#allocation14 + $0x1d4] sm:$0xf0]  ;;  %v7978_v7 = vld [vmem:[#allocation14 + $0x340] sm:$0xf] }
 0x365   :  { %5299 = vmatpush.bf16.msra.mxu0 %v7975_v58  ;;  %5313 = vmatpush.bf16.msrb.mxu1 %v8167_v33  ;;  %v7858_v58 = vld [vmem:[#allocation14 + $0x250] sm:$0xf]  ;;  %v9265_v33 = vld [vmem:[#allocation14 + $0x264] sm:$0xf0] }
 0x366   :  { %5327 = vmatpush.bf16.msrb.mxu2 %v8359_v1  ;;  %5341 = vmatpush.bf16.msra.mxu3 %v8551_v34  ;;  %v8242_v1 = vld [vmem:[#allocation14 + $0x550] sm:$0xf]  ;;  %v9361_v34 = vld [vmem:[#allocation14 + $0x564] sm:$0xf0]  ;;  %v7859_v40 = vor.u32 %v9265_v33, %v7858_v58  ;;  %v7787_v58 = vor.u32 %v9247_v22, %v7786_v16 }
 0x367   :  { %v8243_v6 = vor.u32 %v9361_v34, %v8242_v1  ;;  %v7762_v33 = vld [vmem:[#allocation14 + $0x190] sm:$0xf] }
 0x368   :  { %v5022_v18 = vpop.f32.mrf.mxu0  ;;  %v5036_v51 = vpop.f32.mrf.mxu1 }
 0x369   :  { %5300 = vmatpush.bf16.msra.mxu0 %v7951_v52  ;;  %5314 = vmatpush.bf16.msrb.mxu1 %v8143_v49  ;;  %v5023_v32 = vadd.f32 %v5022_v18, %v3561_v43  ;;  %v9295_v18 = vld [vmem:[#allocation14 + $0x354] sm:$0xf0] }
 0x36a   :  { %5328 = vmatpush.bf16.msrb.mxu2 %v8335_v14  ;;  %5342 = vmatpush.bf16.msra.mxu3 %v8527_v59  ;;  %v7979_v34 = vor.u32 %v9295_v18, %v7978_v7  ;;  %v8458_v18 = vld [vmem:[#allocation14 + $0x700] sm:$0xf] }
 0x36b   :  { %v10347_v20 = vadd.f32 %v5036_v51, %v5023_v32  ;;  %v8170_v51 = vld [vmem:[#allocation14 + $0x4c0] sm:$0xf] }
 0x36c   :  { %5301 = vmatmul.bf16.vlgmr.msra.gmra.mxu0 %v10302_v39  ;;  %5315 = vmatmul.bf16.vlgmr.msrb.gmra.mxu1 %v10305_v29 }
 0x36d   :  { %5349 = vmatpush.bf16.msrb.mxu0 %v7739_v17  ;;  %5363 = vmatpush.bf16.msra.mxu1 %v7931_v61  ;;  %v7643_v17 = vor.u32 %v9211_v46, %v7642_v44  ;;  %v7835_v61 = vor.u32 %v9259_v62, %v7834_v28  ;;  %v8146_v44 = vld [vmem:[#allocation14 + $0x490] sm:$0xf]  ;;  %v9337_v46 = vld [vmem:[#allocation14 + $0x4a4] sm:$0xf0]  ;;  %v8698_v28 = vld [vmem:[#allocation14 + $0x8e0] sm:$0xf] }
 0x36e   :  { %5377 = vmatpush.bf16.msra.mxu2 %v8123_v27  ;;  %5391 = vmatpush.bf16.msrb.mxu3 %v8315_v8  ;;  %v8027_v27 = vor.u32 %v9307_v45, %v8026_v25  ;;  %v8219_v8 = vor.u32 %v9355_v55, %v8218_v50  ;;  %v9475_v62 = vld [vmem:[#allocation14 + $0x8f4] sm:$0xf0]  ;;  %v9232_v25 = vld [vmem:[#allocation14 + $0x164] sm:$0xf]  ;;  %v3562_v45 = vperm.slane %v10340_v36, 1  ;;  %v7763_v55 = vor.u32 %v9241_v57, %v7762_v33 }
 0x36f   :  { %5329 = vmatmul.bf16.vlgmr.msrb.gmra.mxu2 %v10318_v42  ;;  %5343 = vmatmul.bf16.vlgmr.msra.gmra.mxu3 %v10322_v35  ;;  %v10349_v52 = vpop.f32.mrf.mxu2  ;;  %v10351_v49 = vpop.f32.mrf.mxu3  ;;  %v8699_v4 = vor.u32 %v9475_v62, %v8698_v28  ;;  %v9268_v33 = vld [vmem:[#allocation14 + $0x284] sm:$0xf]  ;;  %v7884_v57 = vld [vmem:[#allocation14 + $0x298] sm:$0xf0]  ;;  %v9214_v28 = vld [vmem:[#allocation14 + $0xd4] sm:$0xf] }
 0x370   :  { %v5024_v14 = vpop.f32.mrf.mxu0  ;;  %v5038_v59 = vpop.f32.mrf.mxu1 }
 0x371   :  { %5350 = vmatpush.bf16.msrb.mxu0 %v7715_v30  ;;  %5364 = vmatpush.bf16.msra.mxu1 %v7907_v41  ;;  %v5025_v63 = vadd.f32 %v5024_v14, %v3561_v43  ;;  %v8194_v30 = vld [vmem:[#allocation14 + $0x4f0] sm:$0xf]  ;;  %v9349_v41 = vld [vmem:[#allocation14 + $0x504] sm:$0xf0]  ;;  %v8003_v43 = vor.u32 %v9301_v11, %v8002_v10  ;;  %v7740_v14 = vld [vmem:[#allocation14 + $0x178] sm:$0xf0] }
 0x372   :  { %5378 = vmatpush.bf16.msra.mxu2 %v8099_v15  ;;  %5392 = vmatpush.bf16.msrb.mxu3 %v8291_v26  ;;  %v7594_v15 = vld [vmem:[#allocation14 + $0x40] sm:$0xf]  ;;  %v9199_v26 = vld [vmem:[#allocation14 + $0x54] sm:$0xf0]  ;;  %v8195_v23 = vor.u32 %v9349_v41, %v8194_v30  ;;  %v7743_v10 = vor.u32 %v9232_v25, %v7740_v14  ;;  %v8674_v41 = vld [vmem:[#allocation14 + $0x8b0] sm:$0xf] }
 0x373   :  { %v5039_v13 = vadd.f32 %v5038_v59, %v5025_v63  ;;  %v9280_v59 = vld [vmem:[#allocation14 + $0x2e4] sm:$0xf]  ;;  %v8147_v63 = vor.u32 %v9337_v46, %v8146_v44  ;;  %v7887_v46 = vor.u32 %v9268_v33, %v7884_v57  ;;  %v7668_v25 = vld [vmem:[#allocation14 + $0xe8] sm:$0xf0]  ;;  %v9391_v33 = vld [vmem:[#allocation14 + $0x654] sm:$0xf0] }
 0x375   :  { %5351 = vmatpush.bf16.msrb.mxu0 %v7691_v31  ;;  %5365 = vmatpush.bf16.msra.mxu1 %v7883_v9  ;;  %v9343_v31 = vld [vmem:[#allocation14 + $0x4d4] sm:$0xf0] }
 0x376   :  { %5379 = vmatpush.bf16.msra.mxu2 %v8075_v19  ;;  %5393 = vmatpush.bf16.msrb.mxu3 %v8267_v56  ;;  %v9193_v19 = vld [vmem:[#allocation14 + $0x24] sm:$0xf0]  ;;  %v7595_v56 = vor.u32 %v9199_v26, %v7594_v15  ;;  %v7716_v26 = vld [vmem:[#allocation14 + $0x148] sm:$0xf0] }
 0x377   :  { %v5052_v54 = vpop.f32.mrf.mxu2  ;;  %v5066_v60 = vpop.f32.mrf.mxu3  ;;  %v7571_v50 = vor.u32 %v9193_v19, %v7570_v12  ;;  %v8650_v12 = vld [vmem:[#allocation14 + $0x880] sm:$0xf]  ;;  %v9463_v19 = vld [vmem:[#allocation14 + $0x894] sm:$0xf0] }
 0x378   :  { %v5053_v9 = vadd.f32 %v5052_v54, %v5039_v13  ;;  %v10353_v32 = vpop.f32.mrf.mxu0  ;;  %v10355_v48 = vpop.f32.mrf.mxu1  ;;  %v8483_v54 = vor.u32 %v9421_v24, %v8482_v53  ;;  %v8602_v53 = vld [vmem:[#allocation14 + $0x820] sm:$0xf]  ;;  %v9451_v24 = vld [vmem:[#allocation14 + $0x834] sm:$0xf0] }
 0x379   :  { %5352 = vmatpush.bf16.msrb.mxu0 %v7667_v37  ;;  %5366 = vmatpush.bf16.msra.mxu1 %v7859_v40  ;;  %v8171_v37 = vor.u32 %v9343_v31, %v8170_v51  ;;  %v9289_v40 = vld [vmem:[#allocation14 + $0x324] sm:$0xf0]  ;;  %v9415_v51 = vld [vmem:[#allocation14 + $0x714] sm:$0xf0] }
 0x37a   :  { %5380 = vmatpush.bf16.msra.mxu2 %v8051_v47  ;;  %5394 = vmatpush.bf16.msrb.mxu3 %v8243_v6  ;;  %v5067_v1 = vadd.f32 %v5066_v60, %v5053_v9  ;;  %v8506_v47 = vld [vmem:[#allocation14 + $0x760] sm:$0xf]  ;;  %v9427_v6 = vld [vmem:[#allocation14 + $0x774] sm:$0xf0] }
 0x37b   :  { %v8507_v3 = vor.u32 %v9427_v6, %v8506_v47  ;;  %v8626_v47 = vld [vmem:[#allocation14 + $0x850] sm:$0xf]  ;;  %v9457_v6 = vld [vmem:[#allocation14 + $0x864] sm:$0xf0] }
 0x37d   :  { %5353 = vmatpush.bf16.msrb.mxu0 %v7643_v17  ;;  %5367 = vmatpush.bf16.msra.mxu1 %v7835_v61  ;;  %v7932_v17 = vld [vmem:[#allocation14 + $0x2f8] sm:$0xf0]  ;;  %v7955_v61 = vor.u32 %v9289_v40, %v7954_v2  ;;  %v8459_v2 = vor.u32 %v9415_v51, %v8458_v18  ;;  %v9409_v40 = vld [vmem:[#allocation14 + $0x6e4] sm:$0xf0]  ;;  %v7620_v18 = vld [vmem:[#allocation14 + $0x88] sm:$0xf0] }
 0x37e   :  { %5381 = vmatpush.bf16.msra.mxu2 %v8027_v27  ;;  %5395 = vmatpush.bf16.msrb.mxu3 %v8219_v8  ;;  %v7935_v13 = vor.u32 %v9280_v59, %v7932_v17  ;;  %v9250_v51 = vld [vmem:[#allocation14 + $0x1f4] sm:$0xf] }
 0x37f   :  { %v5106_v27 = vpop.f32.mrf.mxu2  ;;  %v5120_v8 = vpop.f32.mrf.mxu3 }
 0x380   :  { %v5107_v11 = vadd.f32 %v5106_v27, %v3562_v45  ;;  %v5080_v30 = vpop.f32.mrf.mxu0  ;;  %v5094_v22 = vpop.f32.mrf.mxu1  ;;  %v7671_v27 = vor.u32 %v9214_v28, %v7668_v25  ;;  %v8338_v28 = vld [vmem:[#allocation14 + $0x610] sm:$0xf] }
 0x381   :  { %5354 = vmatpush.bf16.msrb.mxu0 %v7619_v0  ;;  %5368 = vmatpush.bf16.msra.mxu1 %v7811_v21  ;;  %v9469_v0 = vld [vmem:[#allocation14 + $0x8c4] sm:$0xf0]  ;;  %v9226_v21 = vld [vmem:[#allocation14 + $0x134] sm:$0xf]  ;;  %v5081_v15 = vadd.f32 %v5080_v30, %v5067_v1  ;;  %v8651_v1 = vor.u32 %v9463_v19, %v8650_v12  ;;  %v9256_v30 = vld [vmem:[#allocation14 + $0x224] sm:$0xf] }
 0x382   :  { %5382 = vmatpush.bf16.msra.mxu2 %v8003_v43  ;;  %5396 = vmatpush.bf16.msrb.mxu3 %v8195_v23  ;;  %v9274_v43 = vld [vmem:[#allocation14 + $0x2b4] sm:$0xf]  ;;  %v7908_v23 = vld [vmem:[#allocation14 + $0x2c8] sm:$0xf0]  ;;  %v5121_v16 = vadd.f32 %v5120_v8, %v5107_v11  ;;  %v8675_v60 = vor.u32 %v9469_v0, %v8674_v41  ;;  %v7719_v31 = vor.u32 %v9226_v21, %v7716_v26  ;;  %v7644_v11 = vld [vmem:[#allocation14 + $0xb8] sm:$0xf0] }
 0x383   :  { %v10360_v7 = vadd.f32 %v5094_v22, %v5081_v15  ;;  %v7911_v9 = vor.u32 %v9274_v43, %v7908_v23  ;;  %v7836_v41 = vld [vmem:[#allocation14 + $0x238] sm:$0xf0]  ;;  %v8603_v21 = vor.u32 %v9451_v24, %v8602_v53  ;;  %v8386_v15 = vld [vmem:[#allocation14 + $0x670] sm:$0xf]  ;;  %v9397_v26 = vld [vmem:[#allocation14 + $0x684] sm:$0xf0] }
 0x384   :  { %v7839_v23 = vor.u32 %v9256_v30, %v7836_v41  ;;  %v9445_v22 = vld [vmem:[#allocation14 + $0x804] sm:$0xf0]  ;;  %v8387_v19 = vor.u32 %v9397_v26, %v8386_v15  ;;  %v8124_v53 = vld [vmem:[#allocation14 + $0x478] sm:$0xf0]  ;;  %v9376_v24 = vld [vmem:[#allocation14 + $0x5e4] sm:$0xf] }
 0x385   :  { %5355 = vmatpush.bf16.msrb.mxu0 %v7595_v56  ;;  %5369 = vmatpush.bf16.msra.mxu1 %v7787_v58  ;;  %v9220_v56 = vld [vmem:[#allocation14 + $0x104] sm:$0xf]  ;;  %v7692_v58 = vld [vmem:[#allocation14 + $0x118] sm:$0xf0] }
 0x386   :  { %5383 = vmatpush.bf16.msra.mxu2 %v7979_v34  ;;  %5397 = vmatpush.bf16.msrb.mxu3 %v8171_v37  ;;  %v8434_v37 = vld [vmem:[#allocation14 + $0x6d0] sm:$0xf]  ;;  %v7695_v44 = vor.u32 %v9220_v56, %v7692_v58  ;;  %v8362_v58 = vld [vmem:[#allocation14 + $0x640] sm:$0xf]  ;;  %v8508_v41 = vld [vmem:[#allocation14 + $0x778] sm:$0xf0] }
 0x387   :  { %v10366_v34 = vpop.f32.mrf.mxu2  ;;  %v10368_v62 = vpop.f32.mrf.mxu3  ;;  %v8435_v17 = vor.u32 %v9409_v40, %v8434_v37  ;;  %v8554_v37 = vld [vmem:[#allocation14 + $0x7c0] sm:$0xf]  ;;  %v9439_v40 = vld [vmem:[#allocation14 + $0x7d4] sm:$0xf0]  ;;  %v8363_v25 = vor.u32 %v9391_v33, %v8362_v58 }
 0x389   :  { %5356 = vmatpush.bf16.msrb.mxu0 %v7571_v50  ;;  %5370 = vmatpush.bf16.msra.mxu1 %v7763_v55  ;;  %v9262_v50 = vld [vmem:[#allocation14 + $0x254] sm:$0xf]  ;;  %v7860_v55 = vld [vmem:[#allocation14 + $0x268] sm:$0xf0]  ;;  %v5134_v14 = vpop.f32.mrf.mxu0 }
 0x38a   :  { %5384 = vmatpush.bf16.msra.mxu2 %v7955_v61  ;;  %5398 = vmatpush.bf16.msrb.mxu3 %v8147_v63  ;;  %v5135_v59 = vadd.f32 %v5134_v14, %v5121_v16  ;;  %v8627_v61 = vor.u32 %v9457_v6, %v8626_v47  ;;  %v8410_v63 = vld [vmem:[#allocation14 + $0x6a0] sm:$0xf]  ;;  %v7863_v8 = vor.u32 %v9262_v50, %v7860_v55  ;;  %v8578_v16 = vld [vmem:[#allocation14 + $0x7f0] sm:$0xf]  ;;  %v9244_v47 = vld [vmem:[#allocation14 + $0x1c4] sm:$0xf] }
 0x38b   :  { %v8579_v56 = vor.u32 %v9445_v22, %v8578_v16  ;;  %v7788_v6 = vld [vmem:[#allocation14 + $0x1d8] sm:$0xf0]  ;;  %v8555_v50 = vor.u32 %v9439_v40, %v8554_v37  ;;  %v9385_v55 = vld [vmem:[#allocation14 + $0x624] sm:$0xf0]  ;;  %v8530_v14 = vld [vmem:[#allocation14 + $0x790] sm:$0xf] }
 0x38c   :  { %5357 = vmatmul.bf16.vlgmr.msrb.gmra.mxu0 %v10296_v38  ;;  %5371 = vmatmul.bf16.vlgmr.msra.gmra.mxu1 %v10299_v5  ;;  %v9322_v16 = vld [vmem:[#allocation14 + $0x434] sm:$0xf]  ;;  %v8100_v22 = vld [vmem:[#allocation14 + $0x448] sm:$0xf0] }
 0x38d   :  { %5405 = vmatpush.bf16.msra.mxu0 %v8507_v3  ;;  %5419 = vmatpush.bf16.msrb.mxu1 %v8699_v4  ;;  %v9403_v3 = vld [vmem:[#allocation14 + $0x6b4] sm:$0xf0]  ;;  %v5148_v4 = vpop.f32.mrf.mxu1  ;;  %v8103_v58 = vor.u32 %v9322_v16, %v8100_v22  ;;  %v8220_v16 = vld [vmem:[#allocation14 + $0x538] sm:$0xf0]  ;;  %v9400_v22 = vld [vmem:[#allocation14 + $0x6a4] sm:$0xf] }
 0x38e   :  { %5433 = vmatpush.bf16.msrb.mxu2 %v7743_v10  ;;  %5447 = vmatpush.bf16.msra.mxu3 %v7935_v13  ;;  %v9208_v10 = vld [vmem:[#allocation14 + $0xa4] sm:$0xf]  ;;  %v5149_v13 = vadd.f32 %v5148_v4, %v5135_v59  ;;  %v8411_v0 = vor.u32 %v9403_v3, %v8410_v63  ;;  %v9433_v59 = vld [vmem:[#allocation14 + $0x7a4] sm:$0xf0]  ;;  %v9190_v63 = vld [vmem:[#allocation14 + $0x14] sm:$0xf] }
 0x38f   :  { %5385 = vmatmul.bf16.vlgmr.msra.gmra.mxu2 %v10302_v39  ;;  %5399 = vmatmul.bf16.vlgmr.msrb.gmra.mxu3 %v10305_v29  ;;  %v7647_v43 = vor.u32 %v9208_v10, %v7644_v11  ;;  %v7572_v3 = vld [vmem:[#allocation14 + $0x28] sm:$0xf0]  ;;  %v9238_v4 = vld [vmem:[#allocation14 + $0x194] sm:$0xf]  ;;  %v8316_v10 = vld [vmem:[#allocation14 + $0x5f8] sm:$0xf0]  ;;  %v8339_v11 = vor.u32 %v9385_v55, %v8338_v28  ;;  %v8531_v30 = vor.u32 %v9433_v59, %v8530_v14 }
 0x390   :  { %v7575_v15 = vor.u32 %v9190_v63, %v7572_v3  ;;  %v8460_v28 = vld [vmem:[#allocation14 + $0x718] sm:$0xf0]  ;;  %v3563_v59 = vperm.slane %v10340_v36, 2 }
 0x391   :  { %5406 = vmatpush.bf16.msra.mxu0 %v8483_v54  ;;  %5420 = vmatpush.bf16.msrb.mxu1 %v8675_v60  ;;  %v9202_v54 = vld [vmem:[#allocation14 + $0x74] sm:$0xf] }
 0x392   :  { %5434 = vmatpush.bf16.msrb.mxu2 %v7719_v31  ;;  %5448 = vmatpush.bf16.msra.mxu3 %v7911_v9  ;;  %v5162_v60 = vpop.f32.mrf.mxu2  ;;  %v7812_v31 = vld [vmem:[#allocation14 + $0x208] sm:$0xf0]  ;;  %v5176_v12 = vpop.f32.mrf.mxu3 }
 0x393   :  { %v5163_v9 = vadd.f32 %v5162_v60, %v5149_v13  ;;  %v9424_v13 = vld [vmem:[#allocation14 + $0x764] sm:$0xf] }
 0x395   :  { %5407 = vmatpush.bf16.msra.mxu0 %v8459_v2  ;;  %5421 = vmatpush.bf16.msrb.mxu1 %v8651_v1  ;;  %v10370_v57 = vadd.f32 %v5176_v12, %v5163_v9  ;;  %v7623_v2 = vor.u32 %v9202_v54, %v7620_v18  ;;  %v7815_v1 = vor.u32 %v9250_v51, %v7812_v31  ;;  %v9370_v18 = vld [vmem:[#allocation14 + $0x5b4] sm:$0xf]  ;;  %v8292_v51 = vld [vmem:[#allocation14 + $0x5c8] sm:$0xf0]  ;;  %v10374_v37 = vpop.f32.mrf.mxu1 }
 0x396   :  { %5435 = vmatpush.bf16.msrb.mxu2 %v7695_v44  ;;  %5449 = vmatpush.bf16.msra.mxu3 %v7887_v46  ;;  %v9196_v44 = vld [vmem:[#allocation14 + $0x44] sm:$0xf]  ;;  %v7596_v46 = vld [vmem:[#allocation14 + $0x58] sm:$0xf0]  ;;  %v8511_v54 = vor.u32 %v9424_v13, %v8508_v41  ;;  %v9418_v31 = vld [vmem:[#allocation14 + $0x734] sm:$0xf]  ;;  %v8295_v33 = vor.u32 %v9370_v18, %v8292_v51 }
 0x397   :  { %v8484_v9 = vld [vmem:[#allocation14 + $0x748] sm:$0xf0]  ;;  %v9466_v12 = vld [vmem:[#allocation14 + $0x8b4] sm:$0xf]  ;;  %v9448_v18 = vld [vmem:[#allocation14 + $0x824] sm:$0xf] }
 0x398   :  { %v8487_v40 = vor.u32 %v9418_v31, %v8484_v9  ;;  %v8604_v51 = vld [vmem:[#allocation14 + $0x838] sm:$0xf0] }
 0x399   :  { %5408 = vmatpush.bf16.msra.mxu0 %v8435_v17  ;;  %5422 = vmatpush.bf16.msrb.mxu1 %v8627_v61  ;;  %v7599_v17 = vor.u32 %v9196_v44, %v7596_v46  ;;  %v7791_v61 = vor.u32 %v9244_v47, %v7788_v6  ;;  %v9364_v46 = vld [vmem:[#allocation14 + $0x584] sm:$0xf]  ;;  %v8268_v47 = vld [vmem:[#allocation14 + $0x598] sm:$0xf0] }
 0x39a   :  { %5436 = vmatpush.bf16.msrb.mxu2 %v7671_v27  ;;  %5450 = vmatpush.bf16.msra.mxu3 %v7863_v8  ;;  %v7764_v27 = vld [vmem:[#allocation14 + $0x1a8] sm:$0xf0]  ;;  %v9328_v8 = vld [vmem:[#allocation14 + $0x464] sm:$0xf]  ;;  %v8271_v14 = vor.u32 %v9364_v46, %v8268_v47  ;;  %v10383_v13 = vpop.f32.mrf.mxu3  ;;  %v9442_v47 = vld [vmem:[#allocation14 + $0x7f4] sm:$0xf] }
 0x39b   :  { %v7767_v26 = vor.u32 %v9238_v4, %v7764_v27  ;;  %v9412_v6 = vld [vmem:[#allocation14 + $0x704] sm:$0xf]  ;;  %v9358_v4 = vld [vmem:[#allocation14 + $0x554] sm:$0xf]  ;;  %v8244_v27 = vld [vmem:[#allocation14 + $0x568] sm:$0xf0] }
 0x39c   :  { %v8463_v63 = vor.u32 %v9412_v6, %v8460_v28  ;;  %v8247_v41 = vor.u32 %v9358_v4, %v8244_v27  ;;  %v8388_v46 = vld [vmem:[#allocation14 + $0x688] sm:$0xf0]  ;;  %v9340_v4 = vld [vmem:[#allocation14 + $0x4c4] sm:$0xf]  ;;  %v8172_v27 = vld [vmem:[#allocation14 + $0x4d8] sm:$0xf0] }
 0x39d   :  { %5409 = vmatpush.bf16.msra.mxu0 %v8411_v0  ;;  %5423 = vmatpush.bf16.msrb.mxu1 %v8603_v21  ;;  %v9472_v0 = vld [vmem:[#allocation14 + $0x8e4] sm:$0xf]  ;;  %v8700_v21 = vld [vmem:[#allocation14 + $0x8f8] sm:$0xf0]  ;;  %v8580_v6 = vld [vmem:[#allocation14 + $0x808] sm:$0xf0] }
 0x39e   :  { %5437 = vmatpush.bf16.msrb.mxu2 %v7647_v43  ;;  %5451 = vmatpush.bf16.msra.mxu3 %v7839_v23  ;;  %v8127_v43 = vor.u32 %v9328_v8, %v8124_v53  ;;  %v8319_v23 = vor.u32 %v9376_v24, %v8316_v10  ;;  %v8703_v60 = vor.u32 %v9472_v0, %v8700_v21  ;;  %v9406_v8 = vld [vmem:[#allocation14 + $0x6d4] sm:$0xf]  ;;  %v10381_v53 = vpop.f32.mrf.mxu2  ;;  %v9304_v0 = vld [vmem:[#allocation14 + $0x3a4] sm:$0xf]  ;;  %v8028_v21 = vld [vmem:[#allocation14 + $0x3b8] sm:$0xf0] }
 0x39f   :  { %v9454_v24 = vld [vmem:[#allocation14 + $0x854] sm:$0xf]  ;;  %v8031_v31 = vor.u32 %v9304_v0, %v8028_v21 }
 0x3a1   :  { %5410 = vmatpush.bf16.msra.mxu0 %v8387_v19  ;;  %5424 = vmatpush.bf16.msrb.mxu1 %v8579_v56  ;;  %v8676_v19 = vld [vmem:[#allocation14 + $0x8c8] sm:$0xf0]  ;;  %v10372_v56 = vpop.f32.mrf.mxu0 }
 0x3a2   :  { %5438 = vmatpush.bf16.msrb.mxu2 %v7623_v2  ;;  %5452 = vmatpush.bf16.msra.mxu3 %v7815_v1  ;;  %v9316_v2 = vld [vmem:[#allocation14 + $0x404] sm:$0xf]  ;;  %v8076_v1 = vld [vmem:[#allocation14 + $0x418] sm:$0xf0]  ;;  %v8679_v44 = vor.u32 %v9466_v12, %v8676_v19  ;;  %v9298_v12 = vld [vmem:[#allocation14 + $0x374] sm:$0xf] }
 0x3a3   :  { %v8079_v55 = vor.u32 %v9316_v2, %v8076_v1  ;;  %v8004_v19 = vld [vmem:[#allocation14 + $0x388] sm:$0xf0]  ;;  %v9346_v2 = vld [vmem:[#allocation14 + $0x4f4] sm:$0xf] }
 0x3a4   :  { %v8196_v1 = vld [vmem:[#allocation14 + $0x508] sm:$0xf0] }
 0x3a5   :  { %5411 = vmatpush.bf16.msra.mxu0 %v8363_v25  ;;  %5425 = vmatpush.bf16.msrb.mxu1 %v8555_v50  ;;  %v9460_v25 = vld [vmem:[#allocation14 + $0x884] sm:$0xf]  ;;  %v8652_v50 = vld [vmem:[#allocation14 + $0x898] sm:$0xf0] }
 0x3a6   :  { %5439 = vmatpush.bf16.msrb.mxu2 %v7599_v17  ;;  %5453 = vmatpush.bf16.msra.mxu3 %v7791_v61  ;;  %v9310_v17 = vld [vmem:[#allocation14 + $0x3d4] sm:$0xf]  ;;  %v8052_v61 = vld [vmem:[#allocation14 + $0x3e8] sm:$0xf0]  ;;  %v8655_v3 = vor.u32 %v9460_v25, %v8652_v50  ;;  %v8007_v50 = vor.u32 %v9298_v12, %v8004_v19 }
 0x3a9   :  { %5412 = vmatpush.bf16.msra.mxu0 %v8339_v11  ;;  %5426 = vmatpush.bf16.msrb.mxu1 %v8531_v30  ;;  %v5190_v10 = vpop.f32.mrf.mxu0  ;;  %v8055_v30 = vor.u32 %v9310_v17, %v8052_v61  ;;  %v7980_v17 = vld [vmem:[#allocation14 + $0x358] sm:$0xf0] }
 0x3aa   :  { %5440 = vmatpush.bf16.msrb.mxu2 %v7575_v15  ;;  %5454 = vmatpush.bf16.msra.mxu3 %v7767_v26  ;;  %v5191_v11 = vadd.f32 %v5190_v10, %v3563_v59  ;;  %v5204_v15 = vpop.f32.mrf.mxu1 }
 0x3ac   :  { %5413 = vmatmul.bf16.vlgmr.msra.gmra.mxu0 %v10318_v42  ;;  %5427 = vmatmul.bf16.vlgmr.msrb.gmra.mxu1 %v10322_v35 }
 0x3ad   :  { %5461 = vmatpush.bf16.msrb.mxu0 %v8127_v43  ;;  %5475 = vmatpush.bf16.msra.mxu1 %v8319_v23  ;;  %v9352_v23 = vld [vmem:[#allocation14 + $0x524] sm:$0xf] }
 0x3ae   :  { %5489 = vmatpush.bf16.msra.mxu2 %v8511_v54  ;;  %5503 = vmatpush.bf16.msrb.mxu3 %v8703_v60  ;;  %v5205_v54 = vadd.f32 %v5204_v15, %v5191_v11  ;;  %v8412_v60 = vld [vmem:[#allocation14 + $0x6b8] sm:$0xf0]  ;;  %v8223_v9 = vor.u32 %v9352_v23, %v8220_v16  ;;  %v8175_v11 = vor.u32 %v9340_v4, %v8172_v27  ;;  %v9334_v15 = vld [vmem:[#allocation14 + $0x494] sm:$0xf]  ;;  %v8340_v23 = vld [vmem:[#allocation14 + $0x628] sm:$0xf0] }
 0x3af   :  { %5441 = vmatmul.bf16.vlgmr.msrb.gmra.mxu2 %v10296_v38  ;;  %5455 = vmatmul.bf16.vlgmr.msra.gmra.mxu3 %v10299_v5  ;;  %v8436_v38 = vld [vmem:[#allocation14 + $0x6e8] sm:$0xf0]  ;;  %v9430_v16 = vld [vmem:[#allocation14 + $0x794] sm:$0xf] }
 0x3b0   :  { %v8628_v5 = vld [vmem:[#allocation14 + $0x868] sm:$0xf0]  ;;  %v8439_v26 = vor.u32 %v9406_v8, %v8436_v38  ;;  %v9388_v8 = vld [vmem:[#allocation14 + $0x644] sm:$0xf]  ;;  %v8364_v38 = vld [vmem:[#allocation14 + $0x658] sm:$0xf0] }
 0x3b1   :  { %5462 = vmatpush.bf16.msrb.mxu0 %v8103_v58  ;;  %5476 = vmatpush.bf16.msra.mxu1 %v8295_v33  ;;  %v8631_v43 = vor.u32 %v9454_v24, %v8628_v5  ;;  %v8415_v58 = vor.u32 %v9400_v22, %v8412_v60  ;;  %v8607_v33 = vor.u32 %v9448_v18, %v8604_v51  ;;  %v9436_v24 = vld [vmem:[#allocation14 + $0x7c4] sm:$0xf]  ;;  %v8556_v5 = vld [vmem:[#allocation14 + $0x7d8] sm:$0xf0]  ;;  %v8532_v22 = vld [vmem:[#allocation14 + $0x7a8] sm:$0xf0] }
 0x3b2   :  { %5490 = vmatpush.bf16.msra.mxu2 %v8487_v40  ;;  %5504 = vmatpush.bf16.msrb.mxu3 %v8679_v44  ;;  %v9394_v40 = vld [vmem:[#allocation14 + $0x674] sm:$0xf]  ;;  %v5218_v44 = vpop.f32.mrf.mxu2  ;;  %v5232_v25 = vpop.f32.mrf.mxu3  ;;  %v8367_v0 = vor.u32 %v9388_v8, %v8364_v38  ;;  %v8559_v21 = vor.u32 %v9436_v24, %v8556_v5  ;;  %v8535_v51 = vor.u32 %v9430_v16, %v8532_v22  ;;  %v3565_v16 = vperm.slane %v10340_v36, 4 }
 0x3b3   :  { %v5219_v28 = vadd.f32 %v5218_v44, %v5205_v54 }
 0x3b5   :  { %5463 = vmatpush.bf16.msrb.mxu0 %v8079_v55  ;;  %5477 = vmatpush.bf16.msra.mxu1 %v8271_v14  ;;  %v8199_v55 = vor.u32 %v9346_v2, %v8196_v1  ;;  %v9292_v14 = vld [vmem:[#allocation14 + $0x344] sm:$0xf]  ;;  %v5233_v61 = vadd.f32 %v5232_v25, %v5219_v28 }
 0x3b6   :  { %5491 = vmatpush.bf16.msra.mxu2 %v8463_v63  ;;  %5505 = vmatpush.bf16.msrb.mxu3 %v8655_v3  ;;  %v8391_v63 = vor.u32 %v9394_v40, %v8388_v46  ;;  %v8583_v3 = vor.u32 %v9442_v47, %v8580_v6  ;;  %v7983_v10 = vor.u32 %v9292_v14, %v7980_v17  ;;  %v3564_v14 = vperm.slane %v10340_v36, 3 }
 0x3b9   :  { %5464 = vmatpush.bf16.msrb.mxu0 %v8055_v30  ;;  %5478 = vmatpush.bf16.msra.mxu1 %v8247_v41  ;;  %v9286_v30 = vld [vmem:[#allocation14 + $0x314] sm:$0xf]  ;;  %v7956_v41 = vld [vmem:[#allocation14 + $0x328] sm:$0xf0] }
 0x3ba   :  { %5492 = vmatpush.bf16.msra.mxu2 %v8439_v26  ;;  %5506 = vmatpush.bf16.msrb.mxu3 %v8631_v43  ;;  %v8148_v26 = vld [vmem:[#allocation14 + $0x4a8] sm:$0xf0]  ;;  %v9382_v43 = vld [vmem:[#allocation14 + $0x614] sm:$0xf]  ;;  %v7959_v54 = vor.u32 %v9286_v30, %v7956_v41  ;;  %v5220_v19 = vpop.f32.mrf.mxu2  ;;  %v5234_v46 = vpop.f32.mrf.mxu3 }
 0x3bb   :  { %v8151_v60 = vor.u32 %v9334_v15, %v8148_v26  ;;  %v8343_v18 = vor.u32 %v9382_v43, %v8340_v23 }
 0x3bd   :  { %5465 = vmatpush.bf16.msrb.mxu0 %v8031_v31  ;;  %5479 = vmatpush.bf16.msra.mxu1 %v8223_v9  ;;  %v5192_v31 = vpop.f32.mrf.mxu0  ;;  %v5206_v9 = vpop.f32.mrf.mxu1 }
 0x3be   :  { %5493 = vmatpush.bf16.msra.mxu2 %v8415_v58  ;;  %5507 = vmatpush.bf16.msrb.mxu3 %v8607_v33  ;;  %v5193_v12 = vadd.f32 %v5192_v31, %v3563_v59 }
 0x3c0   :  { %v5207_v2 = vadd.f32 %v5206_v9, %v5193_v12 }
 0x3c1   :  { %5466 = vmatpush.bf16.msrb.mxu0 %v8007_v50  ;;  %5480 = vmatpush.bf16.msra.mxu1 %v8199_v55 }
 0x3c2   :  { %5494 = vmatpush.bf16.msra.mxu2 %v8391_v63  ;;  %5508 = vmatpush.bf16.msrb.mxu3 %v8583_v3  ;;  %v5221_v40 = vadd.f32 %v5220_v19, %v5207_v2 }
 0x3c5   :  { %5467 = vmatpush.bf16.msrb.mxu0 %v7983_v10  ;;  %5481 = vmatpush.bf16.msra.mxu1 %v8175_v11 }
 0x3c6   :  { %5495 = vmatpush.bf16.msra.mxu2 %v8367_v0  ;;  %5509 = vmatpush.bf16.msrb.mxu3 %v8559_v21 }
 0x3c9   :  { %5468 = vmatpush.bf16.msrb.mxu0 %v7959_v54  ;;  %5482 = vmatpush.bf16.msra.mxu1 %v8151_v60  ;;  %v5246_v58 = vpop.f32.mrf.mxu0  ;;  %v5260_v33 = vpop.f32.mrf.mxu1 }
 0x3ca   :  { %5496 = vmatpush.bf16.msra.mxu2 %v8343_v18  ;;  %5510 = vmatpush.bf16.msrb.mxu3 %v8535_v51  ;;  %v5247_v1 = vadd.f32 %v5246_v58, %v5233_v61 }
 0x3cc   :  { %5469 = vmatmul.bf16.vlgmr.msrb.gmra.mxu0 %v10302_v39  ;;  %5483 = vmatmul.bf16.vlgmr.msra.gmra.mxu1 %v10305_v29  ;;  %v10393_v44 = vadd.f32 %v5260_v33, %v5247_v1  ;;  %v5051_v39 = vadd.f32 %v10349_v52, %v10347_v20  ;;  %v5235_v29 = vadd.f32 %v5234_v46, %v5221_v40 }
 0x3cd   :  { %5497 = vmatmul.bf16.vlgmr.msra.gmra.mxu2 %v10318_v42  ;;  %5511 = vmatmul.bf16.vlgmr.msrb.gmra.mxu3 %v10322_v35  ;;  %v5109_v20 = vadd.f32 %v10366_v34, %v3562_v45 }
 0x3ce   :  { %v5065_v42 = vadd.f32 %v10351_v49, %v5051_v39 }
 0x3d0   :  { %v5079_v6 = vadd.f32 %v10353_v32, %v5065_v42  ;;  %v5123_v32 = vadd.f32 %v10368_v62, %v5109_v20 }
 0x3d1   :  { %v5248_v47 = vpop.f32.mrf.mxu0  ;;  %v5262_v59 = vpop.f32.mrf.mxu1 }
 0x3d2   :  { %v5249_v35 = vadd.f32 %v5248_v47, %v5235_v29  ;;  %v5093_v25 = vadd.f32 %v10355_v48, %v5079_v6  ;;  %v5274_v50 = vpop.f32.mrf.mxu2  ;;  %v5288_v55 = vpop.f32.mrf.mxu3  ;;  %v5137_v4 = vadd.f32 %v10372_v56, %v5123_v32  ;;  %v9534_v6 = vld [vmem:[#allocation15] sm:$0x3f] }
 0x3d3   :  { %v5275_v17 = vadd.f32 %v5274_v50, %v3564_v14 }
 0x3d4   :  { %v5263_v28 = vadd.f32 %v5262_v59, %v5249_v35  ;;  %v5151_v38 = vadd.f32 %v10374_v37, %v5137_v4  ;;  %v3566_v59 = vperm.slane %v9534_v6, 5  ;;  %v9485_v6 = vld [vmem:[#allocation17 + $0x48] sm:$0xff] }
 0x3d5   :  { %v5289_v61 = vadd.f32 %v5288_v55, %v5275_v17 }
 0x3d6   :  { %5532 = vmatpush.xpose.msra.mxu0 %v5263_v28  ;;  %v5165_v45 = vadd.f32 %v10381_v53, %v5151_v38 }
 0x3d8   :  { %v5179_v62 = vadd.f32 %v10383_v13, %v5165_v45 }
 0x3da   :  { %v5276_v52 = vpop.f32.mrf.mxu2  ;;  %v5290_v49 = vpop.f32.mrf.mxu3 }
 0x3db   :  { %v5277_v27 = vadd.f32 %v5276_v52, %v3564_v14 }
 0x3dc   :  { %5533 = vmatmul.f32.vlgmr.msra.gmra.mxu0 %v5093_v25 }
 0x3dd   :  { %v5291_v10 = vadd.f32 %v5290_v49, %v5277_v27 }
 0x3e9   :  { %v5302_v63 = vpop.f32.mrf.mxu0  ;;  %v5316_v48 = vpop.f32.mrf.mxu1 }
 0x3ea   :  { %v5303_v3 = vadd.f32 %v5302_v63, %v5289_v61 }
 0x3ec   :  { %v5317_v8 = vadd.f32 %v5316_v48, %v5303_v3 }
 0x3f1   :  { %v5304_v30 = vpop.f32.mrf.mxu0  ;;  %v5318_v0 = vpop.f32.mrf.mxu1 }
 0x3f2   :  { %v5330_v24 = vpop.f32.mrf.mxu2  ;;  %v5344_v5 = vpop.f32.mrf.mxu3  ;;  %v5305_v41 = vadd.f32 %v5304_v30, %v5291_v10 }
 0x3f3   :  { %v5331_v11 = vadd.f32 %v5330_v24, %v5317_v8 }
 0x3f4   :  { %v5319_v21 = vadd.f32 %v5318_v0, %v5305_v41 }
 0x3f5   :  { %v5345_v34 = vadd.f32 %v5344_v5, %v5331_v11 }
 0x3f7   :  { %5648 = vmatpush.xpose.msrb.mxu1 %v5345_v34 }
 0x3fa   :  { %v5332_v56 = vpop.f32.mrf.mxu2  ;;  %5649 = vmatmul.f32.vlgmr.msrb.gmra.mxu1 %v5179_v62  ;;  %v5346_v26 = vpop.f32.mrf.mxu3 }
 0x3fb   :  { %v5333_v15 = vadd.f32 %v5332_v56, %v5319_v21 }
 0x3fd   :  { %v5347_v43 = vadd.f32 %v5346_v26, %v5333_v15 }
 0x3ff   :  { %5552 = vmatpush.xpose.msrb.mxu0 %v5347_v43 }
 0x402   :  { %5553 = vmatmul.f32.vlgmr.msrb.gmra.mxu0 %v10370_v57 }
 0x409   :  { %v5358_v37 = vpop.f32.mrf.mxu0  ;;  %v5372_v23 = vpop.f32.mrf.mxu1 }
 0x40a   :  { %v5359_v53 = vadd.f32 %v5358_v37, %v3565_v16 }
 0x40c   :  { %v5373_v18 = vadd.f32 %v5372_v23, %v5359_v53 }
 0x411   :  { %v5360_v54 = vpop.f32.mrf.mxu0  ;;  %v5374_v60 = vpop.f32.mrf.mxu1 }
 0x412   :  { %v5386_v22 = vpop.f32.mrf.mxu2  ;;  %v5400_v51 = vpop.f32.mrf.mxu3  ;;  %v5361_v31 = vadd.f32 %v5360_v54, %v3565_v16 }
 0x413   :  { %v5387_v13 = vadd.f32 %v5386_v22, %v5373_v18 }
 0x414   :  { %v5375_v33 = vadd.f32 %v5374_v60, %v5361_v31 }
 0x415   :  { %v5401_v9 = vadd.f32 %v5400_v51, %v5387_v13 }
 0x41a   :  { %v5388_v12 = vpop.f32.mrf.mxu2  ;;  %v5402_v40 = vpop.f32.mrf.mxu3 }
 0x41b   :  { %v5389_v1 = vadd.f32 %v5388_v12, %v5375_v33  ;;  %v9483_v12 = vld [vmem:[#allocation17 + $0x38] sm:$0xff]  ;;  %v9481_v33 = vld [vmem:[#allocation17 + $0x28] sm:$0xff] }
 0x41d   :  { %v5403_v39 = vadd.f32 %v5402_v40, %v5389_v1  ;;  %v9480_v1 = vld [vmem:[#allocation17 + $0x20] sm:$0xff]  ;;  %v9479_v40 = vld [vmem:[#allocation17 + $0x18] sm:$0xff] }
 0x429   :  { %v5414_v19 = vpop.f32.mrf.mxu0  ;;  %v5428_v58 = vpop.f32.mrf.mxu1 }
 0x42a   :  { %v5415_v2 = vadd.f32 %v5414_v19, %v5401_v9  ;;  %v9491_v19 = vld [vmem:[#allocation17 + $0x78] sm:$0xff] }
 0x42b   :  { %5865 = vmatpush.bf16.msra.mxu1 %v9491_v19 }
 0x42c   :  { %v5429_v57 = vadd.f32 %v5428_v58, %v5415_v2  ;;  %v9490_v58 = vld [vmem:[#allocation17 + $0x70] sm:$0xff]  ;;  %v9489_v2 = vld [vmem:[#allocation17 + $0x68] sm:$0xff] }
 0x42e   :  { %5683 = vmatpush.msrb.mxu2 %v5429_v57  ;;  %v9488_v57 = vld [vmem:[#allocation17 + $0x60] sm:$0xff] }
 0x42f   :  { %5866 = vmatpush.bf16.msra.mxu1 %v9490_v58 }
 0x431   :  { %v5416_v36 = vpop.f32.mrf.mxu0  ;;  %v5430_v29 = vpop.f32.mrf.mxu1 }
 0x432   :  { %v5417_v46 = vadd.f32 %v5416_v36, %v5403_v39  ;;  %v5442_v47 = vpop.f32.mrf.mxu2  ;;  %v5456_v35 = vpop.f32.mrf.mxu3  ;;  %v9487_v39 = vld [vmem:[#allocation17 + $0x58] sm:$0xff]  ;;  %v9478_v36 = vld [vmem:[#allocation17 + $0x10] sm:$0xff] }
 0x433   :  { %v5443_v55 = vadd.f32 %v5442_v47, %v3566_v59  ;;  %5867 = vmatpush.bf16.msra.mxu1 %v9489_v2 }
 0x434   :  { %v5431_v42 = vadd.f32 %v5430_v29, %v5417_v46  ;;  %v9486_v46 = vld [vmem:[#allocation17 + $0x50] sm:$0xff] }
 0x435   :  { %v5457_v20 = vadd.f32 %v5456_v35, %v5443_v55  ;;  %v9477_v35 = vld [vmem:[#allocation17 + $0x8] sm:$0xff] }
 0x436   :  { %5588 = vmatpush.msra.mxu0 %v5431_v42  ;;  %v9497_v55 = vld [vmem:[#allocation20 + $0x28] sm:$0xff] }
 0x437   :  { %5868 = vmatpush.bf16.msra.mxu1 %v9488_v57 }
 0x438   :  { %5628 = vmatpush.xpose.msrb.mxu0 %v10393_v44 }
 0x43a   :  { %v5444_v28 = vpop.f32.mrf.mxu2  ;;  %v5458_v25 = vpop.f32.mrf.mxu3 }
 0x43b   :  { %v5445_v17 = vadd.f32 %v5444_v28, %v3566_v59  ;;  %5869 = vmatpush.bf16.msra.mxu1 %v9487_v39  ;;  %v9476_v59 = vld [vmem:[#allocation17] sm:$0xff] }
 0x43c   :  { %v9484_v28 = vld [vmem:[#allocation17 + $0x40] sm:$0xff] }
 0x43d   :  { %v5459_v61 = vadd.f32 %v5458_v25, %v5445_v17  ;;  %v9499_v25 = vld [vmem:[#allocation20 + $0x38] sm:$0xff] }
 0x43e   :  { %5948 = vmatpush.bf16.msra.mxu2 %v9499_v25  ;;  %v9495_v17 = vld [vmem:[#allocation20 + $0x18] sm:$0xff] }
 0x43f   :  { %5870 = vmatpush.bf16.msra.mxu1 %v9486_v46 }
 0x443   :  { %5871 = vmatpush.bf16.msra.mxu1 %v9485_v6 }
 0x447   :  { %5872 = vmatpush.bf16.msra.mxu1 %v9484_v28 }
 0x449   :  { %v5470_v50 = vpop.f32.mrf.mxu0  ;;  %v5484_v14 = vpop.f32.mrf.mxu1 }
 0x44a   :  { %v5471_v32 = vadd.f32 %v5470_v50, %v5457_v20  ;;  %v9498_v50 = vld [vmem:[#allocation20 + $0x30] sm:$0xff] }
 0x44b   :  { %5949 = vmatpush.bf16.msra.mxu2 %v9498_v50 }
 0x44c   :  { %v5485_v4 = vadd.f32 %v5484_v14, %v5471_v32  ;;  %v9496_v14 = vld [vmem:[#allocation20 + $0x20] sm:$0xff] }
 0x44f   :  { %5950 = vmatpush.bf16.msra.mxu2 %v9497_v55 }
 0x450   :  { %v5498_v52 = vpop.f32.mrf.mxu2  ;;  %v5512_v49 = vpop.f32.mrf.mxu3 }
 0x451   :  { %v5472_v63 = vpop.f32.mrf.mxu0  ;;  %v5486_v48 = vpop.f32.mrf.mxu1  ;;  %v5499_v27 = vadd.f32 %v5498_v52, %v5485_v4  ;;  %v9494_v52 = vld [vmem:[#allocation20 + $0x10] sm:$0xff] }
 0x452   :  { %v5473_v3 = vadd.f32 %v5472_v63, %v5459_v61  ;;  %v5713_v61 = vstv %s5712_s3 }
 0x453   :  { %v5513_v10 = vadd.f32 %v5512_v49, %v5499_v27  ;;  %5951 = vmatpush.bf16.msra.mxu2 %v9496_v14  ;;  %v5709_v49 = vstv %s10447_s8  ;;  %s9929_s8 = smov [#allocation24]  }
 0x454   :  { %v5487_v44 = vadd.f32 %v5486_v48, %v5473_v3  ;;  %s5978_s22 = sshll.u32 %s9929_s8, 4  ;;  %s5979_s22 = int_to_ptr.vmem [resolvable:$true] %s5978_s22 }
 0x455   :  { %5983 = dma.vmem_to_hbm [thread:$0]  %s5979_s22, 768, %s5981_s5, [#allocation25]  }
 0x457   :  { %5952 = vmatpush.bf16.msra.mxu2 %v9495_v17 }
 0x458   :  { %v5500_v8 = vpop.f32.mrf.mxu2  ;;  %v5514_v24 = vpop.f32.mrf.mxu3 }
 0x459   :  { %v5501_v38 = vadd.f32 %v5500_v8, %v5487_v44  ;;  %v5534_v11 = vpop.f32.mrf.mxu0 }
 0x45b   :  { %v5515_v5 = vadd.f32 %v5514_v24, %v5501_v38  ;;  %5953 = vmatpush.bf16.msra.mxu2 %v9494_v52 }
 0x45d   :  { %5608 = vmatpush.msra.mxu3 %v5515_v5  ;;  %v9493_v5 = vld [vmem:[#allocation20 + $0x8] sm:$0xff] }
 0x45f   :  { %5703 = vmatpush.msrb.mxu3 %v5513_v10  ;;  %5954 = vmatpush.bf16.msra.mxu2 %v9493_v5  ;;  %v9492_v10 = vld [vmem:[#allocation20] sm:$0xff] }
 0x463   :  { %5955 = vmatpush.bf16.msra.mxu2 %v9492_v10 }
 0x477   :  { %v5650_v16 = vpop.f32.mrf.mxu1 }
 0x47f   :  { %v5554_v30 = vpop.f32.mrf.mxu0 }
 0x480   :  { %v5555_v45 = vadd.f32 %v5554_v30, %v5534_v11  ;;  %v9519_v11 = vld [vmem:[#allocation18] ss:$0 sm:$0xff] }
 0x482   :  { %v5557_v34 = vmul.f32 0.0625, %v5555_v45 }
 0x484   :  { %v5559_v41 = vsel %vm5558_vm6, %v5557_v34, -inf }
 0x485   :  { %5560 = vmax.xlane.f32.xlu1 %v5559_v41 }
 0x4f8   :  { %v5561_v62 = vpop.xlane.xlu1 %5560 }
 0x4f9   :  { %v5562_v0 = vsub.f32 %v5557_v34, %v5561_v62 }
 0x4fb   :  { %v5563_v21 = vmul.f32 1.442695, %v5562_v0 }
 0x4fd   :  { %9525 = vpow2.f32 %v5563_v21 }
 0x503   :  { %v9526_v56 = vpop.eup %9525 }
 0x504   :  { %v5565_v15 = vsel %vm5558_vm6, %v9526_v56, 0.0 }
 0x505   :  { %5566 = vadd.xlane.f32.xlu1 %v5565_v15  ;;  %v9520_v15 = vld [vmem:[#allocation21] ss:$0 sm:$0xff] }
 0x578   :  { %v5567_v26 = vpop.xlane.xlu1 %5566 }
 0x579   :  { %9527 = vrcp.f32 %v5567_v26 }
 0x57f   :  { %v9528_v43 = vpop.eup %9527 }
 0x580   :  { %v5569_v37 = vmul.f32 %v9528_v43, %v9526_v56 }
 0x582   :  { %8704 = vmatmul.msk.f32.vlgmr.msra.gmra.mxu0 %vm5558_vm6, %v5569_v37  ;;  %8705 = vmatmul.msk.f32.vlgmr.msra.gmra.mxu3 %vm5558_vm6, %v5569_v37 }
 0x583   :  { %5852 = vmatpush.bf16.msra.mxu0 %v9483_v12 }
 0x58a   :  { %5629 = vmatmul.f32.vlgmr.msrb.gmra.mxu0 %v10360_v7  ;;  %v9482_v7 = vld [vmem:[#allocation17 + $0x30] sm:$0xff] }
 0x58b   :  { %5853 = vmatpush.bf16.msra.mxu0 %v9482_v7 }
 0x58f   :  { %5854 = vmatpush.bf16.msra.mxu0 %v9481_v33 }
 0x593   :  { %5855 = vmatpush.bf16.msra.mxu0 %v9480_v1 }
 0x597   :  { %5856 = vmatpush.bf16.msra.mxu0 %v9479_v40 }
 0x59b   :  { %5857 = vmatpush.bf16.msra.mxu0 %v9478_v36 }
 0x59f   :  { %5858 = vmatpush.bf16.msra.mxu0 %v9477_v35 }
 0x5a3   :  { %5859 = vmatpush.bf16.msra.mxu0 %v9476_v59 }
 0x5ff   :  { %v10417_v23 = vpop.f32.mrf.mxu0 }
 0x600   :  { %v5710_v3 = vmul.f32 %v5709_v49, %v10417_v23 }
 0x605   :  { %v5610_v20 = vpop.f32.mrf.mxu3 }
 0x606   :  { %v5711_v4 = vmul.f32 %v5709_v49, %v5610_v20 }
 0x607   :  { %v5630_v53 = vpop.f32.mrf.mxu0 }
 0x608   :  { %v5651_v22 = vadd.f32 %v5650_v16, %v5630_v53 }
 0x60a   :  { %v5653_v54 = vmul.f32 0.0625, %v5651_v22 }
 0x60c   :  { %v5654_v60 = vsel %vm5558_vm6, %v5653_v54, -inf }
 0x60d   :  { %5655 = vmax.xlane.f32.xlu2 %v5654_v60 }
 0x680   :  { %v5656_v18 = vpop.xlane.xlu2 %5655 }
 0x681   :  { %v5657_v13 = vsub.f32 %v5653_v54, %v5656_v18 }
 0x683   :  { %v5658_v51 = vmul.f32 1.442695, %v5657_v13 }
 0x685   :  { %9529 = vpow2.f32 %v5658_v51 }
 0x68b   :  { %v9530_v31 = vpop.eup %9529 }
 0x68c   :  { %v5660_v9 = vsel %vm5558_vm6, %v9530_v31, 0.0 }
 0x68d   :  { %5661 = vadd.xlane.f32.xlu2 %v5660_v9 }
 0x700   :  { %v5662_v29 = vpop.xlane.xlu2 %5661 }
 0x701   :  { %9531 = vrcp.f32 %v5662_v29 }
 0x707   :  { %v9532_v42 = vpop.eup %9531 }
 0x708   :  { %v5664_v47 = vmul.f32 %v9532_v42, %v9530_v31 }
 0x70a   :  { %8706 = vmatmul.msk.f32.vlgmr.msrb.gmra.mxu2 %vm5558_vm6, %v5664_v47  ;;  %8707 = vmatmul.msk.f32.vlgmr.msrb.gmra.mxu3 %vm5558_vm6, %v5664_v47 }
 0x78d   :  { %v5685_v63 = vpop.f32.mrf.mxu2  ;;  %v5705_v32 = vpop.f32.mrf.mxu3 }
 0x78e   :  { %v5714_v48 = vmul.f32 %v5713_v61, %v5685_v63  ;;  %v5715_v44 = vmul.f32 %v5713_v61, %v5705_v32 }
 0x790   :  { %v5716_v27 = vadd.f32 %v5714_v48, %v5710_v3  ;;  %v5717_v8 = vadd.f32 %v5715_v44, %v5711_v4 }
 0x792   :  { %v5718_v38 = vpack.c.bf16 %v5716_v27, %v5716_v27  ;;  %v5719_v24 = vpack.c.bf16 %v5717_v8, %v5717_v8 }
 0x794   :  { %5860 = vmatmul.bf16.vlgmr.msra.gmra.mxu0 %v5718_v38  ;;  %5873 = vmatmul.bf16.vlgmr.msra.gmra.mxu1 %v5719_v24 }
 0x811   :  { %v5861_v30 = vpop.f32.mrf.mxu0  ;;  %v5874_v45 = vpop.f32.mrf.mxu1 }
 0x812   :  { %v5862_v34 = vadd.f32 %v9519_v11, %v5861_v30 }
 0x814   :  { %v5875_v41 = vadd.f32 %v5874_v45, %v5862_v34 }
 0x816   :  { %v5878_v62 = vmax.f32 %v5875_v41, 0.0 }
 0x818   :  { %v5879_v0 = vpack.c.bf16 %v5878_v62, %v5878_v62 }
 0x819   :  { %v5863_v21 = vpop.f32.mrf.mxu0  ;;  %v5876_v56 = vpop.f32.mrf.mxu1 }
 0x81a   :  { %5956 = vmatmul.bf16.vlgmr.msra.gmra.mxu2 %v5879_v0 }
 0x89d   :  { %v5957_v26 = vpop.f32.mrf.mxu2 }
 0x89e   :  { %v5958_v43 = vadd.f32 %v9520_v15, %v5957_v26 }
 0x8a0   :  { %5961 = vst [vmem:[#allocation26] sm:$0xff] %v5958_v43 }
 0x8a1   :  { %5994 = dma.vmem_to_hbm [thread:$0]  %s5990_s28, 128, %s5992_s6, [#allocation25]  }
 0x8a5   :  { %v5959_v37 = vpop.f32.mrf.mxu2 }
 0x8a6   :  { %9909 = dma.done.wait [#allocation5], 768  }
 0x8a7   :  { %9910 = vsyncadd [#allocation5], 4294966528 }
 0x8a8   :  { %9911 = dma.done.wait [#allocation25], 896  }
 0x8a9   :  { %9912 = vsyncadd [#allocation25], 4294966400 }
 0x8aa   :  { %6007 = vsyncpa [#allocation4], 1 }
 0x8ab   :  { %6008 = vsyncpa [#allocation7], 1 }
 0x8ac   :  { %6009 = vsyncpa [#allocation10], 1 }
 0x8ad   :  { %6010 = vsyncpa [#allocation13], 1 }
 0x8ae   :  { %6011 = vsyncpa [#allocation16], 1 }
 0x8af   :  { %6012 = vsyncpa [#allocation19], 1 }
 0x8b0   :  { %6013 = vsyncpa [#allocation22], 1 }
 0x8b1   :  { %6014 = vsyncpa [#allocation5], 1 }
 0x8b2   :  { %6015 = vsyncpa [#allocation25], 1 }

</bundles_post_ra>
